<compile_context>
chip_gen: v7x
topology: tpu7x:2x2x1
jax: 0.10.0
libtpu: 0.0.40
codegen_flags: <defaults>
</compile_context>

<pallas_src>
import functools

import jax
import jax.numpy as jnp
from jax import lax
from jax.experimental import pallas as pl
from jax.experimental.pallas import tpu as pltpu

# ---------------------------------------------------------------------------
# Problem sizes (28x28 input is required by the Linear in_features = neurons*12*12).
# ---------------------------------------------------------------------------
B = 2          # batch
CIN = 3        # input channels  (input_shape)
H = W = 28     # spatial
KH = KW = 3    # conv kernel
NEUR = 8       # neurons (hidden channels)
OUT = 10       # output_shape

H1 = H - 2     # 26 after conv1
H2 = H1 - 2    # 24 after conv2
HP = H2 // 2   # 12 after maxpool
HW = H * W     # 784 flat length per image & channel
SLAB = 896     # per-image lane stride in the packed layout (7 * 128, lane aligned)

MAX_SHIFT = (KH - 1) * W + (KW - 1)      # 58 : largest flat conv tap offset
L_POOL = 2 * (HP - 1) * (W + 1) + 1      # 639: flat range containing every pooled position
L2 = L_POOL + W + 1                      # 668: conv2 outputs needed by the pool
L1 = L2 + MAX_SHIFT                      # 726: conv1 outputs needed by conv2
SHIFTS = tuple(ky * W + kx for ky in range(KH) for kx in range(KW))   # 0..58

assert L1 + MAX_SHIFT <= HW              # conv1 taps stay inside one image's 784-slab
assert W + L_POOL <= L2 - 1              # vertical pool shift stays inside mh
assert SLAB % 128 == 0 and SLAB >= HW    # lane-aligned per-image stride


# ---------------------------------------------------------------------------
# In-kernel helpers (pure jnp on values; trip counts are static Python ints).
# ---------------------------------------------------------------------------
def _tree_sum(terms):
    """Balanced-tree sum of equal-shape arrays (no long serial add chain)."""
    terms = list(terms)
    while len(terms) > 1:
        nxt = [terms[i] + terms[i + 1] for i in range(0, len(terms) - 1, 2)]
        if len(terms) % 2:
            nxt.append(terms[-1])
        terms = nxt
    return terms[0]


def _gather_taps(y_all, out_len, bias):
    """Sum the 9 lane-shifted per-tap 1x1-conv products, add bias, ReLU.

    y_all : (KH*KW*NEUR, Ly); row t*NEUR + co holds tap t's 1x1 product for channel co.
    Returns (NEUR, out_len).
    """
    terms = [y_all[t * NEUR:(t + 1) * NEUR, s:s + out_len] for t, s in enumerate(SHIFTS)]
    return jnp.maximum(_tree_sum(terms) + bias, 0.0)


# ---------------------------------------------------------------------------
# Fused kernel: conv1+ReLU -> conv2+ReLU -> maxpool -> flatten -> linear,
# whole lane-packed batch (or per-core batch half) in one grid step.
# ---------------------------------------------------------------------------
def fused_cnn_kernel(x_ref, w1_ref, b1_ref, w2_ref, b2_ref, wlq_ref, fb_ref, out_ref):
    # x_ref  : (CIN, G*SLAB)        lane-packed images, image g at lane offset g*SLAB
    # w1_ref : (9*NEUR, CIN)        conv1 taps folded into the M axis
    # b1_ref : (NEUR, 1)
    # w2_ref : (9*NEUR, NEUR)       conv2 taps folded into the M axis
    # b2_ref : (NEUR, 1)
    # wlq_ref: (L_POOL, NEUR*OUT)   scattered linear weight, column c*OUT + o
    # fb_ref : (1, OUT)
    # out_ref: (G, OUT)             logits for the G images handled by this grid step
    G = out_ref.shape[0]
    lt1 = (G - 1) * SLAB + L1        # conv1 positions needed
    lt2 = (G - 1) * SLAB + L2        # conv2 positions needed
    ltp = (G - 1) * SLAB + L_POOL    # pooled positions needed

    # ---- conv1 + ReLU : one MXU dot for all 9 taps, then tree-summed shifted slices ----
    y1 = jnp.dot(w1_ref[...], x_ref[...], preferred_element_type=jnp.float32)   # (72, G*SLAB)
    c1 = _gather_taps(y1, lt1, b1_ref[...])                                      # (NEUR, lt1)

    # ---- conv2 + ReLU ----
    y2 = jnp.dot(w2_ref[...], c1, preferred_element_type=jnp.float32)            # (72, lt1)
    c2 = _gather_taps(y2, lt2, b2_ref[...])                                       # (NEUR, lt2)

    # ---- 2x2 stride-2 maxpool via two shifted max passes.  Pooled (c, i, j) of image g
    # lands at lane g*SLAB + 56*i + 2*j; every other lane is garbage-but-finite and gets
    # zero weight in the scattered linear weight below. ----
    mh = jnp.maximum(c2[:, 0:lt2 - 1], c2[:, 1:lt2])                              # (NEUR, lt2-1)
    mv = jnp.maximum(mh[:, 0:ltp], mh[:, W:W + ltp])                              # (NEUR, ltp)

    # ---- classifier: per image, ONE (NEUR, L_POOL) @ (L_POOL, NEUR*OUT) dot, then pick
    # the block-diagonal (c == c') 10-lane strips and sum over channels. ----
    fb = fb_ref[...]                                                              # (1, OUT)
    for g in range(G):
        q = jnp.dot(mv[:, g * SLAB:g * SLAB + L_POOL], wlq_ref[...],
                    preferred_element_type=jnp.float32)                           # (NEUR, NEUR*OUT)
        parts = [q[c:c + 1, c * OUT:(c + 1) * OUT] for c in range(NEUR)]
        out_ref[g:g + 1, :] = fb + _tree_sum(parts)


# ---------------------------------------------------------------------------
# Wrapper: layout plumbing + single pallas_call.
# ---------------------------------------------------------------------------
def _prepare_linear_weight(fw):
    """Scatter the (OUT, NEUR*12*12) torch linear weight onto the flat pooled layout.

    wlq[56*i + 2*j, c*OUT + o] = fw[o, c*144 + 12*i + j]; all other rows are zero, so the
    in-kernel dot simultaneously gathers the pooled positions and reproduces the PyTorch
    NCHW flatten order; the block-diagonal channel match is selected back in the kernel.
    """
    fw_r = jnp.transpose(fw.reshape(OUT, NEUR, HP * HP), (2, 1, 0))   # (144, NEUR, OUT)
    pos = (2 * W * jnp.arange(HP)[:, None] + 2 * jnp.arange(HP)[None, :]).reshape(-1)
    wlq = jnp.zeros((L_POOL, NEUR, OUT), jnp.float32).at[pos].set(fw_r)
    return wlq.reshape(L_POOL, NEUR * OUT)


@functools.partial(jax.jit, static_argnames=("num_blocks",))
def cnn_model_v01_forward(x_nchw, params, num_blocks=1):
    """num_blocks=1: whole batch in one grid step (best on single-TC v5e/v6e).
    num_blocks=2 on v7x: one lane-packed half of the batch per TensorCore."""
    w1, b1, w2, b2, fw, fb = params        # torch layouts: OIHW / (O,) / (OUT, feat) / (OUT,)
    batch = x_nchw.shape[0]
    assert batch % num_blocks == 0
    g = batch // num_blocks                # images per grid step

    # pack batch into lanes: image b occupies lanes [b*SLAB, b*SLAB + 784), rest zero-pad
    xf = jnp.transpose(x_nchw.reshape(batch, CIN, HW), (1, 0, 2))     # (CIN, B, 784)
    xf = jnp.pad(xf, ((0, 0), (0, 0), (0, SLAB - HW)))                # (CIN, B, SLAB)
    x_packed = xf.reshape(CIN, batch * SLAB)

    w1m = jnp.transpose(w1, (2, 3, 0, 1)).reshape(KH * KW * NEUR, CIN)   # row = tap*NEUR + cout
    w2m = jnp.transpose(w2, (2, 3, 0, 1)).reshape(KH * KW * NEUR, NEUR)
    wlq = _prepare_linear_weight(fw)

    out = pl.pallas_call(
        fused_cnn_kernel,
        out_shape=jax.ShapeDtypeStruct((num_blocks, g, OUT), jnp.float32),
        grid=(num_blocks,),
        in_specs=[
            pl.BlockSpec((CIN, g * SLAB), lambda i: (0, i)),
            pl.BlockSpec((KH * KW * NEUR, CIN), lambda i: (0, 0)),
            pl.BlockSpec((NEUR, 1), lambda i: (0, 0)),
            pl.BlockSpec((KH * KW * NEUR, NEUR), lambda i: (0, 0)),
            pl.BlockSpec((NEUR, 1), lambda i: (0, 0)),
            pl.BlockSpec((L_POOL, NEUR * OUT), lambda i: (0, 0)),
            pl.BlockSpec((1, OUT), lambda i: (0, 0)),
        ],
        out_specs=pl.BlockSpec((None, g, OUT), lambda i: (i, 0, 0)),
        compiler_params=pltpu.CompilerParams(
            dimension_semantics=("parallel",)),        # v7x: one lane-packed group per core
    )(x_packed, w1m, b1.reshape(NEUR, 1), w2m, b2.reshape(NEUR, 1), wlq, fb.reshape(1, OUT))
    return out.reshape(batch, OUT)


# ---------------------------------------------------------------------------
# Pure-JAX reference (correctness check of the Pallas path).
# ---------------------------------------------------------------------------
def reference_forward(x_nchw, params):
    w1, b1, w2, b2, fw, fb = params
    dn = ("NCHW", "OIHW", "NCHW")
    y = lax.conv_general_dilated(x_nchw, w1, (1, 1), "VALID", dimension_numbers=dn,
                                 precision=lax.Precision.HIGHEST)
    y = jnp.maximum(y + b1[None, :, None, None], 0.0)
    y = lax.conv_general_dilated(y, w2, (1, 1), "VALID", dimension_numbers=dn,
                                 precision=lax.Precision.HIGHEST)
    y = jnp.maximum(y + b2[None, :, None, None], 0.0)
    y = lax.reduce_window(y, -jnp.inf, lax.max, (1, 1, 2, 2), (1, 1, 2, 2), "VALID")
    y = y.reshape(y.shape[0], -1)
    return jnp.dot(y, fw.T, precision=lax.Precision.HIGHEST) + fb


# ---------------------------------------------------------------------------
# Deterministic parameter init (synthetic weights, torch-like shapes).
# ---------------------------------------------------------------------------
def init_params(key):
    k1, k2, k3, k4, k5, k6 = jax.random.split(key, 6)
    feat = NEUR * HP * HP
    w1 = jax.random.normal(k1, (NEUR, CIN, KH, KW), jnp.float32) * (1.0 / (CIN * 9) ** 0.5)
    b1 = jax.random.normal(k2, (NEUR,), jnp.float32) * 0.1
    w2 = jax.random.normal(k3, (NEUR, NEUR, KH, KW), jnp.float32) * (1.0 / (NEUR * 9) ** 0.5)
    b2 = jax.random.normal(k4, (NEUR,), jnp.float32) * 0.1
    fw = jax.random.normal(k5, (OUT, feat), jnp.float32) * (1.0 / feat ** 0.5)
    fb = jax.random.normal(k6, (OUT,), jnp.float32) * 0.1
    return (w1, b1, w2, b2, fw, fb)


if __name__ == "__main__":
    key = jax.random.PRNGKey(0)
    pkey, xkey = jax.random.split(key)
    params = init_params(pkey)
    x = jax.random.normal(xkey, (B, CIN, H, W), jnp.float32)   # NCHW, like PyTorch

    ref = reference_forward(x, params)

    # default path: whole batch lane-packed, single grid step (v5e/v6e/v7x-single-core)
    out1 = jax.block_until_ready(cnn_model_v01_forward(x, params))
    if not jnp.allclose(out1, ref, atol=1e-3, rtol=1e-3):
        raise AssertionError(
            f"num_blocks=1 mismatch, max abs err = {float(jnp.max(jnp.abs(out1 - ref)))}")

    # v7x-style path: two lane-packed batch halves on a 'parallel' grid axis
    out2 = jax.block_until_ready(cnn_model_v01_forward(x, params, num_blocks=2))
    if not jnp.allclose(out2, ref, atol=1e-3, rtol=1e-3):
        raise AssertionError(
            f"num_blocks=2 mismatch, max abs err = {float(jnp.max(jnp.abs(out2 - ref)))}")

    print("KERNEL_OK")
</pallas_src>

<mosaic_0001>
module attributes {stable_mosaic.version = 11 : i64} {
  func.func @fused_cnn_kernel(%arg0: i32, %arg1: memref<3x1792xf32, #tpu.memory_space<vmem>>, %arg2: memref<72x3xf32, #tpu.memory_space<vmem>>, %arg3: memref<8x1xf32, #tpu.memory_space<vmem>>, %arg4: memref<72x8xf32, #tpu.memory_space<vmem>>, %arg5: memref<8x1xf32, #tpu.memory_space<vmem>>, %arg6: memref<639x80xf32, #tpu.memory_space<vmem>>, %arg7: memref<1x10xf32, #tpu.memory_space<vmem>>, %arg8: memref<1x2x10xf32, #tpu.memory_space<vmem>>) attributes {dimension_semantics = [#tpu.dimension_semantics<parallel>], iteration_bounds = array<i64: 1>, scalar_prefetch = 0 : i64, scratch_operands = 0 : i64, tpu.core_type = #tpu.core_type<tc>, window_params = [{transform_indices = @transform_0, window_bounds = array<i64: 3, 1792>}, {pipeline_mode = #tpu.pipeline_mode<synchronous>, transform_indices = @transform_1, window_bounds = array<i64: 72, 3>}, {pipeline_mode = #tpu.pipeline_mode<synchronous>, transform_indices = @transform_2, window_bounds = array<i64: 8, 1>}, {pipeline_mode = #tpu.pipeline_mode<synchronous>, transform_indices = @transform_3, window_bounds = array<i64: 72, 8>}, {pipeline_mode = #tpu.pipeline_mode<synchronous>, transform_indices = @transform_4, window_bounds = array<i64: 8, 1>}, {pipeline_mode = #tpu.pipeline_mode<synchronous>, transform_indices = @transform_5, window_bounds = array<i64: 639, 80>}, {pipeline_mode = #tpu.pipeline_mode<synchronous>, transform_indices = @transform_6, window_bounds = array<i64: 1, 10>}, {transform_indices = @transform_7, window_bounds = array<i64: 1, 2, 10>}]} {
    %c0 = arith.constant 0 : index
    %c0_0 = arith.constant 0 : index
    %0 = vector.load %arg2[%c0, %c0_0] : memref<72x3xf32, #tpu.memory_space<vmem>>, vector<72x3xf32>
    %c0_1 = arith.constant 0 : index
    %c0_2 = arith.constant 0 : index
    %1 = vector.load %arg1[%c0_1, %c0_2] : memref<3x1792xf32, #tpu.memory_space<vmem>>, vector<3x1792xf32>
    %cst = arith.constant dense<0.000000e+00> : vector<72x1792xf32>
    %2 = tpu.matmul %0, %1, %cst {dimension_numbers = #tpu.dot_dimension_numbers<[1], [0], [0], [1], [0, 0, 1, 1], [], []>} : vector<72x3xf32>, vector<3x1792xf32>, vector<72x1792xf32> -> vector<72x1792xf32>
    %c0_3 = arith.constant 0 : index
    %c0_4 = arith.constant 0 : index
    %3 = vector.load %arg3[%c0_3, %c0_4] : memref<8x1xf32, #tpu.memory_space<vmem>>, vector<8x1xf32>
    %4 = vector.extract_strided_slice %2 {offsets = [0, 0], sizes = [8, 1622], strides = [1, 1]} : vector<72x1792xf32> to vector<8x1622xf32>
    %5 = vector.extract_strided_slice %2 {offsets = [8, 1], sizes = [8, 1622], strides = [1, 1]} : vector<72x1792xf32> to vector<8x1622xf32>
    %6 = vector.extract_strided_slice %2 {offsets = [16, 2], sizes = [8, 1622], strides = [1, 1]} : vector<72x1792xf32> to vector<8x1622xf32>
    %7 = vector.extract_strided_slice %2 {offsets = [24, 28], sizes = [8, 1622], strides = [1, 1]} : vector<72x1792xf32> to vector<8x1622xf32>
    %8 = vector.extract_strided_slice %2 {offsets = [32, 29], sizes = [8, 1622], strides = [1, 1]} : vector<72x1792xf32> to vector<8x1622xf32>
    %9 = vector.extract_strided_slice %2 {offsets = [40, 30], sizes = [8, 1622], strides = [1, 1]} : vector<72x1792xf32> to vector<8x1622xf32>
    %10 = vector.extract_strided_slice %2 {offsets = [48, 56], sizes = [8, 1622], strides = [1, 1]} : vector<72x1792xf32> to vector<8x1622xf32>
    %11 = vector.extract_strided_slice %2 {offsets = [56, 57], sizes = [8, 1622], strides = [1, 1]} : vector<72x1792xf32> to vector<8x1622xf32>
    %12 = vector.extract_strided_slice %2 {offsets = [64, 58], sizes = [8, 1622], strides = [1, 1]} : vector<72x1792xf32> to vector<8x1622xf32>
    %13 = arith.addf %4, %5 : vector<8x1622xf32>
    %14 = arith.addf %6, %7 : vector<8x1622xf32>
    %15 = arith.addf %8, %9 : vector<8x1622xf32>
    %16 = arith.addf %10, %11 : vector<8x1622xf32>
    %17 = arith.addf %13, %14 : vector<8x1622xf32>
    %18 = arith.addf %15, %16 : vector<8x1622xf32>
    %19 = arith.addf %17, %18 : vector<8x1622xf32>
    %20 = arith.addf %19, %12 : vector<8x1622xf32>
    %21 = vector.broadcast %3 : vector<8x1xf32> to vector<8x1622xf32>
    %22 = arith.addf %20, %21 : vector<8x1622xf32>
    %cst_5 = arith.constant 0.000000e+00 : f32
    %23 = vector.broadcast %cst_5 : f32 to vector<8x1622xf32>
    %24 = arith.maximumf %22, %23 : vector<8x1622xf32>
    %c0_6 = arith.constant 0 : index
    %c0_7 = arith.constant 0 : index
    %25 = vector.load %arg4[%c0_6, %c0_7] : memref<72x8xf32, #tpu.memory_space<vmem>>, vector<72x8xf32>
    %cst_8 = arith.constant dense<0.000000e+00> : vector<72x1622xf32>
    %26 = tpu.matmul %25, %24, %cst_8 {dimension_numbers = #tpu.dot_dimension_numbers<[1], [0], [0], [1], [0, 0, 1, 1], [], []>} : vector<72x8xf32>, vector<8x1622xf32>, vector<72x1622xf32> -> vector<72x1622xf32>
    %c0_9 = arith.constant 0 : index
    %c0_10 = arith.constant 0 : index
    %27 = vector.load %arg5[%c0_9, %c0_10] : memref<8x1xf32, #tpu.memory_space<vmem>>, vector<8x1xf32>
    %28 = vector.extract_strided_slice %26 {offsets = [0, 0], sizes = [8, 1564], strides = [1, 1]} : vector<72x1622xf32> to vector<8x1564xf32>
    %29 = vector.extract_strided_slice %26 {offsets = [8, 1], sizes = [8, 1564], strides = [1, 1]} : vector<72x1622xf32> to vector<8x1564xf32>
    %30 = vector.extract_strided_slice %26 {offsets = [16, 2], sizes = [8, 1564], strides = [1, 1]} : vector<72x1622xf32> to vector<8x1564xf32>
    %31 = vector.extract_strided_slice %26 {offsets = [24, 28], sizes = [8, 1564], strides = [1, 1]} : vector<72x1622xf32> to vector<8x1564xf32>
    %32 = vector.extract_strided_slice %26 {offsets = [32, 29], sizes = [8, 1564], strides = [1, 1]} : vector<72x1622xf32> to vector<8x1564xf32>
    %33 = vector.extract_strided_slice %26 {offsets = [40, 30], sizes = [8, 1564], strides = [1, 1]} : vector<72x1622xf32> to vector<8x1564xf32>
    %34 = vector.extract_strided_slice %26 {offsets = [48, 56], sizes = [8, 1564], strides = [1, 1]} : vector<72x1622xf32> to vector<8x1564xf32>
    %35 = vector.extract_strided_slice %26 {offsets = [56, 57], sizes = [8, 1564], strides = [1, 1]} : vector<72x1622xf32> to vector<8x1564xf32>
    %36 = vector.extract_strided_slice %26 {offsets = [64, 58], sizes = [8, 1564], strides = [1, 1]} : vector<72x1622xf32> to vector<8x1564xf32>
    %37 = arith.addf %28, %29 : vector<8x1564xf32>
    %38 = arith.addf %30, %31 : vector<8x1564xf32>
    %39 = arith.addf %32, %33 : vector<8x1564xf32>
    %40 = arith.addf %34, %35 : vector<8x1564xf32>
    %41 = arith.addf %37, %38 : vector<8x1564xf32>
    %42 = arith.addf %39, %40 : vector<8x1564xf32>
    %43 = arith.addf %41, %42 : vector<8x1564xf32>
    %44 = arith.addf %43, %36 : vector<8x1564xf32>
    %45 = vector.broadcast %27 : vector<8x1xf32> to vector<8x1564xf32>
    %46 = arith.addf %44, %45 : vector<8x1564xf32>
    %cst_11 = arith.constant 0.000000e+00 : f32
    %47 = vector.broadcast %cst_11 : f32 to vector<8x1564xf32>
    %48 = arith.maximumf %46, %47 : vector<8x1564xf32>
    %49 = vector.extract_strided_slice %48 {offsets = [0, 0], sizes = [8, 1563], strides = [1, 1]} : vector<8x1564xf32> to vector<8x1563xf32>
    %50 = vector.extract_strided_slice %48 {offsets = [0, 1], sizes = [8, 1563], strides = [1, 1]} : vector<8x1564xf32> to vector<8x1563xf32>
    %51 = arith.maximumf %49, %50 : vector<8x1563xf32>
    %52 = vector.extract_strided_slice %51 {offsets = [0, 0], sizes = [8, 1535], strides = [1, 1]} : vector<8x1563xf32> to vector<8x1535xf32>
    %53 = vector.extract_strided_slice %51 {offsets = [0, 28], sizes = [8, 1535], strides = [1, 1]} : vector<8x1563xf32> to vector<8x1535xf32>
    %54 = arith.maximumf %52, %53 : vector<8x1535xf32>
    %c0_12 = arith.constant 0 : index
    %c0_13 = arith.constant 0 : index
    %55 = vector.load %arg7[%c0_12, %c0_13] : memref<1x10xf32, #tpu.memory_space<vmem>>, vector<1x10xf32>
    %56 = vector.extract_strided_slice %54 {offsets = [0, 0], sizes = [8, 639], strides = [1, 1]} : vector<8x1535xf32> to vector<8x639xf32>
    %c0_14 = arith.constant 0 : index
    %c0_15 = arith.constant 0 : index
    %57 = vector.load %arg6[%c0_14, %c0_15] : memref<639x80xf32, #tpu.memory_space<vmem>>, vector<639x80xf32>
    %cst_16 = arith.constant dense<0.000000e+00> : vector<8x80xf32>
    %58 = tpu.matmul %56, %57, %cst_16 {dimension_numbers = #tpu.dot_dimension_numbers<[1], [0], [0], [1], [0, 0, 1, 1], [], []>} : vector<8x639xf32>, vector<639x80xf32>, vector<8x80xf32> -> vector<8x80xf32>
    %59 = vector.extract_strided_slice %58 {offsets = [0, 0], sizes = [1, 10], strides = [1, 1]} : vector<8x80xf32> to vector<1x10xf32>
    %60 = vector.extract_strided_slice %58 {offsets = [1, 10], sizes = [1, 10], strides = [1, 1]} : vector<8x80xf32> to vector<1x10xf32>
    %61 = vector.extract_strided_slice %58 {offsets = [2, 20], sizes = [1, 10], strides = [1, 1]} : vector<8x80xf32> to vector<1x10xf32>
    %62 = vector.extract_strided_slice %58 {offsets = [3, 30], sizes = [1, 10], strides = [1, 1]} : vector<8x80xf32> to vector<1x10xf32>
    %63 = vector.extract_strided_slice %58 {offsets = [4, 40], sizes = [1, 10], strides = [1, 1]} : vector<8x80xf32> to vector<1x10xf32>
    %64 = vector.extract_strided_slice %58 {offsets = [5, 50], sizes = [1, 10], strides = [1, 1]} : vector<8x80xf32> to vector<1x10xf32>
    %65 = vector.extract_strided_slice %58 {offsets = [6, 60], sizes = [1, 10], strides = [1, 1]} : vector<8x80xf32> to vector<1x10xf32>
    %66 = vector.extract_strided_slice %58 {offsets = [7, 70], sizes = [1, 10], strides = [1, 1]} : vector<8x80xf32> to vector<1x10xf32>
    %67 = arith.addf %59, %60 : vector<1x10xf32>
    %68 = arith.addf %61, %62 : vector<1x10xf32>
    %69 = arith.addf %63, %64 : vector<1x10xf32>
    %70 = arith.addf %65, %66 : vector<1x10xf32>
    %71 = arith.addf %67, %68 : vector<1x10xf32>
    %72 = arith.addf %69, %70 : vector<1x10xf32>
    %73 = arith.addf %71, %72 : vector<1x10xf32>
    %74 = arith.addf %55, %73 : vector<1x10xf32>
    %c0_17 = arith.constant 0 : index
    %c0_18 = arith.constant 0 : index
    %c0_19 = arith.constant 0 : index
    %75 = vector.load %arg8[%c0_17, %c0_18, %c0_19] : memref<1x2x10xf32, #tpu.memory_space<vmem>>, vector<1x1x10xf32>
    %76 = vector.shape_cast %75 : vector<1x1x10xf32> to vector<1x10xf32>
    %77 = vector.shape_cast %74 : vector<1x10xf32> to vector<1x1x10xf32>
    tpu.vector_store %arg8[%c0_17, %c0_18, %c0_19], %77 {strides = array<i32>} : memref<1x2x10xf32, #tpu.memory_space<vmem>>, vector<1x1x10xf32>,
    %78 = vector.extract_strided_slice %54 {offsets = [0, 896], sizes = [8, 639], strides = [1, 1]} : vector<8x1535xf32> to vector<8x639xf32>
    %c0_20 = arith.constant 0 : index
    %c0_21 = arith.constant 0 : index
    %79 = vector.load %arg6[%c0_20, %c0_21] : memref<639x80xf32, #tpu.memory_space<vmem>>, vector<639x80xf32>
    %cst_22 = arith.constant dense<0.000000e+00> : vector<8x80xf32>
    %80 = tpu.matmul %78, %79, %cst_22 {dimension_numbers = #tpu.dot_dimension_numbers<[1], [0], [0], [1], [0, 0, 1, 1], [], []>} : vector<8x639xf32>, vector<639x80xf32>, vector<8x80xf32> -> vector<8x80xf32>
    %81 = vector.extract_strided_slice %80 {offsets = [0, 0], sizes = [1, 10], strides = [1, 1]} : vector<8x80xf32> to vector<1x10xf32>
    %82 = vector.extract_strided_slice %80 {offsets = [1, 10], sizes = [1, 10], strides = [1, 1]} : vector<8x80xf32> to vector<1x10xf32>
    %83 = vector.extract_strided_slice %80 {offsets = [2, 20], sizes = [1, 10], strides = [1, 1]} : vector<8x80xf32> to vector<1x10xf32>
    %84 = vector.extract_strided_slice %80 {offsets = [3, 30], sizes = [1, 10], strides = [1, 1]} : vector<8x80xf32> to vector<1x10xf32>
    %85 = vector.extract_strided_slice %80 {offsets = [4, 40], sizes = [1, 10], strides = [1, 1]} : vector<8x80xf32> to vector<1x10xf32>
    %86 = vector.extract_strided_slice %80 {offsets = [5, 50], sizes = [1, 10], strides = [1, 1]} : vector<8x80xf32> to vector<1x10xf32>
    %87 = vector.extract_strided_slice %80 {offsets = [6, 60], sizes = [1, 10], strides = [1, 1]} : vector<8x80xf32> to vector<1x10xf32>
    %88 = vector.extract_strided_slice %80 {offsets = [7, 70], sizes = [1, 10], strides = [1, 1]} : vector<8x80xf32> to vector<1x10xf32>
    %89 = arith.addf %81, %82 : vector<1x10xf32>
    %90 = arith.addf %83, %84 : vector<1x10xf32>
    %91 = arith.addf %85, %86 : vector<1x10xf32>
    %92 = arith.addf %87, %88 : vector<1x10xf32>
    %93 = arith.addf %89, %90 : vector<1x10xf32>
    %94 = arith.addf %91, %92 : vector<1x10xf32>
    %95 = arith.addf %93, %94 : vector<1x10xf32>
    %96 = arith.addf %55, %95 : vector<1x10xf32>
    %c0_23 = arith.constant 0 : index
    %c1 = arith.constant 1 : index
    %c0_24 = arith.constant 0 : index
    %97 = vector.load %arg8[%c0_23, %c1, %c0_24] : memref<1x2x10xf32, #tpu.memory_space<vmem>>, vector<1x1x10xf32>
    %98 = vector.shape_cast %97 : vector<1x1x10xf32> to vector<1x10xf32>
    %99 = vector.shape_cast %96 : vector<1x10xf32> to vector<1x1x10xf32>
    tpu.vector_store %arg8[%c0_23, %c1, %c0_24], %99 {strides = array<i32>} : memref<1x2x10xf32, #tpu.memory_space<vmem>>, vector<1x1x10xf32>,
    return
  }
  func.func @transform_0(%arg0: i32) -> (i32, i32) {
    %c0_i32 = arith.constant 0 : i32
    %c0_i32_0 = arith.constant 0 : i32
    return %c0_i32, %arg0 : i32, i32
  }
  func.func @transform_1(%arg0: i32) -> (i32, i32) {
    %c0_i32 = arith.constant 0 : i32
    %c0_i32_0 = arith.constant 0 : i32
    %c0_i32_1 = arith.constant 0 : i32
    return %c0_i32, %c0_i32_0 : i32, i32
  }
  func.func @transform_2(%arg0: i32) -> (i32, i32) {
    %c0_i32 = arith.constant 0 : i32
    %c0_i32_0 = arith.constant 0 : i32
    %c0_i32_1 = arith.constant 0 : i32
    return %c0_i32, %c0_i32_0 : i32, i32
  }
  func.func @transform_3(%arg0: i32) -> (i32, i32) {
    %c0_i32 = arith.constant 0 : i32
    %c0_i32_0 = arith.constant 0 : i32
    %c0_i32_1 = arith.constant 0 : i32
    return %c0_i32, %c0_i32_0 : i32, i32
  }
  func.func @transform_4(%arg0: i32) -> (i32, i32) {
    %c0_i32 = arith.constant 0 : i32
    %c0_i32_0 = arith.constant 0 : i32
    %c0_i32_1 = arith.constant 0 : i32
    return %c0_i32, %c0_i32_0 : i32, i32
  }
  func.func @transform_5(%arg0: i32) -> (i32, i32) {
    %c0_i32 = arith.constant 0 : i32
    %c0_i32_0 = arith.constant 0 : i32
    %c0_i32_1 = arith.constant 0 : i32
    return %c0_i32, %c0_i32_0 : i32, i32
  }
  func.func @transform_6(%arg0: i32) -> (i32, i32) {
    %c0_i32 = arith.constant 0 : i32
    %c0_i32_0 = arith.constant 0 : i32
    %c0_i32_1 = arith.constant 0 : i32
    return %c0_i32, %c0_i32_0 : i32, i32
  }
  func.func @transform_7(%arg0: i32) -> (i32, i32, i32) {
    %c0_i32 = arith.constant 0 : i32
    %c0_i32_0 = arith.constant 0 : i32
    %c0_i32_1 = arith.constant 0 : i32
    return %arg0, %c0_i32, %c0_i32_0 : i32, i32, i32
  }
}

</mosaic_0001>

<bundles_post_ra>
// kernel: cnn_model_v01_forward.1
= control target key start
LH: loop header
LB: loop body
LE: loop exit
PB: predicated region body
PF: predicated region fallthrough
CT: control target
= control target key end

     0   :  { %vm85_vm0 = vcmask 1042432   ;;  %v7085_v4 = vmov 0.0   ;;  %vm57_vm1 = vcmask 23552   ;;  %s7077_s0 = inlined_call_operand.vmem [shape: f32[3,1792], index: 0, kind: input, shape index: {}]   ;;  %s7078_s1 = inlined_call_operand.vmem [shape: f32[72,3], index: 1, kind: input, shape index: {}]   ;;  %s7079_s2 = inlined_call_operand.vmem [shape: f32[8,1], index: 2, kind: input, shape index: {}]   ;;  %s7080_s3 = inlined_call_operand.vmem [shape: f32[72,8], index: 3, kind: input, shape index: {}]   ;;  %s7081_s4 = inlined_call_operand.vmem [shape: f32[8,1], index: 4, kind: input, shape index: {}]   ;;  %s7082_s5 = inlined_call_operand.vmem [shape: f32[639,80], index: 5, kind: input, shape index: {}]   ;;  %s7083_s6 = inlined_call_operand.vmem [shape: f32[1,10], index: 6, kind: input, shape index: {}]   ;;  %s7084_s7 = inlined_call_operand.hbm [shape: f32[1,2,10], index: 7, kind: output, shape index: {}]  }
   0x1   :  { %v36_v0 = vld [vmem:[%s7077_s0] sm:$0x77]  ;;  %v37_v1 = vld [vmem:[%s7077_s0 + $0x8] sm:$0x77]  ;;  %178 = vmatprep.mubr.f32.mxu0 %v7085_v4  ;;  %297 = vmatprep.mubr.f32.mxu1 %v7085_v4  ;;  %v38_v6 = vld [vmem:[%s7077_s0 + $0x10] sm:$0x77] }
   0x2   :  { %v50_v2 = vcombine.high %v36_v0, %v36_v0  ;;  %v51_v3 = vcombine.high %v37_v1, %v37_v1  ;;  %v4659_v5 = vld [vmem:[%s7078_s1] sm:$0xff]  ;;  %v39_v7 = vld [vmem:[%s7077_s0 + $0x18] sm:$0x77]  ;;  %v52_v9 = vcombine.high %v38_v6, %v38_v6  ;;  %v41_v11 = vld [vmem:[%s7077_s0 + $0x28] sm:$0x77] }
   0x3   :  { %v4674_v8 = vld [vmem:[%s7077_s0 + $0x20] sm:$0x77]  ;;  %v53_v10 = vcombine.high %v39_v7, %v39_v7 }
   0x4   :  { %3908 = vmatprep.subr.msk.mxu0 %vm85_vm0, %v50_v2  ;;  %3919 = vmatprep.subr.msk.mxu1 %vm85_vm0, %v51_v3 }
   0x5   :  { %3909 = vmatpush1.msk.msra.mxu0 %vm85_vm0, %v36_v0  ;;  %3920 = vmatpush1.msk.msra.mxu1 %vm85_vm0, %v37_v1 }
   0x6   :  { %3910 = vmatmul.mubr.msk.f32.vlgmr.msra.gmra.mrb[0].mxu0 %vm57_vm1, %v4659_v5  ;;  %3921 = vmatmul.mubr.msk.f32.vlgmr.msra.gmra.mrb[0].mxu1 %vm57_vm1, %v4659_v5 }
   0x7   :  { %12 = vsyncpa [#allocation3], 0  ;;  %184 = vmatprep.mubr.f32.mxu0 %v7085_v4  ;;  %303 = vmatprep.mubr.f32.mxu1 %v7085_v4  ;;  %v4688_v12 = vld [vmem:[%s7078_s1 + $0x8] sm:$0xff]  ;;  %v54_v13 = vcombine.high %v4674_v8, %v4674_v8  ;;  %v55_v14 = vcombine.high %v41_v11, %v41_v11  ;;  %v4705_v15 = vld [vmem:[%s7078_s1 + $0x10] sm:$0xff]  ;;  %vm981_vm2 = vcmask 1039360   ;;  %s4596_s10 = smov 101  }
   0x8   :  { %3930 = vmatprep.subr.msk.mxu0 %vm85_vm0, %v52_v9  ;;  %3941 = vmatprep.subr.msk.mxu1 %vm85_vm0, %v53_v10  ;;  %v4718_v16 = vld [vmem:[%s7078_s1 + $0x18] sm:$0xff]  ;;  %v4729_v17 = vld [vmem:[%s7078_s1 + $0x20] sm:$0xff]  ;;  %v4740_v18 = vld [vmem:[%s7078_s1 + $0x28] sm:$0xff]  ;;  %vm1059_vm3 = vcmask 834560   ;;  %s4597_s11 = smov 126   ;;  %s4598_s14 = smov 70  }
   0x9   :  { %3931 = vmatpush1.msk.msra.mxu0 %vm85_vm0, %v38_v6  ;;  %3942 = vmatpush1.msk.msra.mxu1 %vm85_vm0, %v39_v7  ;;  %v4751_v19 = vld [vmem:[%s7078_s1 + $0x30] sm:$0xff]  ;;  %v4762_v20 = vld [vmem:[%s7078_s1 + $0x38] sm:$0xff]  ;;  %v4772_v21 = vld [vmem:[%s7078_s1 + $0x40] sm:$0xff]  ;;  %s4594_s1 = smov 102   ;;  %vm1378_vm4 = vcmask 826368   ;;  %vm1297_vm5 = vcmask 1031168  }
   0xa   :  { %3911 = vmatmul.mubr.msk.f32.gmra.mrb[2].mxu0 %vm57_vm1, %v4688_v12  ;;  %3922 = vmatmul.mubr.msk.f32.gmra.mrb[2].mxu1 %vm57_vm1, %v4688_v12  ;;  %v42_v22 = vld [vmem:[%s7077_s0 + $0x30] sm:$0x77]  ;;  %s4593_s0 = smov 127   ;;  %vm1457_vm6 = vcmask 809984   ;;  %vm1538_vm7 = vcmask 572416   ;;  %vm1618_vm8 = vcmask 64512  }
   0xb   :  { %190 = vmatprep.mubr.f32.mxu0 %v7085_v4  ;;  %309 = vmatprep.mubr.f32.mxu1 %v7085_v4  ;;  %v56_v23 = vcombine.high %v42_v22, %v42_v22  ;;  %vm4600_vm9 = vmmov 0   ;;  %s4601_s27 = smov 100   ;;  %vm3228_vm10 = vcmask 818176   ;;  %vm3343_vm11 = vcmask 1046528   ;;  %s4607_s13 = smov [#allocation2]  }
   0xc   :  { %3952 = vmatprep.subr.msk.mxu0 %vm85_vm0, %v54_v13  ;;  %3963 = vmatprep.subr.msk.mxu1 %vm85_vm0, %v55_v14  ;;  %vm4603_vm12 = vmmov 1   ;;  %vm3576_vm14 = vcmask 73728  }
   0xd   :  { %vm6991_vm13 = vmpackc.low %vm3343_vm11, %vm4603_vm12 }
   0xe   :  { %3912 = vmatmul.mubr.msk.f32.gmra.mrb[4].mxu0 %vm57_vm1, %v4705_v15  ;;  %3923 = vmatmul.mubr.msk.f32.gmra.mrb[4].mxu1 %vm57_vm1, %v4705_v15 }
   0xf   :  { %196 = vmatprep.mubr.f32.mxu0 %v7085_v4  ;;  %315 = vmatprep.mubr.f32.mxu1 %v7085_v4 }
  0x12   :  { %3913 = vmatmul.mubr.msk.f32.gmra.mrb[6].mxu0 %vm57_vm1, %v4718_v16  ;;  %3924 = vmatmul.mubr.msk.f32.gmra.mrb[6].mxu1 %vm57_vm1, %v4718_v16 }
  0x13   :  { %202 = vmatprep.mubr.f32.mxu0 %v7085_v4  ;;  %321 = vmatprep.mubr.f32.mxu1 %v7085_v4 }
  0x16   :  { %3914 = vmatmul.mubr.msk.f32.gmra.mrb[8].mxu0 %vm57_vm1, %v4729_v17  ;;  %3925 = vmatmul.mubr.msk.f32.gmra.mrb[8].mxu1 %vm57_vm1, %v4729_v17 }
  0x17   :  { %208 = vmatprep.mubr.f32.mxu0 %v7085_v4  ;;  %327 = vmatprep.mubr.f32.mxu1 %v7085_v4 }
  0x1a   :  { %3915 = vmatmul.mubr.msk.f32.gmra.mrb[10].mxu0 %vm57_vm1, %v4740_v18  ;;  %3926 = vmatmul.mubr.msk.f32.gmra.mrb[10].mxu1 %vm57_vm1, %v4740_v18 }
  0x1b   :  { %214 = vmatprep.mubr.f32.mxu0 %v7085_v4  ;;  %333 = vmatprep.mubr.f32.mxu1 %v7085_v4 }
  0x1e   :  { %3916 = vmatmul.mubr.msk.f32.gmra.mrb[12].mxu0 %vm57_vm1, %v4751_v19  ;;  %3927 = vmatmul.mubr.msk.f32.gmra.mrb[12].mxu1 %vm57_vm1, %v4751_v19 }
  0x1f   :  { %220 = vmatprep.mubr.f32.mxu0 %v7085_v4  ;;  %339 = vmatprep.mubr.f32.mxu1 %v7085_v4 }
  0x22   :  { %3917 = vmatmul.mubr.msk.f32.gmra.mrb[14].mxu0 %vm57_vm1, %v4762_v20  ;;  %3928 = vmatmul.mubr.msk.f32.gmra.mrb[14].mxu1 %vm57_vm1, %v4762_v20 }
  0x23   :  { %226 = vmatprep.mubr.f32.mxu0 %v7085_v4  ;;  %345 = vmatprep.mubr.f32.mxu1 %v7085_v4 }
  0x26   :  { %3918 = vmatmul.mubr.msk.f32.gmra.mrb[16].mxu0 %vm57_vm1, %v4772_v21  ;;  %3929 = vmatmul.mubr.msk.f32.gmra.mrb[16].mxu1 %vm57_vm1, %v4772_v21 }
  0x27   :  { %416 = vmatprep.mubr.f32.mxu0 %v7085_v4  ;;  %535 = vmatprep.mubr.f32.mxu1 %v7085_v4 }
  0x2a   :  { %3932 = vmatmul.mubr.msk.f32.vlgmr.msra.gmra.mrb[18].mxu0 %vm57_vm1, %v4659_v5  ;;  %3943 = vmatmul.mubr.msk.f32.vlgmr.msra.gmra.mrb[18].mxu1 %vm57_vm1, %v4659_v5 }
  0x2b   :  { %422 = vmatprep.mubr.f32.mxu0 %v7085_v4  ;;  %541 = vmatprep.mubr.f32.mxu1 %v7085_v4 }
  0x2c   :  { %3953 = vmatpush1.msk.msra.mxu0 %vm85_vm0, %v4674_v8  ;;  %3964 = vmatpush1.msk.msra.mxu1 %vm85_vm0, %v41_v11 }
  0x2d   :  { %3974 = vmatprep.subr.msk.mxu0 %vm85_vm0, %v56_v23 }
  0x2e   :  { %3933 = vmatmul.mubr.msk.f32.gmra.mrb[20].mxu0 %vm57_vm1, %v4688_v12  ;;  %3944 = vmatmul.mubr.msk.f32.gmra.mrb[20].mxu1 %vm57_vm1, %v4688_v12 }
  0x2f   :  { %428 = vmatprep.mubr.f32.mxu0 %v7085_v4  ;;  %547 = vmatprep.mubr.f32.mxu1 %v7085_v4 }
  0x32   :  { %3934 = vmatmul.mubr.msk.f32.gmra.mrb[22].mxu0 %vm57_vm1, %v4705_v15  ;;  %3945 = vmatmul.mubr.msk.f32.gmra.mrb[22].mxu1 %vm57_vm1, %v4705_v15 }
  0x33   :  { %434 = vmatprep.mubr.f32.mxu0 %v7085_v4  ;;  %553 = vmatprep.mubr.f32.mxu1 %v7085_v4 }
  0x36   :  { %3935 = vmatmul.mubr.msk.f32.gmra.mrb[24].mxu0 %vm57_vm1, %v4718_v16  ;;  %3946 = vmatmul.mubr.msk.f32.gmra.mrb[24].mxu1 %vm57_vm1, %v4718_v16 }
  0x37   :  { %440 = vmatprep.mubr.f32.mxu0 %v7085_v4  ;;  %559 = vmatprep.mubr.f32.mxu1 %v7085_v4 }
  0x3a   :  { %3936 = vmatmul.mubr.msk.f32.gmra.mrb[26].mxu0 %vm57_vm1, %v4729_v17  ;;  %3947 = vmatmul.mubr.msk.f32.gmra.mrb[26].mxu1 %vm57_vm1, %v4729_v17 }
  0x3b   :  { %446 = vmatprep.mubr.f32.mxu0 %v7085_v4  ;;  %565 = vmatprep.mubr.f32.mxu1 %v7085_v4 }
  0x3e   :  { %3937 = vmatmul.mubr.msk.f32.gmra.mrb[28].mxu0 %vm57_vm1, %v4740_v18  ;;  %3948 = vmatmul.mubr.msk.f32.gmra.mrb[28].mxu1 %vm57_vm1, %v4740_v18 }
  0x3f   :  { %452 = vmatprep.mubr.f32.mxu0 %v7085_v4  ;;  %571 = vmatprep.mubr.f32.mxu1 %v7085_v4 }
  0x42   :  { %3938 = vmatmul.mubr.msk.f32.gmra.mrb[30].mxu0 %vm57_vm1, %v4751_v19  ;;  %3949 = vmatmul.mubr.msk.f32.gmra.mrb[30].mxu1 %vm57_vm1, %v4751_v19 }
  0x43   :  { %458 = vmatprep.mubr.f32.mxu0 %v7085_v4  ;;  %577 = vmatprep.mubr.f32.mxu1 %v7085_v4 }
  0x46   :  { %3939 = vmatmul.mubr.msk.f32.gmra.mrb[32].mxu0 %vm57_vm1, %v4762_v20  ;;  %3950 = vmatmul.mubr.msk.f32.gmra.mrb[32].mxu1 %vm57_vm1, %v4762_v20 }
  0x47   :  { %464 = vmatprep.mubr.f32.mxu0 %v7085_v4  ;;  %583 = vmatprep.mubr.f32.mxu1 %v7085_v4 }
  0x4a   :  { %3940 = vmatmul.mubr.msk.f32.gmra.mrb[34].mxu0 %vm57_vm1, %v4772_v21  ;;  %3951 = vmatmul.mubr.msk.f32.gmra.mrb[34].mxu1 %vm57_vm1, %v4772_v21 }
  0x4b   :  { %654 = vmatprep.mubr.f32.mxu0 %v7085_v4  ;;  %773 = vmatprep.mubr.f32.mxu1 %v7085_v4 }
  0x4e   :  { %3954 = vmatmul.mubr.msk.f32.vlgmr.msra.gmra.mrb[36].mxu0 %vm57_vm1, %v4659_v5  ;;  %3965 = vmatmul.mubr.msk.f32.vlgmr.msra.gmra.mrb[36].mxu1 %vm57_vm1, %v4659_v5 }
  0x4f   :  { %660 = vmatprep.mubr.f32.mxu0 %v7085_v4  ;;  %779 = vmatprep.mubr.f32.mxu1 %v7085_v4 }
  0x50   :  { %3975 = vmatpush1.msk.msra.mxu0 %vm85_vm0, %v42_v22 }
  0x52   :  { %3955 = vmatmul.mubr.msk.f32.gmra.mrb[38].mxu0 %vm57_vm1, %v4688_v12  ;;  %3966 = vmatmul.mubr.msk.f32.gmra.mrb[38].mxu1 %vm57_vm1, %v4688_v12 }
  0x53   :  { %666 = vmatprep.mubr.f32.mxu0 %v7085_v4  ;;  %785 = vmatprep.mubr.f32.mxu1 %v7085_v4 }
  0x56   :  { %3956 = vmatmul.mubr.msk.f32.gmra.mrb[40].mxu0 %vm57_vm1, %v4705_v15  ;;  %3967 = vmatmul.mubr.msk.f32.gmra.mrb[40].mxu1 %vm57_vm1, %v4705_v15 }
  0x57   :  { %672 = vmatprep.mubr.f32.mxu0 %v7085_v4  ;;  %791 = vmatprep.mubr.f32.mxu1 %v7085_v4 }
  0x5a   :  { %3957 = vmatmul.mubr.msk.f32.gmra.mrb[42].mxu0 %vm57_vm1, %v4718_v16  ;;  %3968 = vmatmul.mubr.msk.f32.gmra.mrb[42].mxu1 %vm57_vm1, %v4718_v16 }
  0x5b   :  { %678 = vmatprep.mubr.f32.mxu0 %v7085_v4  ;;  %797 = vmatprep.mubr.f32.mxu1 %v7085_v4 }
  0x5e   :  { %3958 = vmatmul.mubr.msk.f32.gmra.mrb[44].mxu0 %vm57_vm1, %v4729_v17  ;;  %3969 = vmatmul.mubr.msk.f32.gmra.mrb[44].mxu1 %vm57_vm1, %v4729_v17 }
  0x5f   :  { %684 = vmatprep.mubr.f32.mxu0 %v7085_v4  ;;  %803 = vmatprep.mubr.f32.mxu1 %v7085_v4 }
  0x62   :  { %3959 = vmatmul.mubr.msk.f32.gmra.mrb[46].mxu0 %vm57_vm1, %v4740_v18  ;;  %3970 = vmatmul.mubr.msk.f32.gmra.mrb[46].mxu1 %vm57_vm1, %v4740_v18 }
  0x63   :  { %690 = vmatprep.mubr.f32.mxu0 %v7085_v4  ;;  %809 = vmatprep.mubr.f32.mxu1 %v7085_v4 }
  0x66   :  { %3960 = vmatmul.mubr.msk.f32.gmra.mrb[48].mxu0 %vm57_vm1, %v4751_v19  ;;  %3971 = vmatmul.mubr.msk.f32.gmra.mrb[48].mxu1 %vm57_vm1, %v4751_v19 }
  0x67   :  { %696 = vmatprep.mubr.f32.mxu0 %v7085_v4  ;;  %815 = vmatprep.mubr.f32.mxu1 %v7085_v4 }
  0x6a   :  { %3961 = vmatmul.mubr.msk.f32.gmra.mrb[50].mxu0 %vm57_vm1, %v4762_v20  ;;  %3972 = vmatmul.mubr.msk.f32.gmra.mrb[50].mxu1 %vm57_vm1, %v4762_v20 }
  0x6b   :  { %702 = vmatprep.mubr.f32.mxu0 %v7085_v4  ;;  %821 = vmatprep.mubr.f32.mxu1 %v7085_v4 }
  0x6e   :  { %3962 = vmatmul.mubr.msk.f32.gmra.mrb[52].mxu0 %vm57_vm1, %v4772_v21  ;;  %3973 = vmatmul.mubr.msk.f32.gmra.mrb[52].mxu1 %vm57_vm1, %v4772_v21 }
  0x6f   :  { %892 = vmatprep.mubr.f32.mxu0 %v7085_v4  ;;  %1710 = vmatprep.mubr.f32.mxu1 %v7085_v4 }
  0x72   :  { %3976 = vmatmul.mubr.msk.f32.vlgmr.msra.gmra.mrb[54].mxu0 %vm57_vm1, %v4659_v5 }
  0x73   :  { %897 = vmatprep.mubr.f32.mxu0 %v7085_v4 }
  0x76   :  { %3977 = vmatmul.mubr.msk.f32.gmra.mrb[56].mxu0 %vm57_vm1, %v4688_v12 }
  0x77   :  { %902 = vmatprep.mubr.f32.mxu0 %v7085_v4 }
  0x7a   :  { %3978 = vmatmul.mubr.msk.f32.gmra.mrb[58].mxu0 %vm57_vm1, %v4705_v15 }
  0x7b   :  { %907 = vmatprep.mubr.f32.mxu0 %v7085_v4 }
  0x7e   :  { %3979 = vmatmul.mubr.msk.f32.gmra.mrb[60].mxu0 %vm57_vm1, %v4718_v16 }
  0x7f   :  { %912 = vmatprep.mubr.f32.mxu0 %v7085_v4 }
  0x82   :  { %3980 = vmatmul.mubr.msk.f32.gmra.mrb[62].mxu0 %vm57_vm1, %v4729_v17 }
  0x83   :  { %917 = vmatprep.mubr.f32.mxu0 %v7085_v4 }
  0x86   :  { %3981 = vmatmul.mubr.msk.f32.gmra.mrb[64].mxu0 %vm57_vm1, %v4740_v18 }
  0x87   :  { %922 = vmatprep.mubr.f32.mxu0 %v7085_v4 }
  0x8a   :  { %3982 = vmatmul.mubr.msk.f32.gmra.mrb[66].mxu0 %vm57_vm1, %v4751_v19 }
  0x8b   :  { %928 = vmatprep.mubr.f32.mxu0 %v7085_v4 }
  0x8e   :  { %3983 = vmatmul.mubr.msk.f32.gmra.mrb[68].mxu0 %vm57_vm1, %v4762_v20 }
  0x8f   :  { %934 = vmatprep.mubr.f32.mxu0 %v7085_v4 }
  0x92   :  { %3984 = vmatmul.mubr.msk.f32.gmra.mrb[70].mxu0 %vm57_vm1, %v4772_v21 }
  0x93   :  { %1829 = vmatprep.mubr.f32.mxu0 %v7085_v4 }
  0xd9   :  { %v4924_v24 = vpop.f32.mrb[0].mxu0  ;;  %v4926_v25 = vpop.f32.mrb[0].mxu1 }
  0xda   :  { %7091 = vst [vmem:[#allocation5_spill] sm:$0xff] %v4924_v24  ;;  %7092 = vst [vmem:[#allocation6_spill] sm:$0xff] %v4926_v25  ;;  %v4928_v26 = vpop.f32.mrb[1].mxu0  ;;  %v4930_v27 = vpop.f32.mrb[1].mxu1 }
  0xdb   :  { %7093 = vst [vmem:[#allocation7_spill] sm:$0xff] %v4928_v26  ;;  %7094 = vst [vmem:[#allocation8_spill] sm:$0xff] %v4930_v27 }
  0xdd   :  { %v4932_v28 = vpop.f32.mrb[2].mxu0  ;;  %v4934_v29 = vpop.f32.mrb[2].mxu1 }
  0xde   :  { %v4936_v30 = vpop.f32.mrb[3].mxu0  ;;  %v4938_v31 = vpop.f32.mrb[3].mxu1 }
  0xe1   :  { %v4940_v32 = vpop.f32.mrb[4].mxu0  ;;  %v4942_v33 = vpop.f32.mrb[4].mxu1 }
  0xe2   :  { %v4944_v34 = vpop.f32.mrb[5].mxu0  ;;  %v4946_v35 = vpop.f32.mrb[5].mxu1 }
  0xe5   :  { %v4948_v36 = vpop.f32.mrb[6].mxu0  ;;  %v317_v37 = vpop.f32.mrb[6].mxu1 }
  0xe6   :  { %v4950_v38 = vpop.f32.mrb[7].mxu0  ;;  %v4952_v39 = vpop.f32.mrb[7].mxu1 }
  0xe9   :  { %v4954_v40 = vpop.f32.mrb[8].mxu0  ;;  %v4956_v41 = vpop.f32.mrb[8].mxu1 }
  0xea   :  { %v4958_v42 = vpop.f32.mrb[9].mxu0  ;;  %v4960_v43 = vpop.f32.mrb[9].mxu1 }
  0xed   :  { %v210_v44 = vpop.f32.mrb[10].mxu0  ;;  %v4962_v45 = vpop.f32.mrb[10].mxu1 }
  0xee   :  { %v212_v46 = vpop.f32.mrb[11].mxu0  ;;  %v331_v47 = vpop.f32.mrb[11].mxu1 }
  0xf1   :  { %v4964_v48 = vpop.f32.mrb[12].mxu0  ;;  %v4966_v49 = vpop.f32.mrb[12].mxu1 }
  0xf2   :  { %v4968_v50 = vpop.f32.mrb[13].mxu0  ;;  %v4970_v51 = vpop.f32.mrb[13].mxu1 }
  0xf5   :  { %v222_v52 = vpop.f32.mrb[14].mxu0  ;;  %v341_v53 = vpop.f32.mrb[14].mxu1 }
  0xf6   :  { %1193 = vrot.lane.b32.xlu0 %v341_v53, %s4593_s0  ;;  %v224_v54 = vpop.f32.mrb[15].mxu0  ;;  %v343_v55 = vpop.f32.mrb[15].mxu1 }
  0xf7   :  { %1195 = vrot.lane.b32.xlu1 %v343_v55, %s4593_s0 }
  0xf9   :  { %v4974_v56 = vpop.f32.mrb[16].mxu0  ;;  %v4976_v57 = vpop.f32.mrb[16].mxu1 }
  0xfa   :  { %1191 = vrot.lane.b32.xlu0 %v224_v54, %s4593_s0  ;;  %v4979_v58 = vpop.f32.mrb[17].mxu0  ;;  %v4981_v59 = vpop.f32.mrb[17].mxu1 }
  0xfd   :  { %v4983_v60 = vpop.f32.mrb[18].mxu0  ;;  %v4985_v61 = vpop.f32.mrb[18].mxu1 }
  0xfe   :  { %7095 = vst [vmem:[#allocation9_spill] sm:$0xff] %v4983_v60  ;;  %7096 = vst [vmem:[#allocation10_spill] sm:$0xff] %v4985_v61  ;;  %1189 = vrot.lane.b32.xlu0 %v222_v52, %s4593_s0  ;;  %v4988_v62 = vpop.f32.mrb[19].mxu0  ;;  %v4990_v63 = vpop.f32.mrb[19].mxu1  ;;  %v4595_v61 = vmov 0  }
  0xff   :  { %7097 = vst [vmem:[#allocation11_spill] sm:$0xff] %v4988_v62  ;;  %7098 = vst [vmem:[#allocation12_spill] sm:$0xff] %v4990_v63  ;;  %4560 = vset.pattern.permute.xlu0 %v4595_v61  ;;  %4529 = vset.pattern.permute.xlu1 %v4595_v61 }
 0x101   :  { %v4992_v0 = vpop.f32.mrb[20].mxu0  ;;  %v4994_v1 = vpop.f32.mrb[20].mxu1 }
 0x102   :  { %1037 = vrot.lane.b32.xlu0 %v317_v37, %s4594_s1  ;;  %v4997_v2 = vpop.f32.mrb[21].mxu0  ;;  %v4999_v3 = vpop.f32.mrb[21].mxu1 }
 0x103   :  { %7099 = vst [vmem:[#allocation13_spill] sm:$0xff] %v4999_v3 }
 0x105   :  { %v5001_v5 = vpop.f32.mrb[22].mxu0  ;;  %v5003_v6 = vpop.f32.mrb[22].mxu1 }
 0x106   :  { %1113 = vrot.lane.b32.xlu0 %v212_v46, %s4593_s0  ;;  %v5006_v7 = vpop.f32.mrb[23].mxu0  ;;  %v5008_v8 = vpop.f32.mrb[23].mxu1 }
 0x107   :  { %7100 = vst [vmem:[#allocation14_spill] sm:$0xff] %v5008_v8 }
 0x109   :  { %v436_v9 = vpop.f32.mrb[24].mxu0  ;;  %v5010_v10 = vpop.f32.mrb[24].mxu1 }
 0x10a   :  { %1117 = vrot.lane.b32.xlu0 %v331_v47, %s4593_s0  ;;  %v438_v11 = vpop.f32.mrb[25].mxu0  ;;  %v5013_v12 = vpop.f32.mrb[25].mxu1 }
 0x10d   :  { %v5015_v13 = vpop.f32.mrb[26].mxu0  ;;  %v5017_v14 = vpop.f32.mrb[26].mxu1 }
 0x10e   :  { %1111 = vrot.lane.b32.xlu0 %v210_v44, %s4593_s0  ;;  %v5020_v15 = vpop.f32.mrb[27].mxu0  ;;  %v5022_v16 = vpop.f32.mrb[27].mxu1 }
 0x10f   :  { %7101 = vst [vmem:[#allocation15_spill] sm:$0xff] %v5022_v16 }
 0x111   :  { %v448_v17 = vpop.f32.mrb[28].mxu0  ;;  %v5024_v18 = vpop.f32.mrb[28].mxu1 }
 0x112   :  { %1043 = vrot.lane.b32.xlu0 %v438_v11, %s4594_s1  ;;  %v450_v19 = vpop.f32.mrb[29].mxu0  ;;  %v5027_v20 = vpop.f32.mrb[29].mxu1 }
 0x115   :  { %v5029_v21 = vpop.f32.mrb[30].mxu0  ;;  %v5031_v22 = vpop.f32.mrb[30].mxu1 }
 0x116   :  { %v5033_v23 = vpop.f32.mrb[31].mxu0  ;;  %v5035_v37 = vpop.f32.mrb[31].mxu1 }
 0x119   :  { %v460_v44 = vpop.f32.mrb[32].mxu0  ;;  %v579_v46 = vpop.f32.mrb[32].mxu1 }
 0x11a   :  { %1197 = vrot.lane.b32.xlu1 %v460_v44, %s4593_s0  ;;  %v462_v47 = vpop.f32.mrb[33].mxu0  ;;  %1201 = vrot.lane.b32.xlu0 %v579_v46, %s4593_s0  ;;  %v581_v52 = vpop.f32.mrb[33].mxu1 }
 0x11d   :  { %v5039_v53 = vpop.f32.mrb[34].mxu0  ;;  %v5041_v54 = vpop.f32.mrb[34].mxu1 }
 0x11e   :  { %1035 = vrot.lane.b32.xlu1 %v4950_v38, %s4594_s1  ;;  %v5045_v55 = vpop.f32.mrb[35].mxu0  ;;  %v5047_v11 = vpop.f32.mrb[35].mxu1 }
 0x11f   :  { %7102 = vst [vmem:[#allocation16_spill] sm:$0xff] %v5047_v11 }
 0x121   :  { %v5049_v4 = vpop.f32.mrb[36].mxu0  ;;  %v5051_v63 = vpop.f32.mrb[36].mxu1 }
 0x122   :  { %7103 = vst [vmem:[#allocation17_spill] sm:$0xff] %v5049_v4  ;;  %7104 = vst [vmem:[#allocation18_spill] sm:$0xff] %v5051_v63  ;;  %1039 = vrot.lane.b32.xlu1 %v4952_v39, %s4594_s1  ;;  %v5055_v44 = vpop.f32.mrb[37].mxu0  ;;  %v5057_v46 = vpop.f32.mrb[37].mxu1 }
 0x123   :  { %7105 = vst [vmem:[#allocation19_spill] sm:$0xff] %v5055_v44  ;;  %7106 = vst [vmem:[#allocation20_spill] sm:$0xff] %v5057_v46 }
 0x125   :  { %v5059_v62 = vpop.f32.mrb[38].mxu0  ;;  %v5061_v38 = vpop.f32.mrb[38].mxu1 }
 0x126   :  { %7107 = vst [vmem:[#allocation21_spill] sm:$0xff] %v5059_v62  ;;  %7108 = vst [vmem:[#allocation22_spill] sm:$0xff] %v5061_v38  ;;  %1115 = vrot.lane.b32.xlu1 %v4962_v45, %s4593_s0  ;;  %v5065_v4 = vpop.f32.mrb[39].mxu0  ;;  %v5067_v63 = vpop.f32.mrb[39].mxu1 }
 0x127   :  { %7109 = vst [vmem:[#allocation23_spill] sm:$0xff] %v5065_v4  ;;  %7110 = vst [vmem:[#allocation24_spill] sm:$0xff] %v5067_v63 }
 0x129   :  { %v5069_v60 = vpop.f32.mrb[40].mxu0  ;;  %v5071_v39 = vpop.f32.mrb[40].mxu1 }
 0x12a   :  { %7111 = vst [vmem:[#allocation25_spill] sm:$0xff] %v5069_v60  ;;  %7112 = vst [vmem:[#allocation26_spill] sm:$0xff] %v5071_v39  ;;  %1033 = vrot.lane.b32.xlu1 %v4948_v36, %s4594_s1  ;;  %v5075_v46 = vpop.f32.mrb[41].mxu0  ;;  %v5077_v61 = vpop.f32.mrb[41].mxu1 }
 0x12b   :  { %7113 = vst [vmem:[#allocation27_spill] sm:$0xff] %v5075_v46  ;;  %7114 = vst [vmem:[#allocation28_spill] sm:$0xff] %v5077_v61 }
 0x12d   :  { %v5079_v44 = vpop.f32.mrb[42].mxu0  ;;  %v5081_v27 = vpop.f32.mrb[42].mxu1 }
 0x12e   :  { %1041 = vrot.lane.b32.xlu1 %v436_v9, %s4594_s1  ;;  %v5084_v45 = vpop.f32.mrb[43].mxu0  ;;  %v5086_v25 = vpop.f32.mrb[43].mxu1 }
 0x131   :  { %v5088_v26 = vpop.f32.mrb[44].mxu0  ;;  %v5090_v24 = vpop.f32.mrb[44].mxu1 }
 0x132   :  { %7115 = vst [vmem:[#allocation29_spill] sm:$0xff] %v5088_v26  ;;  %7116 = vst [vmem:[#allocation30_spill] sm:$0xff] %v5090_v24  ;;  %1199 = vrot.lane.b32.xlu1 %v462_v47, %s4593_s0  ;;  %v5093_v36 = vpop.f32.mrb[45].mxu0  ;;  %v5095_v63 = vpop.f32.mrb[45].mxu1 }
 0x133   :  { %7117 = vst [vmem:[#allocation31_spill] sm:$0xff] %v5093_v36  ;;  %7118 = vst [vmem:[#allocation32_spill] sm:$0xff] %v5095_v63 }
 0x135   :  { %v5097_v61 = vpop.f32.mrb[46].mxu0  ;;  %v5099_v11 = vpop.f32.mrb[46].mxu1 }
 0x136   :  { %1203 = vrot.lane.b32.xlu1 %v581_v52, %s4593_s0  ;;  %v5102_v9 = vpop.f32.mrb[47].mxu0  ;;  %v5104_v16 = vpop.f32.mrb[47].mxu1 }
 0x139   :  { %v5106_v46 = vpop.f32.mrb[48].mxu0  ;;  %v5108_v26 = vpop.f32.mrb[48].mxu1 }
 0x13a   :  { %1119 = vrot.lane.b32.xlu1 %v448_v17, %s4593_s0  ;;  %v5111_v47 = vpop.f32.mrb[49].mxu0  ;;  %v5113_v24 = vpop.f32.mrb[49].mxu1 }
 0x13d   :  { %v698_v63 = vpop.f32.mrb[50].mxu0  ;;  %v817_v36 = vpop.f32.mrb[50].mxu1 }
 0x13e   :  { %1045 = vrot.lane.b32.xlu1 %v5010_v10, %s4594_s1  ;;  %1205 = vrot.lane.b32.xlu0 %v698_v63, %s4593_s0  ;;  %v700_v52 = vpop.f32.mrb[51].mxu0  ;;  %v819_v39 = vpop.f32.mrb[51].mxu1 }
 0x141   :  { %v5118_v8 = vpop.f32.mrb[52].mxu0 }
 0x142   :  { %7119 = vst [vmem:[#allocation33_spill] sm:$0xff] %v5118_v8  ;;  %1121 = vrot.lane.b32.xlu0 %v450_v19, %s4593_s0  ;;  %1207 = vrot.lane.b32.xlu1 %v700_v52, %s4593_s0  ;;  %v5122_v17 = vpop.f32.mrb[53].mxu0 }
 0x143   :  { %7120 = vst [vmem:[#allocation34_spill] sm:$0xff] %v5122_v17 }
 0x145   :  { %v5124_v60 = vpop.f32.mrb[54].mxu0 }
 0x146   :  { %7121 = vst [vmem:[#allocation35_spill] sm:$0xff] %v5124_v60  ;;  %1047 = vrot.lane.b32.xlu0 %v5013_v12, %s4594_s1  ;;  %1211 = vrot.lane.b32.xlu1 %v819_v39, %s4593_s0  ;;  %v896_v10 = vpop.f32.mrb[55].mxu0 }
 0x149   :  { %v5129_v4 = vpop.f32.mrb[56].mxu0 }
 0x14a   :  { %7122 = vst [vmem:[#allocation36_spill] sm:$0xff] %v5129_v4  ;;  %1209 = vrot.lane.b32.xlu0 %v817_v36, %s4593_s0  ;;  %v901_v63 = vpop.f32.mrb[57].mxu0 }
 0x14d   :  { %v5132_v8 = vpop.f32.mrb[58].mxu0 }
 0x14e   :  { %7123 = vst [vmem:[#allocation37_spill] sm:$0xff] %v5132_v8  ;;  %v906_v19 = vpop.f32.mrb[59].mxu0 }
 0x151   :  { %v5134_v38 = vpop.f32.mrb[60].mxu0 }
 0x152   :  { %v911_v52 = vpop.f32.mrb[61].mxu0 }
 0x155   :  { %v5136_v17 = vpop.f32.mrb[62].mxu0 }
 0x156   :  { %7124 = vst [vmem:[#allocation38_spill] sm:$0xff] %v5136_v17  ;;  %v916_v60 = vpop.f32.mrb[63].mxu0 }
 0x159   :  { %v5138_v3 = vpop.f32.mrb[64].mxu0 }
 0x15a   :  { %v921_v12 = vpop.f32.mrb[65].mxu0 }
 0x15d   :  { %v5140_v62 = vpop.f32.mrb[66].mxu0 }
 0x15e   :  { %7125 = vst [vmem:[#allocation39_spill] sm:$0xff] %v5140_v62  ;;  %v5142_v39 = vpop.f32.mrb[67].mxu0 }
 0x161   :  { %v930_v10 = vpop.f32.mrb[68].mxu0 }
 0x162   :  { %1213 = vrot.lane.b32.xlu0 %v930_v10, %s4593_s0  ;;  %v932_v36 = vpop.f32.mrb[69].mxu0 }
 0x168   :  { %v1194_v63 = vpop.permute.xlu0 %1193 }
 0x169   :  { %v1196_v19 = vpop.permute.xlu1 %1195 }
 0x16a   :  { %v1219_v8 = vsel %vm981_vm2, %v1194_v63, %v1196_v19 }
 0x16b   :  { %v1246_v52 = vadd.f32 %v1219_v8, %v4966_v49 }
 0x16c   :  { %v1192_v17 = vpop.permute.xlu0 %1191 }
 0x16d   :  { %v1218_v60 = vsel %vm981_vm2, %v1192_v17, %v1194_v63  ;;  %1354 = vrot.lane.b32.xlu0 %v1246_v52, %s4596_s10 }
 0x16e   :  { %v1245_v12 = vadd.f32 %v1218_v60, %v4968_v50 }
 0x170   :  { %v1190_v4 = vpop.permute.xlu0 %1189  ;;  %1352 = vrot.lane.b32.xlu1 %v1245_v12, %s4596_s10 }
 0x171   :  { %v1217_v10 = vsel %vm981_vm2, %v1190_v4, %v1192_v17 }
 0x172   :  { %v1244_v62 = vadd.f32 %v1217_v10, %v4964_v48 }
 0x174   :  { %1350 = vrot.lane.b32.xlu0 %v1244_v62, %s4596_s10  ;;  %v1038_v49 = vpop.permute.xlu0 %1037 }
 0x178   :  { %1125 = vrot.lane.b32.xlu0 %v5027_v20, %s4593_s0  ;;  %v5161_v63 = vpop.permute.xlu0 %1113 }
 0x17c   :  { %957 = vrot.lane.b32.xlu0 %v4936_v30, %s4593_s0  ;;  %v5165_v62 = vpop.permute.xlu0 %1117 }
 0x180   :  { %955 = vrot.lane.b32.xlu0 %v4932_v28, %s4593_s0 }
 0x18c   :  { %v1198_v50 = vpop.permute.xlu1 %1197 }
 0x18d   :  { %v1220_v8 = vsel %vm981_vm2, %v1196_v19, %v1198_v50 }
 0x18e   :  { %v1247_v4 = vadd.f32 %v1220_v8, %v4970_v51  ;;  %v1112_v51 = vpop.permute.xlu0 %1111 }
 0x190   :  { %v1036_v48 = vpop.permute.xlu1 %1035  ;;  %1356 = vrot.lane.b32.xlu1 %v1247_v4, %s4596_s10 }
 0x191   :  { %v1061_v19 = vsel %vm1059_vm3, %v1036_v48, %v1038_v49 }
 0x192   :  { %v5184_v12 = vpop.permute.xlu0 %1043 }
 0x194   :  { %v5167_v20 = vpop.permute.xlu1 %1039  ;;  %1123 = vrot.lane.b32.xlu1 %v5024_v18, %s4593_s0 }
 0x195   :  { %v1062_v28 = vsel %vm1059_vm3, %v1038_v49, %v5167_v20 }
 0x196   :  { %v1087_v30 = vadd.f32 %v1062_v28, %v4942_v33  ;;  %v1086_v33 = vadd.f32 %v1061_v19, %v4944_v34  ;;  %v1202_v49 = vpop.permute.xlu0 %1201 }
 0x198   :  { %v5174_v17 = vpop.permute.xlu1 %1115  ;;  %1275 = vrot.lane.b32.xlu0 %v1087_v30, %s4597_s11  ;;  %1215 = vrot.lane.b32.xlu1 %v932_v36, %s4593_s0  ;;  %v941_v36 = vld [vmem:[%s7079_s2] sm:$0xff]  ;;  %s4599_s2 = smov 99  }
 0x19c   :  { %v1034_v52 = vpop.permute.xlu1 %1033  ;;  %959 = vrot.lane.b32.xlu1 %v4934_v29, %s4593_s0 }
 0x19d   :  { %v1060_v18 = vsel %vm1059_vm3, %v1034_v52, %v1036_v48 }
 0x19e   :  { %v1085_v60 = vadd.f32 %v1060_v18, %v4940_v32 }
 0x1a0   :  { %v5186_v10 = vpop.permute.xlu1 %1041  ;;  %1271 = vrot.lane.b32.xlu0 %v1085_v60, %s4597_s11  ;;  %1273 = vrot.lane.b32.xlu1 %v1086_v33, %s4597_s11 }
 0x1a4   :  { %v1200_v29 = vpop.permute.xlu1 %1199  ;;  %1512 = vrot.lane.b32.xlu0 %v4979_v58, %s4598_s14  ;;  %1580 = vperm.xlu1 %4529, %v941_v36  }
 0x1a5   :  { %v1222_v32 = vsel %vm981_vm2, %v1200_v29, %v1202_v49  ;;  %v1221_v4 = vsel %vm981_vm2, %v1198_v50, %v1200_v29 }
 0x1a6   :  { %v1249_v8 = vadd.f32 %v1222_v32, %v5033_v23  ;;  %v1248_v58 = vadd.f32 %v1221_v4, %v5029_v21 }
 0x1a8   :  { %1510 = vrot.lane.b32.xlu0 %v4974_v56, %s4598_s14  ;;  %1514 = vrot.lane.b32.xlu1 %v4976_v57, %s4598_s14  ;;  %v1204_v34 = vpop.permute.xlu1 %1203 }
 0x1a9   :  { %v1223_v48 = vsel %vm981_vm2, %v1202_v49, %v1204_v34 }
 0x1aa   :  { %v1250_v50 = vadd.f32 %v1223_v48, %v5031_v22 }
 0x1ac   :  { %1360 = vrot.lane.b32.xlu0 %v1249_v8, %s4596_s10  ;;  %1049 = vrot.lane.b32.xlu1 %v5079_v44, %s4594_s1  ;;  %v5207_v28 = vpop.permute.xlu1 %1119 }
 0x1b0   :  { %v1206_v56 = vpop.permute.xlu0 %1205  ;;  %1358 = vrot.lane.b32.xlu1 %v1248_v58, %s4596_s10  ;;  %v5217_v21 = vpop.permute.xlu1 %1045  ;;  %v1064_v58 = vsel %vm1059_vm3, %v5186_v10, %v5184_v12 }
 0x1b1   :  { %v1224_v57 = vsel %vm981_vm2, %v1204_v34, %v1206_v56 }
 0x1b2   :  { %v1251_v23 = vadd.f32 %v1224_v57, %v5035_v37 }
 0x1b4   :  { %v5213_v30 = vpop.permute.xlu0 %1121  ;;  %1364 = vrot.lane.b32.xlu0 %v1251_v23, %s4596_s10  ;;  %1362 = vrot.lane.b32.xlu1 %v1250_v50, %s4596_s10  ;;  %v1208_v19 = vpop.permute.xlu1 %1207 }
 0x1b5   :  { %v1225_v22 = vsel %vm981_vm2, %v1206_v56, %v1208_v19 }
 0x1b8   :  { %1051 = vrot.lane.b32.xlu0 %v5084_v45, %s4594_s1  ;;  %1127 = vrot.lane.b32.xlu1 %v5097_v61, %s4593_s0  ;;  %v5223_v44 = vpop.permute.xlu0 %1047  ;;  %v1252_v61 = vadd.f32 %v1225_v22, %v5106_v46  ;;  %v1140_v22 = vsel %vm981_vm2, %v5165_v62, %v5207_v28 }
 0x1b9   :  { %v1066_v48 = vsel %vm1059_vm3, %v5217_v21, %v5223_v44 }
 0x1bc   :  { %1129 = vrot.lane.b32.xlu0 %v5102_v9, %s4593_s0  ;;  %1053 = vrot.lane.b32.xlu1 %v5081_v27, %s4594_s1  ;;  %v1210_v37 = vpop.permute.xlu0 %1209  ;;  %v1212_v9 = vpop.permute.xlu1 %1211 }
 0x1bd   :  { %v1226_v45 = vsel %vm981_vm2, %v1208_v19, %v1210_v37  ;;  %v1227_v32 = vsel %vm981_vm2, %v1210_v37, %v1212_v9  ;;  %v1165_v37 = vadd.f32 %v1140_v22, %v4960_v43 }
 0x1be   :  { %v1253_v27 = vadd.f32 %v1226_v45, %v5111_v47 }
 0x1c0   :  { %1055 = vrot.lane.b32.xlu0 %v5086_v25, %s4594_s1  ;;  %1131 = vrot.lane.b32.xlu1 %v5099_v11, %s4593_s0  ;;  %v1138_v25 = vsel %vm981_vm2, %v5161_v63, %v5174_v17 }
 0x1c1   :  { %v1163_v11 = vadd.f32 %v1138_v25, %v4958_v42  ;;  %v1254_v42 = vadd.f32 %v1227_v32, %v5108_v26  ;;  %v7126_v32 = vld [vmem:[#allocation39_spill] sm:$0xff] }
 0x1c4   :  { %1133 = vrot.lane.b32.xlu0 %v5104_v16, %s4593_s0  ;;  %1366 = vrot.lane.b32.xlu1 %v1252_v61, %s4596_s10  ;;  %v1137_v16 = vsel %vm981_vm2, %v1112_v51, %v5161_v63  ;;  %v1065_v51 = vsel %vm1059_vm3, %v5184_v12, %v5217_v21 }
 0x1c5   :  { %v1162_v33 = vadd.f32 %v1137_v16, %v4954_v40  ;;  %v1063_v40 = vsel %vm1059_vm3, %v5167_v20, %v5186_v10  ;;  %v1090_v26 = vadd.f32 %v1065_v51, %v5006_v7 }
 0x1c6   :  { %v1088_v63 = vadd.f32 %v1063_v40, %v4946_v35  ;;  %v5277_v35 = vpop.f32.mrb[52].mxu1 }
 0x1c7   :  { %v5304_v57 = vpop.f32.mrb[53].mxu1 }
 0x1c8   :  { %1368 = vrot.lane.b32.xlu0 %v1253_v27, %s4596_s10 }
 0x1d4   :  { %v5241_v52 = vpop.permute.xlu0 %1213 }
 0x1d5   :  { %v1228_v7 = vsel %vm981_vm2, %v1212_v9, %v5241_v52 }
 0x1df   :  { %v1355_v46 = vpop.permute.xlu0 %1354 }
 0x1e2   :  { %v1353_v18 = vpop.permute.xlu1 %1352 }
 0x1e3   :  { %v1380_v60 = vsel %vm1378_vm4, %v1353_v18, %v1355_v46 }
 0x1e4   :  { %v1406_v47 = vadd.f32 %v1380_v60, %v1163_v11 }
 0x1e6   :  { %v1351_v36 = vpop.permute.xlu0 %1350  ;;  %1433 = vrot.lane.b32.xlu1 %v1406_v47, %s4599_s2 }
 0x1e7   :  { %v1379_v49 = vsel %vm1378_vm4, %v1351_v36, %v1353_v18 }
 0x1e8   :  { %v1405_v29 = vadd.f32 %v1379_v49, %v1162_v33  ;;  %v5351_v33 = vpop.f32.mrb[70].mxu0 }
 0x1e9   :  { %v5359_v36 = vpop.f32.mrb[71].mxu0 }
 0x1ea   :  { %1431 = vrot.lane.b32.xlu1 %v1405_v29, %s4599_s2 }
 0x1ee   :  { %1370 = vrot.lane.b32.xlu1 %v1254_v42, %s4596_s10 }
 0x1f2   :  { %961 = vrot.lane.b32.xlu1 %v4938_v31, %s4593_s0  ;;  %v1139_v31 = vsel %vm981_vm2, %v5174_v17, %v5165_v62  ;;  %v1255_v17 = vadd.f32 %v1228_v7, %v5113_v24  ;;  %v1089_v24 = vadd.f32 %v1064_v58, %v5001_v5 }
 0x1f3   :  { %v1164_v20 = vadd.f32 %v1139_v31, %v4956_v41  ;;  %v5286_v41 = vpop.permute.xlu0 %1125  ;;  %v7130_v31 = vld [vmem:[#allocation23_spill] sm:$0xff] }
 0x1f6   :  { %965 = vrot.lane.b32.xlu1 %v4997_v2, %s4593_s0 }
 0x1f7   :  { %v5291_v4 = vpop.permute.xlu0 %957 }
 0x1fa   :  { %1277 = vrot.lane.b32.xlu1 %v1088_v63, %s4597_s11 }
 0x1fb   :  { %v5302_v56 = vpop.permute.xlu0 %955 }
 0x1fe   :  { %1281 = vrot.lane.b32.xlu1 %v1090_v26, %s4597_s11  ;;  %v7129_v26 = vld [vmem:[#allocation22_spill] sm:$0xff] }
 0x202   :  { %v1357_v34 = vpop.permute.xlu1 %1356  ;;  %1516 = vrot.lane.b32.xlu1 %v4981_v59, %s4598_s14 }
 0x203   :  { %v1381_v2 = vsel %vm1378_vm4, %v1355_v46, %v1357_v34 }
 0x204   :  { %v1407_v8 = vadd.f32 %v1381_v2, %v1164_v20 }
 0x206   :  { %1435 = vrot.lane.b32.xlu0 %v1407_v8, %s4599_s2  ;;  %1520 = vrot.lane.b32.xlu1 %v5045_v55, %s4598_s14  ;;  %v1124_v59 = vpop.permute.xlu1 %1123  ;;  %v7132_v8 = vld [vmem:[#allocation14_spill] sm:$0xff] }
 0x207   :  { %v1142_v27 = vsel %vm981_vm2, %v5213_v30, %v1124_v59  ;;  %v1143_v9 = vsel %vm981_vm2, %v1124_v59, %v5286_v41 }
 0x208   :  { %v1168_v43 = vadd.f32 %v1143_v9, %v5017_v14 }
 0x20a   :  { %1372 = vrot.lane.b32.xlu0 %v1255_v17, %s4596_s10  ;;  %v1216_v55 = vpop.permute.xlu1 %1215  ;;  %v5308_v23 = vpop.permute.xlu0 %1275 }
 0x20b   :  { %v1229_v14 = vsel %vm981_vm2, %v5241_v52, %v1216_v55  ;;  %v1257_v49 = vadd.f32 %v1216_v55, %v5142_v39  ;;  %v7127_v52 = vld [vmem:[#allocation21_spill] sm:$0xff] }
 0x20c   :  { %v1256_v42 = vadd.f32 %v1229_v14, %v7126_v32  ;;  %v982_v14 = vsel %vm981_vm2, %v5302_v56, %v5291_v4 }
 0x20e   :  { %963 = vrot.lane.b32.xlu0 %v4992_v0, %s4593_s0  ;;  %v1091_v0 = vadd.f32 %v1066_v48, %v5003_v6  ;;  %v5310_v12 = vpop.permute.xlu1 %959 }
 0x212   :  { %967 = vrot.lane.b32.xlu0 %v4994_v1, %s4593_s0  ;;  %v5313_v1 = vpop.permute.xlu0 %1271  ;;  %v5317_v5 = vpop.permute.xlu1 %1273 }
 0x216   :  { %1279 = vrot.lane.b32.xlu0 %v1089_v24, %s4597_s11  ;;  %v5321_v10 = vpop.permute.xlu0 %1512  ;;  %v7134_v24 = vld [vmem:[#allocation27_spill] sm:$0xff] }
 0x21a   :  { %1283 = vrot.lane.b32.xlu0 %v1091_v0, %s4597_s11  ;;  %v5327_v21 = vpop.permute.xlu0 %1510 }
 0x21e   :  { %1518 = vrot.lane.b32.xlu0 %v5039_v53, %s4598_s14  ;;  %v1141_v53 = vsel %vm981_vm2, %v5207_v28, %v5213_v30  ;;  %v1361_v61 = vpop.permute.xlu0 %1360  ;;  %v1167_v28 = vadd.f32 %v1142_v27, %v5020_v15  ;;  %v7136_v27 = vld [vmem:[#allocation29_spill] sm:$0xff] }
 0x222   :  { %1522 = vrot.lane.b32.xlu0 %v5041_v54, %s4598_s14  ;;  %v1166_v54 = vadd.f32 %v1141_v53, %v5015_v13 }
 0x223   :  { %v5323_v50 = vpop.permute.xlu1 %1580 }
 0x226   :  { %v1365_v18 = vpop.permute.xlu0 %1364 }
 0x227   :  { %v5325_v6 = vpop.permute.xlu1 %1514 }
 0x22a   :  { %v1052_v15 = vpop.permute.xlu0 %1051 }
 0x22b   :  { %v1050_v19 = vpop.permute.xlu1 %1049 }
 0x22c   :  { %v1067_v39 = vsel %vm1059_vm3, %v5223_v44, %v1050_v19  ;;  %v1068_v51 = vsel %vm1059_vm3, %v1050_v19, %v1052_v15  ;;  %v7133_v44 = vld [vmem:[#allocation26_spill] sm:$0xff] }
 0x22d   :  { %v1092_v7 = vadd.f32 %v1067_v39, %v7132_v8  ;;  %v7144_v8 = vld [vmem:[#allocation30_spill] sm:$0xff] }
 0x22e   :  { %v1130_v40 = vpop.permute.xlu0 %1129 }
 0x22f   :  { %v1359_v45 = vpop.permute.xlu1 %1358 }
 0x230   :  { %v1382_v25 = vsel %vm1378_vm4, %v1357_v34, %v1359_v45  ;;  %v1383_v62 = vsel %vm1378_vm4, %v1359_v45, %v1361_v61  ;;  %v7131_v34 = vld [vmem:[#allocation25_spill] sm:$0xff] }
 0x231   :  { %v1409_v11 = vadd.f32 %v1383_v62, %v1166_v54  ;;  %v1408_v46 = vadd.f32 %v1382_v25, %v1165_v37  ;;  %v1093_v2 = vadd.f32 %v1068_v51, %v7131_v34  ;;  %v7137_v25 = vld [vmem:[#allocation33_spill] sm:$0xff]  ;;  %v7138_v62 = vld [vmem:[#allocation16_spill] sm:$0xff] }
 0x233   :  { %1439 = vrot.lane.b32.xlu0 %v1409_v11, %s4599_s2  ;;  %1437 = vrot.lane.b32.xlu1 %v1408_v46, %s4599_s2  ;;  %v1363_v13 = vpop.permute.xlu1 %1362 }
 0x234   :  { %v1384_v30 = vsel %vm1378_vm4, %v1361_v61, %v1363_v13  ;;  %v1385_v16 = vsel %vm1378_vm4, %v1363_v13, %v1365_v18  ;;  %v7135_v61 = vld [vmem:[#allocation15_spill] sm:$0xff] }
 0x235   :  { %v1411_v60 = vadd.f32 %v1385_v16, %v1168_v43  ;;  %v1410_v47 = vadd.f32 %v1384_v30, %v1167_v28 }
 0x237   :  { %1443 = vrot.lane.b32.xlu0 %v1411_v60, %s4599_s2  ;;  %1441 = vrot.lane.b32.xlu1 %v1410_v47, %s4599_s2  ;;  %v1128_v29 = vpop.permute.xlu1 %1127  ;;  %v7140_v47 = vld [vmem:[#allocation34_spill] sm:$0xff] }
 0x238   :  { %v1144_v19 = vsel %vm981_vm2, %v5286_v41, %v1128_v29  ;;  %v1145_v22 = vsel %vm981_vm2, %v1128_v29, %v1130_v40  ;;  %v7142_v29 = vld [vmem:[#allocation5_spill] sm:$0xff] }
 0x239   :  { %v1169_v45 = vadd.f32 %v1144_v19, %v7135_v61  ;;  %v1170_v9 = vadd.f32 %v1145_v22, %v7136_v27  ;;  %v1007_v32 = vadd.f32 %v982_v14, %v7142_v29  ;;  %v7145_v22 = vmov 0.0   ;;  %v7147_v14 = vld [vmem:[#allocation6_spill] sm:$0xff]  ;;  %v7148_v29 = vld [vmem:[#allocation8_spill] sm:$0xff] }
 0x23b   :  { %1135 = vrot.lane.b32.xlu0 %v5138_v3, %s4593_s0  ;;  %1057 = vrot.lane.b32.xlu1 %v5134_v38, %s4594_s1  ;;  %v1054_v63 = vpop.permute.xlu1 %1053  ;;  %v7128_v3 = vld [vmem:[#allocation13_spill] sm:$0xff]  ;;  %v5369_v38 = vpop.permute.xlu0 %1055 }
 0x23c   :  { %v1069_v17 = vsel %vm1059_vm3, %v1052_v15, %v1054_v63  ;;  %v1070_v59 = vsel %vm1059_vm3, %v1054_v63, %v5369_v38  ;;  %v7141_v15 = vld [vmem:[#allocation24_spill] sm:$0xff] }
 0x23d   :  { %v1095_v55 = vadd.f32 %v1070_v59, %v7133_v44  ;;  %v1094_v48 = vadd.f32 %v1069_v17, %v7134_v24 }
 0x23f   :  { %1376 = vrot.lane.b32.xlu0 %v1257_v49, %s4596_s10  ;;  %1374 = vrot.lane.b32.xlu1 %v1256_v42, %s4596_s10  ;;  %v1132_v20 = vpop.permute.xlu1 %1131  ;;  %v5383_v58 = vpop.permute.xlu0 %1133  ;;  %v1298_v49 = vsel %vm1297_vm5, %v5313_v1, %v5317_v5  ;;  %v1539_v1 = vsel %vm1538_vm7, %v5327_v21, %v5321_v10 }
 0x240   :  { %v1146_v43 = vsel %vm981_vm2, %v1130_v40, %v1132_v20  ;;  %v983_v40 = vsel %vm981_vm2, %v5291_v4, %v5310_v12  ;;  %v1323_v63 = vadd.f32 %v1298_v49, %v1007_v32 }
 0x243   :  { %971 = vrot.lane.b32.xlu0 %v7127_v52, %s4593_s0  ;;  %969 = vrot.lane.b32.xlu1 %v7128_v3, %s4593_s0  ;;  %v1367_v0 = vpop.permute.xlu1 %1366  ;;  %v1369_v53 = vpop.permute.xlu0 %1368  ;;  %v1299_v52 = vsel %vm1297_vm5, %v5317_v5, %v5308_v23  ;;  %v7143_v3 = vld [vmem:[#allocation7_spill] sm:$0xff]  ;;  %v1540_v5 = vsel %vm1538_vm7, %v5321_v10, %v5325_v6  ;;  %v5450_v10 = vld [vmem:[%s7080_s3] sm:$0xff] }
 0x244   :  { %v1386_v37 = vsel %vm1378_vm4, %v1365_v18, %v1367_v0  ;;  %v1387_v54 = vsel %vm1378_vm4, %v1367_v0, %v1369_v53  ;;  %v7139_v18 = vld [vmem:[#allocation31_spill] sm:$0xff]  ;;  %v1008_v39 = vadd.f32 %v983_v40, %v7143_v3 }
 0x245   :  { %v1413_v11 = vadd.f32 %v1387_v54, %v1170_v9  ;;  %v1412_v46 = vadd.f32 %v1386_v37, %v1169_v45  ;;  %v1171_v13 = vadd.f32 %v1146_v43, %v7139_v18  ;;  %v7146_v37 = vld [vmem:[#allocation36_spill] sm:$0xff] }
 0x246   :  { %v1324_v51 = vadd.f32 %v1299_v52, %v1008_v39  ;;  %v5480_v45 = vld [vmem:[%s7080_s3 + $0x18] sm:$0xff] }
 0x247   :  { %975 = vrot.lane.b32.xlu0 %v7129_v26, %s4593_s0  ;;  %973 = vrot.lane.b32.xlu1 %v7130_v31, %s4593_s0  ;;  %v1147_v31 = vsel %vm981_vm2, %v1132_v20, %v5383_v58  ;;  %v5514_v18 = vld [vmem:[%s7080_s3 + $0x38] sm:$0xff] }
 0x24b   :  { %1287 = vrot.lane.b32.xlu0 %v1093_v2, %s4597_s11  ;;  %1285 = vrot.lane.b32.xlu1 %v1092_v7, %s4597_s11  ;;  %v1172_v7 = vadd.f32 %v1147_v31, %v7144_v8  ;;  %v7149_v31 = vld [vmem:[#allocation9_spill] sm:$0xff] }
 0x24f   :  { %1291 = vrot.lane.b32.xlu0 %v1095_v55, %s4597_s11  ;;  %1289 = vrot.lane.b32.xlu1 %v1094_v48, %s4597_s11 }
 0x253   :  { %1526 = vrot.lane.b32.xlu0 %v7137_v25, %s4598_s14  ;;  %1524 = vrot.lane.b32.xlu1 %v7138_v62, %s4598_s14  ;;  %v5488_v25 = vld [vmem:[%s7080_s3 + $0x20] sm:$0xff] }
 0x257   :  { %1447 = vrot.lane.b32.xlu0 %v1413_v11, %s4599_s2  ;;  %1445 = vrot.lane.b32.xlu1 %v1412_v46, %s4599_s2  ;;  %v5498_v46 = vld [vmem:[%s7080_s3 + $0x28] sm:$0xff] }
 0x258   :  { %v1434_v41 = vpop.permute.xlu1 %1433 }
 0x25c   :  { %v1432_v28 = vpop.permute.xlu1 %1431 }
 0x25d   :  { %v1458_v42 = vsel %vm1457_vm6, %v1432_v28, %v1434_v41 }
 0x25e   :  { %v1483_v56 = vadd.f32 %v1458_v42, %v1323_v63 }
 0x260   :  { %v1371_v30 = vpop.permute.xlu1 %1370  ;;  %v1565_v4 = vadd.f32 %v1539_v1, %v1483_v56 }
 0x261   :  { %v1388_v16 = vsel %vm1378_vm4, %v1369_v53, %v1371_v30  ;;  %v5460_v53 = vld [vmem:[%s7080_s3 + $0x8] sm:$0xff] }
 0x262   :  { %v1414_v60 = vadd.f32 %v1388_v16, %v1171_v13  ;;  %v1583_v21 = vadd.f32 %v5323_v50, %v1565_v4 }
 0x264   :  { %1449 = vrot.lane.b32.xlu1 %v1414_v60, %s4599_s2  ;;  %v1596_v48 = vmax.f32 %v1583_v21, 0.0  ;;  %v962_v0 = vpop.permute.xlu1 %961 }
 0x265   :  { %v984_v13 = vsel %vm981_vm2, %v5310_v12, %v962_v0 }
 0x266   :  { %v1009_v49 = vadd.f32 %v984_v13, %v7147_v14 }
 0x268   :  { %1528 = vrot.lane.b32.xlu1 %v7140_v47, %s4598_s14  ;;  %v966_v54 = vpop.permute.xlu1 %965  ;;  %v5527_v47 = vld [vmem:[%s7080_s3 + $0x40] sm:$0xff] }
 0x26c   :  { %977 = vrot.lane.b32.xlu1 %v7141_v15, %s4593_s0  ;;  %v1278_v27 = vpop.permute.xlu1 %1277 }
 0x26d   :  { %v1300_v15 = vsel %vm1297_vm5, %v5308_v23, %v1278_v27 }
 0x26e   :  { %v1325_v63 = vadd.f32 %v1300_v15, %v1009_v49  ;;  %v7151_v49 = vld [vmem:[#allocation37_spill] sm:$0xff] }
 0x270   :  { %v1282_v62 = vpop.permute.xlu1 %1281 }
 0x274   :  { %v1517_v28 = vpop.permute.xlu1 %1516 }
 0x278   :  { %v5430_v26 = vpop.permute.xlu0 %1435  ;;  %v1521_v16 = vpop.permute.xlu1 %1520 }
 0x279   :  { %v1459_v34 = vsel %vm1457_vm6, %v1434_v41, %v5430_v26  ;;  %v5506_v41 = vld [vmem:[%s7080_s3 + $0x30] sm:$0xff] }
 0x27a   :  { %v1484_v2 = vadd.f32 %v1459_v34, %v1324_v51  ;;  %v7150_v34 = vld [vmem:[#allocation11_spill] sm:$0xff] }
 0x27c   :  { %v5440_v17 = vpop.permute.xlu0 %1372  ;;  %v1566_v59 = vadd.f32 %v1540_v5, %v1484_v2 }
 0x27d   :  { %v1389_v44 = vsel %vm1378_vm4, %v1371_v30, %v5440_v17 }
 0x27e   :  { %v1415_v20 = vadd.f32 %v1389_v44, %v1172_v7  ;;  %v1584_v55 = vadd.f32 %v5323_v50, %v1566_v59  ;;  %v1541_v7 = vsel %vm1538_vm7, %v5325_v6, %v1517_v28 }
 0x280   :  { %1451 = vrot.lane.b32.xlu0 %v1415_v20, %s4599_s2  ;;  %v1597_v24 = vmax.f32 %v1584_v55, 0.0  ;;  %v964_v19 = vpop.permute.xlu0 %963 }
 0x281   :  { %v985_v30 = vsel %vm981_vm2, %v962_v0, %v964_v19  ;;  %v986_v42 = vsel %vm981_vm2, %v964_v19, %v966_v54 }
 0x282   :  { %1646 = vmatprep.subr.mxu1 %v1597_v24  ;;  %v1010_v32 = vadd.f32 %v985_v30, %v7148_v29  ;;  %v1011_v4 = vadd.f32 %v986_v42, %v7149_v31  ;;  %v7154_v31 = vld [vmem:[#allocation32_spill] sm:$0xff] }
 0x283   :  { %1647 = vmatpush1.msra.mxu1 %v1596_v48 }
 0x284   :  { %3985 = vmatmul.mubr.msk.f32.vlgmr.msra.gmra.mrb[54].mxu1 %vm1618_vm8, %v5450_v10  ;;  %1530 = vrot.lane.b32.xlu0 %v5277_v35, %s4598_s14  ;;  %v5466_v61 = vpop.permute.xlu0 %967  ;;  %v5472_v35 = vld [vmem:[%s7080_s3 + $0x10] sm:$0xff] }
 0x285   :  { %1716 = vmatprep.mubr.f32.mxu1 %v7145_v22  ;;  %v987_v40 = vsel %vm981_vm2, %v966_v54, %v5466_v61 }
 0x286   :  { %v1012_v2 = vadd.f32 %v987_v40, %v7150_v34 }
 0x288   :  { %3986 = vmatmul.mubr.msk.f32.gmra.mrb[56].mxu1 %vm1618_vm8, %v5460_v53  ;;  %979 = vrot.lane.b32.xlu0 %v7146_v37, %s4593_s0  ;;  %v1280_v9 = vpop.permute.xlu0 %1279 }
 0x289   :  { %1722 = vmatprep.mubr.f32.mxu1 %v7145_v22  ;;  %v1301_v12 = vsel %vm1297_vm5, %v1278_v27, %v1280_v9  ;;  %v1302_v23 = vsel %vm1297_vm5, %v1280_v9, %v1282_v62 }
 0x28a   :  { %v1326_v52 = vadd.f32 %v1301_v12, %v1010_v32  ;;  %v1327_v21 = vadd.f32 %v1302_v23, %v1011_v4  ;;  %v7152_v32 = vld [vmem:[#allocation28_spill] sm:$0xff] }
 0x28c   :  { %3987 = vmatmul.mubr.msk.f32.gmra.mrb[58].mxu1 %vm1618_vm8, %v5472_v35  ;;  %v5492_v11 = vpop.permute.xlu0 %1283 }
 0x28d   :  { %1728 = vmatprep.mubr.f32.mxu1 %v7145_v22  ;;  %v1303_v39 = vsel %vm1297_vm5, %v1282_v62, %v5492_v11 }
 0x28e   :  { %v1328_v44 = vadd.f32 %v1303_v39, %v1012_v2 }
 0x290   :  { %3988 = vmatmul.mubr.msk.f32.gmra.mrb[60].mxu1 %vm1618_vm8, %v5480_v45  ;;  %v1519_v43 = vpop.permute.xlu0 %1518 }
 0x291   :  { %1734 = vmatprep.mubr.f32.mxu1 %v7145_v22  ;;  %v1542_v59 = vsel %vm1538_vm7, %v1517_v28, %v1519_v43  ;;  %v1543_v27 = vsel %vm1538_vm7, %v1519_v43, %v1521_v16 }
 0x294   :  { %3989 = vmatmul.mubr.msk.f32.gmra.mrb[62].mxu1 %vm1618_vm8, %v5488_v25  ;;  %v5521_v60 = vpop.permute.xlu0 %1522 }
 0x295   :  { %1740 = vmatprep.mubr.f32.mxu1 %v7145_v22  ;;  %v1544_v9 = vsel %vm1538_vm7, %v1521_v16, %v5521_v60  ;;  %v7153_v16 = vld [vmem:[#allocation38_spill] sm:$0xff] }
 0x298   :  { %3990 = vmatmul.mubr.msk.f32.gmra.mrb[64].mxu1 %vm1618_vm8, %v5498_v46 }
 0x299   :  { %1746 = vmatprep.mubr.f32.mxu1 %v7145_v22 }
 0x29c   :  { %3991 = vmatmul.mubr.msk.f32.gmra.mrb[66].mxu1 %vm1618_vm8, %v5506_v41 }
 0x29d   :  { %1752 = vmatprep.mubr.f32.mxu1 %v7145_v22 }
 0x2a0   :  { %3992 = vmatmul.mubr.msk.f32.gmra.mrb[68].mxu1 %vm1618_vm8, %v5514_v18 }
 0x2a1   :  { %1758 = vmatprep.mubr.f32.mxu1 %v7145_v22 }
 0x2a4   :  { %3993 = vmatmul.mubr.msk.f32.gmra.mrb[70].mxu1 %vm1618_vm8, %v5527_v47 }
 0x2a5   :  { %v1440_v56 = vpop.permute.xlu0 %1439  ;;  %v1438_v3 = vpop.permute.xlu1 %1437  ;;  %1948 = vmatprep.mubr.f32.mxu1 %v7145_v22 }
 0x2a6   :  { %v1460_v51 = vsel %vm1457_vm6, %v5430_v26, %v1438_v3  ;;  %v1461_v1 = vsel %vm1457_vm6, %v1438_v3, %v1440_v56 }
 0x2a7   :  { %v1485_v5 = vadd.f32 %v1460_v51, %v1325_v63  ;;  %v1486_v8 = vadd.f32 %v1461_v1, %v1326_v52 }
 0x2a9   :  { %v1567_v20 = vadd.f32 %v1541_v7, %v1485_v5  ;;  %v5551_v55 = vpop.permute.xlu0 %1443  ;;  %v1442_v24 = vpop.permute.xlu1 %1441  ;;  %v1568_v26 = vadd.f32 %v1542_v59, %v1486_v8 }
 0x2aa   :  { %v1462_v48 = vsel %vm1457_vm6, %v1440_v56, %v1442_v24  ;;  %v1463_v0 = vsel %vm1457_vm6, %v1442_v24, %v5551_v55 }
 0x2ab   :  { %v1487_v19 = vadd.f32 %v1462_v48, %v1327_v21  ;;  %v1488_v37 = vadd.f32 %v1463_v0, %v1328_v44  ;;  %v1586_v54 = vadd.f32 %v5323_v50, %v1568_v26  ;;  %v1585_v6 = vadd.f32 %v5323_v50, %v1567_v20  ;;  %v7156_v48 = vld [vmem:[#allocation12_spill] sm:$0xff] }
 0x2ad   :  { %v1569_v62 = vadd.f32 %v1543_v27, %v1487_v19  ;;  %v1136_v28 = vpop.permute.xlu0 %1135  ;;  %v1058_v13 = vpop.permute.xlu1 %1057  ;;  %v1599_v30 = vmax.f32 %v1586_v54, 0.0  ;;  %v1598_v15 = vmax.f32 %v1585_v6, 0.0  ;;  %v1570_v12 = vadd.f32 %v1544_v9, %v1488_v37 }
 0x2ae   :  { %v1071_v14 = vsel %vm1059_vm3, %v5369_v38, %v1058_v13  ;;  %v1097_v29 = vadd.f32 %v1058_v13, %v7151_v49  ;;  %v1174_v63 = vadd.f32 %v1136_v28, %v7153_v16  ;;  %v1148_v23 = vsel %vm981_vm2, %v5383_v58, %v1136_v28 }
 0x2af   :  { %v1096_v42 = vadd.f32 %v1071_v14, %v7152_v32  ;;  %1765 = vmatprep.subr.mxu0 %v1599_v30  ;;  %v1588_v40 = vadd.f32 %v5323_v50, %v1570_v12  ;;  %v1587_v43 = vadd.f32 %v5323_v50, %v1569_v62  ;;  %v1173_v4 = vadd.f32 %v1148_v23, %v7154_v31 }
 0x2b0   :  { %1766 = vmatpush1.msra.mxu0 %v1598_v15  ;;  %1295 = vrot.lane.b32.xlu0 %v1097_v29, %s4597_s11 }
 0x2b1   :  { %v1377_v52 = vpop.permute.xlu0 %1376  ;;  %3994 = vmatmul.mubr.msk.f32.vlgmr.msra.gmra.mrb[72].mxu0 %vm1618_vm8, %v5450_v10  ;;  %1293 = vrot.lane.b32.xlu1 %v1096_v42, %s4597_s11  ;;  %v1375_v38 = vpop.permute.xlu1 %1374  ;;  %v1601_v56 = vmax.f32 %v1588_v40, 0.0  ;;  %v1600_v3 = vmax.f32 %v1587_v43, 0.0  ;;  %v7157_v40 = vld [vmem:[#allocation17_spill] sm:$0xff] }
 0x2b2   :  { %v1391_v39 = vsel %vm1378_vm4, %v1375_v38, %v1377_v52  ;;  %1835 = vmatprep.mubr.f32.mxu0 %v7145_v22  ;;  %v1390_v1 = vsel %vm1378_vm4, %v5440_v17, %v1375_v38 }
 0x2b3   :  { %v1417_v51 = vadd.f32 %v1391_v39, %v1174_v63  ;;  %1884 = vmatprep.subr.mxu1 %v1601_v56  ;;  %v1416_v2 = vadd.f32 %v1390_v1, %v1173_v4  ;;  %v7158_v56 = vld [vmem:[#allocation19_spill] sm:$0xff] }
 0x2b4   :  { %1885 = vmatpush1.msra.mxu1 %v1600_v3 }
 0x2b5   :  { %v5579_v34 = vpop.permute.xlu0 %971  ;;  %3995 = vmatmul.mubr.msk.f32.gmra.mrb[74].mxu0 %vm1618_vm8, %v5460_v53  ;;  %1532 = vrot.lane.b32.xlu1 %v5304_v57, %s4598_s14  ;;  %v970_v58 = vpop.permute.xlu1 %969 }
 0x2b6   :  { %1455 = vrot.lane.b32.xlu0 %v1417_v51, %s4599_s2  ;;  %1841 = vmatprep.mubr.f32.mxu0 %v7145_v22  ;;  %v989_v59 = vsel %vm981_vm2, %v970_v58, %v5579_v34 }
 0x2b7   :  { %4003 = vmatmul.mubr.msk.f32.vlgmr.msra.gmra.mrb[72].mxu1 %vm1618_vm8, %v5450_v10  ;;  %v1014_v0 = vadd.f32 %v989_v59, %v7156_v48 }
 0x2b8   :  { %1954 = vmatprep.mubr.f32.mxu1 %v7145_v22 }
 0x2b9   :  { %v5590_v17 = vpop.permute.xlu0 %975  ;;  %3996 = vmatmul.mubr.msk.f32.gmra.mrb[76].mxu0 %vm1618_vm8, %v5472_v35  ;;  %1453 = vrot.lane.b32.xlu1 %v1416_v2, %s4599_s2  ;;  %v5595_v5 = vpop.permute.xlu1 %973 }
 0x2ba   :  { %1534 = vrot.lane.b32.xlu0 %v5351_v33, %s4598_s14  ;;  %1847 = vmatprep.mubr.f32.mxu0 %v7145_v22  ;;  %v990_v29 = vsel %vm981_vm2, %v5579_v34, %v5595_v5  ;;  %v991_v42 = vsel %vm981_vm2, %v5595_v5, %v5590_v17 }
 0x2bb   :  { %4004 = vmatmul.mubr.msk.f32.gmra.mrb[74].mxu1 %vm1618_vm8, %v5460_v53  ;;  %v1015_v43 = vadd.f32 %v990_v29, %v7157_v40  ;;  %v1016_v3 = vadd.f32 %v991_v42, %v7158_v56 }
 0x2bc   :  { %1960 = vmatprep.mubr.f32.mxu1 %v7145_v22 }
 0x2bd   :  { %v5603_v57 = vpop.permute.xlu0 %1287  ;;  %3997 = vmatmul.mubr.msk.f32.gmra.mrb[78].mxu0 %vm1618_vm8, %v5480_v45  ;;  %v1286_v8 = vpop.permute.xlu1 %1285  ;;  %1536 = vrot.lane.b32.xlu1 %v5359_v36, %s4598_s14  ;;  %v988_v36 = vsel %vm981_vm2, %v5466_v61, %v970_v58  ;;  %v7155_v61 = vld [vmem:[#allocation10_spill] sm:$0xff] }
 0x2be   :  { %1853 = vmatprep.mubr.f32.mxu0 %v7145_v22  ;;  %v1304_v20 = vsel %vm1297_vm5, %v5492_v11, %v1286_v8  ;;  %v1305_v24 = vsel %vm1297_vm5, %v1286_v8, %v5603_v57  ;;  %v1013_v26 = vadd.f32 %v988_v36, %v7155_v61 }
 0x2bf   :  { %4005 = vmatmul.mubr.msk.f32.gmra.mrb[76].mxu1 %vm1618_vm8, %v5472_v35  ;;  %v1330_v37 = vadd.f32 %v1305_v24, %v1014_v0 }
 0x2c0   :  { %1966 = vmatprep.mubr.f32.mxu1 %v7145_v22  ;;  %v1329_v19 = vadd.f32 %v1304_v20, %v1013_v26 }
 0x2c1   :  { %v5613_v33 = vpop.permute.xlu0 %1291  ;;  %3998 = vmatmul.mubr.msk.f32.gmra.mrb[80].mxu0 %vm1618_vm8, %v5488_v25  ;;  %v5617_v7 = vpop.permute.xlu1 %1289 }
 0x2c2   :  { %1859 = vmatprep.mubr.f32.mxu0 %v7145_v22  ;;  %v1306_v32 = vsel %vm1297_vm5, %v5603_v57, %v5617_v7  ;;  %v1307_v52 = vsel %vm1297_vm5, %v5617_v7, %v5613_v33 }
 0x2c3   :  { %4006 = vmatmul.mubr.msk.f32.gmra.mrb[78].mxu1 %vm1618_vm8, %v5480_v45  ;;  %v1331_v38 = vadd.f32 %v1306_v32, %v1015_v43  ;;  %v1332_v31 = vadd.f32 %v1307_v52, %v1016_v3 }
 0x2c4   :  { %1972 = vmatprep.mubr.f32.mxu1 %v7145_v22 }
 0x2c5   :  { %v5627_v21 = vpop.permute.xlu0 %1526  ;;  %3999 = vmatmul.mubr.msk.f32.gmra.mrb[82].mxu0 %vm1618_vm8, %v5498_v46  ;;  %v1525_v44 = vpop.permute.xlu1 %1524 }
 0x2c6   :  { %1865 = vmatprep.mubr.f32.mxu0 %v7145_v22  ;;  %v1545_v28 = vsel %vm1538_vm7, %v5521_v60, %v1525_v44  ;;  %v1546_v13 = vsel %vm1538_vm7, %v1525_v44, %v5627_v21 }
 0x2c7   :  { %4007 = vmatmul.mubr.msk.f32.gmra.mrb[80].mxu1 %vm1618_vm8, %v5488_v25 }
 0x2c8   :  { %1978 = vmatprep.mubr.f32.mxu1 %v7145_v22 }
 0x2c9   :  { %v1448_v54 = vpop.permute.xlu0 %1447  ;;  %4000 = vmatmul.mubr.msk.f32.gmra.mrb[84].mxu0 %vm1618_vm8, %v5506_v41  ;;  %v1446_v11 = vpop.permute.xlu1 %1445 }
 0x2ca   :  { %v1464_v6 = vsel %vm1457_vm6, %v5551_v55, %v1446_v11  ;;  %v1465_v27 = vsel %vm1457_vm6, %v1446_v11, %v1448_v54  ;;  %1871 = vmatprep.mubr.f32.mxu0 %v7145_v22  ;;  %v7160_v11 = vld [vmem:[#allocation20_spill] sm:$0xff] }
 0x2cb   :  { %v1489_v9 = vadd.f32 %v1464_v6, %v1329_v19  ;;  %v1490_v62 = vadd.f32 %v1465_v27, %v1330_v37  ;;  %4008 = vmatmul.mubr.msk.f32.gmra.mrb[82].mxu1 %vm1618_vm8, %v5498_v46  ;;  %v7159_v37 = vld [vmem:[#allocation18_spill] sm:$0xff]  ;;  %v7161_v27 = vld [vmem:[#allocation35_spill] sm:$0xff] }
 0x2cc   :  { %1984 = vmatprep.mubr.f32.mxu1 %v7145_v22 }
 0x2cd   :  { %v1571_v30 = vadd.f32 %v1545_v28, %v1489_v9  ;;  %4001 = vmatmul.mubr.msk.f32.gmra.mrb[86].mxu0 %vm1618_vm8, %v5514_v18  ;;  %v1572_v55 = vadd.f32 %v1546_v13, %v1490_v62 }
 0x2ce   :  { %1877 = vmatprep.mubr.f32.mxu0 %v7145_v22 }
 0x2cf   :  { %v1590_v15 = vadd.f32 %v5323_v50, %v1572_v55  ;;  %v1589_v12 = vadd.f32 %v5323_v50, %v1571_v30  ;;  %4009 = vmatmul.mubr.msk.f32.gmra.mrb[84].mxu1 %vm1618_vm8, %v5506_v41 }
 0x2d0   :  { %1990 = vmatprep.mubr.f32.mxu1 %v7145_v22 }
 0x2d1   :  { %4002 = vmatmul.mubr.msk.f32.gmra.mrb[88].mxu0 %vm1618_vm8, %v5527_v47  ;;  %v1603_v60 = vmax.f32 %v1590_v15, 0.0  ;;  %v1602_v14 = vmax.f32 %v1589_v12, 0.0 }
 0x2d2   :  { %2067 = vmatprep.mubr.f32.mxu0 %v7145_v22 }
 0x2d3   :  { %2003 = vmatprep.subr.mxu0 %v1603_v60  ;;  %4010 = vmatmul.mubr.msk.f32.gmra.mrb[86].mxu1 %vm1618_vm8, %v5514_v18 }
 0x2d4   :  { %2004 = vmatpush1.msra.mxu0 %v1602_v14  ;;  %1996 = vmatprep.mubr.f32.mxu1 %v7145_v22 }
 0x2d5   :  { %4012 = vmatmul.mubr.msk.f32.vlgmr.msra.gmra.mrb[90].mxu0 %vm1618_vm8, %v5450_v10 }
 0x2d6   :  { %2073 = vmatprep.mubr.f32.mxu0 %v7145_v22  ;;  %v1450_v49 = vpop.permute.xlu1 %1449 }
 0x2d7   :  { %4011 = vmatmul.mubr.msk.f32.gmra.mrb[88].mxu1 %vm1618_vm8, %v5527_v47  ;;  %v1466_v63 = vsel %vm1457_vm6, %v1448_v54, %v1450_v49 }
 0x2d8   :  { %2186 = vmatprep.mubr.f32.mxu1 %v7145_v22  ;;  %v1491_v51 = vadd.f32 %v1466_v63, %v1331_v38 }
 0x2d9   :  { %4013 = vmatmul.mubr.msk.f32.gmra.mrb[92].mxu0 %vm1618_vm8, %v5460_v53 }
 0x2da   :  { %2079 = vmatprep.mubr.f32.mxu0 %v7145_v22  ;;  %v1529_v16 = vpop.permute.xlu1 %1528 }
 0x2db   :  { %v1547_v23 = vsel %vm1538_vm7, %v5627_v21, %v1529_v16 }
 0x2dc   :  { %v1573_v4 = vadd.f32 %v1547_v23, %v1491_v51 }
 0x2dd   :  { %4014 = vmatmul.mubr.msk.f32.gmra.mrb[94].mxu0 %vm1618_vm8, %v5472_v35 }
 0x2de   :  { %2085 = vmatprep.mubr.f32.mxu0 %v7145_v22  ;;  %v1591_v57 = vadd.f32 %v5323_v50, %v1573_v4  ;;  %v978_v21 = vpop.permute.xlu1 %977 }
 0x2df   :  { %v992_v24 = vsel %vm981_vm2, %v5590_v17, %v978_v21 }
 0x2e0   :  { %v1604_v36 = vmax.f32 %v1591_v57, 0.0  ;;  %v1017_v54 = vadd.f32 %v992_v24, %v7159_v37 }
 0x2e1   :  { %4015 = vmatmul.mubr.msk.f32.gmra.mrb[96].mxu0 %vm1618_vm8, %v5480_v45 }
 0x2e2   :  { %2091 = vmatprep.mubr.f32.mxu0 %v7145_v22 }
 0x2e5   :  { %4016 = vmatmul.mubr.msk.f32.gmra.mrb[98].mxu0 %vm1618_vm8, %v5488_v25 }
 0x2e6   :  { %2097 = vmatprep.mubr.f32.mxu0 %v7145_v22 }
 0x2e9   :  { %4017 = vmatmul.mubr.msk.f32.gmra.mrb[100].mxu0 %vm1618_vm8, %v5498_v46 }
 0x2ea   :  { %2103 = vmatprep.mubr.f32.mxu0 %v7145_v22 }
 0x2ed   :  { %4018 = vmatmul.mubr.msk.f32.gmra.mrb[102].mxu0 %vm1618_vm8, %v5506_v41 }
 0x2ee   :  { %2109 = vmatprep.mubr.f32.mxu0 %v7145_v22 }
 0x2f1   :  { %4019 = vmatmul.mubr.msk.f32.gmra.mrb[104].mxu0 %vm1618_vm8, %v5514_v18 }
 0x2f2   :  { %v1452_v39 = vpop.permute.xlu0 %1451  ;;  %2115 = vmatprep.mubr.f32.mxu0 %v7145_v22 }
 0x2f3   :  { %v1467_v1 = vsel %vm1457_vm6, %v1450_v49, %v1452_v39 }
 0x2f4   :  { %v1492_v34 = vadd.f32 %v1467_v1, %v1332_v31 }
 0x2f5   :  { %4020 = vmatmul.mubr.msk.f32.gmra.mrb[106].mxu0 %vm1618_vm8, %v5527_v47 }
 0x2f6   :  { %v1531_v58 = vpop.permute.xlu0 %1530  ;;  %2305 = vmatprep.mubr.f32.mxu0 %v7145_v22 }
 0x2f7   :  { %v1548_v2 = vsel %vm1538_vm7, %v1529_v16, %v1531_v58 }
 0x2f8   :  { %v1574_v5 = vadd.f32 %v1548_v2, %v1492_v34 }
 0x2fa   :  { %v1592_v8 = vadd.f32 %v5323_v50, %v1574_v5  ;;  %v980_v59 = vpop.permute.xlu0 %979 }
 0x2fb   :  { %v993_v61 = vsel %vm981_vm2, %v978_v21, %v980_v59  ;;  %v1019_v9 = vadd.f32 %v980_v59, %v7161_v27 }
 0x2fc   :  { %v1605_v7 = vmax.f32 %v1592_v8, 0.0  ;;  %v1018_v6 = vadd.f32 %v993_v61, %v7160_v11 }
 0x2fe   :  { %2122 = vmatprep.subr.mxu1 %v1605_v7 }
 0x2ff   :  { %2123 = vmatpush1.msra.mxu1 %v1604_v36 }
 0x300   :  { %4021 = vmatmul.mubr.msk.f32.vlgmr.msra.gmra.mrb[90].mxu1 %vm1618_vm8, %v5450_v10  ;;  %4236 = vmatprep.subr.mxu1 %v7145_v22 }
 0x301   :  { %2192 = vmatprep.mubr.f32.mxu1 %v7145_v22 }
 0x304   :  { %4022 = vmatmul.mubr.msk.f32.gmra.mrb[92].mxu1 %vm1618_vm8, %v5460_v53 }
 0x305   :  { %2198 = vmatprep.mubr.f32.mxu1 %v7145_v22 }
 0x308   :  { %4023 = vmatmul.mubr.msk.f32.gmra.mrb[94].mxu1 %vm1618_vm8, %v5472_v35 }
 0x309   :  { %2204 = vmatprep.mubr.f32.mxu1 %v7145_v22 }
 0x30c   :  { %4024 = vmatmul.mubr.msk.f32.gmra.mrb[96].mxu1 %vm1618_vm8, %v5480_v45 }
 0x30d   :  { %2210 = vmatprep.mubr.f32.mxu1 %v7145_v22 }
 0x310   :  { %4025 = vmatmul.mubr.msk.f32.gmra.mrb[98].mxu1 %vm1618_vm8, %v5488_v25 }
 0x311   :  { %2216 = vmatprep.mubr.f32.mxu1 %v7145_v22 }
 0x314   :  { %4026 = vmatmul.mubr.msk.f32.gmra.mrb[100].mxu1 %vm1618_vm8, %v5498_v46 }
 0x315   :  { %2222 = vmatprep.mubr.f32.mxu1 %v7145_v22 }
 0x318   :  { %4027 = vmatmul.mubr.msk.f32.gmra.mrb[102].mxu1 %vm1618_vm8, %v5506_v41 }
 0x319   :  { %2228 = vmatprep.mubr.f32.mxu1 %v7145_v22 }
 0x31c   :  { %4028 = vmatmul.mubr.msk.f32.gmra.mrb[104].mxu1 %vm1618_vm8, %v5514_v18 }
 0x31d   :  { %2234 = vmatprep.mubr.f32.mxu1 %v7145_v22 }
 0x320   :  { %4029 = vmatmul.mubr.msk.f32.gmra.mrb[106].mxu1 %vm1618_vm8, %v5527_v47 }
 0x321   :  { %4238 = vmatprep.mubr.msk.f32.mxu1 %vm4600_vm9, %v7145_v22 }
 0x322   :  { %v1296_v44 = vpop.permute.xlu0 %1295 }
 0x323   :  { %v1294_v20 = vpop.permute.xlu1 %1293  ;;  %v1335_v15 = vadd.f32 %v1296_v44, %v1019_v9 }
 0x324   :  { %v1308_v48 = vsel %vm1297_vm5, %v5613_v33, %v1294_v20  ;;  %v1309_v0 = vsel %vm1297_vm5, %v1294_v20, %v1296_v44 }
 0x325   :  { %v1333_v62 = vadd.f32 %v1308_v48, %v1017_v54  ;;  %v1334_v28 = vadd.f32 %v1309_v0, %v1018_v6 }
 0x327   :  { %v1533_v26 = vpop.permute.xlu1 %1532 }
 0x328   :  { %v1456_v19 = vpop.permute.xlu0 %1455  ;;  %v1549_v60 = vsel %vm1538_vm7, %v1531_v58, %v1533_v26 }
 0x329   :  { %v1495_v49 = vadd.f32 %v1456_v19, %v1335_v15 }
 0x32b   :  { %v1454_v13 = vpop.permute.xlu1 %1453 }
 0x32c   :  { %v1468_v17 = vsel %vm1457_vm6, %v1452_v39, %v1454_v13  ;;  %v1469_v30 = vsel %vm1457_vm6, %v1454_v13, %v1456_v19  ;;  %v1535_v55 = vpop.permute.xlu0 %1534 }
 0x32d   :  { %v1493_v12 = vadd.f32 %v1468_v17, %v1333_v62  ;;  %v1494_v33 = vadd.f32 %v1469_v30, %v1334_v28  ;;  %v1550_v14 = vsel %vm1538_vm7, %v1533_v26, %v1535_v55 }
 0x32f   :  { %v1575_v29 = vadd.f32 %v1549_v60, %v1493_v12  ;;  %v1576_v32 = vadd.f32 %v1550_v14, %v1494_v33  ;;  %v1537_v42 = vpop.permute.xlu1 %1536 }
 0x330   :  { %v1551_v40 = vsel %vm1538_vm7, %v1535_v55, %v1537_v42 }
 0x331   :  { %v1577_v43 = vadd.f32 %v1551_v40, %v1495_v49  ;;  %v1594_v16 = vadd.f32 %v5323_v50, %v1576_v32  ;;  %v1593_v63 = vadd.f32 %v5323_v50, %v1575_v29 }
 0x333   :  { %v1595_v52 = vadd.f32 %v5323_v50, %v1577_v43  ;;  %v1607_v38 = vmax.f32 %v1594_v16, 0.0  ;;  %v1606_v56 = vmax.f32 %v1593_v63, 0.0 }
 0x335   :  { %v1608_v3 = vmax.f32 %v1595_v52, 0.0  ;;  %2241 = vmatprep.subr.mxu0 %v1607_v38 }
 0x336   :  { %2242 = vmatpush1.msra.mxu0 %v1606_v56 }
 0x337   :  { %4030 = vmatmul.mubr.msk.f32.vlgmr.msra.gmra.mrb[108].mxu0 %vm1618_vm8, %v5450_v10  ;;  %4237 = vmatpush3.msra.mxu1 %v1608_v3 }
 0x338   :  { %2311 = vmatprep.mubr.f32.mxu0 %v7145_v22  ;;  %4239 = vmatmul.mubr.msk.f32.vlgmr.msra.gmra.mrb[108].mxu1 %vm1618_vm8, %v5450_v10 }
 0x339   :  { %4241 = vmatprep.mubr.msk.f32.mxu1 %vm4600_vm9, %v7145_v22 }
 0x33b   :  { %4031 = vmatmul.mubr.msk.f32.gmra.mrb[110].mxu0 %vm1618_vm8, %v5460_v53 }
 0x33c   :  { %2317 = vmatprep.mubr.f32.mxu0 %v7145_v22  ;;  %4242 = vmatmul.mubr.msk.f32.gmra.mrb[110].mxu1 %vm1618_vm8, %v5460_v53 }
 0x33d   :  { %4244 = vmatprep.mubr.msk.f32.mxu1 %vm4600_vm9, %v7145_v22 }
 0x33f   :  { %4032 = vmatmul.mubr.msk.f32.gmra.mrb[112].mxu0 %vm1618_vm8, %v5472_v35 }
 0x340   :  { %2323 = vmatprep.mubr.f32.mxu0 %v7145_v22  ;;  %4245 = vmatmul.mubr.msk.f32.gmra.mrb[112].mxu1 %vm1618_vm8, %v5472_v35 }
 0x341   :  { %4247 = vmatprep.mubr.msk.f32.mxu1 %vm4600_vm9, %v7145_v22 }
 0x343   :  { %4033 = vmatmul.mubr.msk.f32.gmra.mrb[114].mxu0 %vm1618_vm8, %v5480_v45 }
 0x344   :  { %2329 = vmatprep.mubr.f32.mxu0 %v7145_v22  ;;  %4248 = vmatmul.mubr.msk.f32.gmra.mrb[114].mxu1 %vm1618_vm8, %v5480_v45 }
 0x345   :  { %4250 = vmatprep.mubr.msk.f32.mxu1 %vm4600_vm9, %v7145_v22 }
 0x347   :  { %4034 = vmatmul.mubr.msk.f32.gmra.mrb[116].mxu0 %vm1618_vm8, %v5488_v25 }
 0x348   :  { %2335 = vmatprep.mubr.f32.mxu0 %v7145_v22  ;;  %4251 = vmatmul.mubr.msk.f32.gmra.mrb[116].mxu1 %vm1618_vm8, %v5488_v25 }
 0x349   :  { %4253 = vmatprep.mubr.msk.f32.mxu1 %vm4600_vm9, %v7145_v22 }
 0x34b   :  { %4035 = vmatmul.mubr.msk.f32.gmra.mrb[118].mxu0 %vm1618_vm8, %v5498_v46 }
 0x34c   :  { %2341 = vmatprep.mubr.f32.mxu0 %v7145_v22  ;;  %4254 = vmatmul.mubr.msk.f32.gmra.mrb[118].mxu1 %vm1618_vm8, %v5498_v46 }
 0x34d   :  { %4256 = vmatprep.mubr.msk.f32.mxu1 %vm4600_vm9, %v7145_v22 }
 0x34f   :  { %4036 = vmatmul.mubr.msk.f32.gmra.mrb[120].mxu0 %vm1618_vm8, %v5506_v41 }
 0x350   :  { %2347 = vmatprep.mubr.f32.mxu0 %v7145_v22  ;;  %4257 = vmatmul.mubr.msk.f32.gmra.mrb[120].mxu1 %vm1618_vm8, %v5506_v41 }
 0x351   :  { %4259 = vmatprep.mubr.msk.f32.mxu1 %vm4600_vm9, %v7145_v22 }
 0x353   :  { %4037 = vmatmul.mubr.msk.f32.gmra.mrb[122].mxu0 %vm1618_vm8, %v5514_v18 }
 0x354   :  { %4260 = vmatmul.mubr.msk.f32.gmra.mrb[122].mxu1 %vm1618_vm8, %v5514_v18  ;;  %2353 = vmatprep.mubr.f32.mxu0 %v7145_v22 }
 0x355   :  { %4262 = vmatprep.mubr.msk.f32.mxu1 %vm4600_vm9, %v7145_v22 }
 0x357   :  { %v5821_v50 = vpop.f32.mrb[54].mxu1  ;;  %4038 = vmatmul.mubr.msk.f32.gmra.mrb[124].mxu0 %vm1618_vm8, %v5527_v47 }
 0x358   :  { %v5825_v10 = vpop.f32.mrb[55].mxu1  ;;  %4263 = vmatmul.mubr.msk.f32.gmra.mrb[124].mxu1 %vm1618_vm8, %v5527_v47 }
 0x35b   :  { %v5829_v53 = vpop.f32.mrb[56].mxu1 }
 0x35c   :  { %v5831_v35 = vpop.f32.mrb[57].mxu1 }
 0x35f   :  { %v5833_v45 = vpop.f32.mrb[58].mxu1 }
 0x360   :  { %v5835_v25 = vpop.f32.mrb[59].mxu1 }
 0x363   :  { %v1730_v46 = vpop.f32.mrb[60].mxu1 }
 0x364   :  { %2561 = vrot.lane.b32.xlu1 %v1730_v46, %s4594_s1  ;;  %v1732_v41 = vpop.f32.mrb[61].mxu1 }
 0x367   :  { %v5838_v18 = vpop.f32.mrb[62].mxu1 }
 0x368   :  { %7162 = vst [vmem:[#allocation39_spill] sm:$0xff] %v5838_v18  ;;  %2563 = vrot.lane.b32.xlu1 %v1732_v41, %s4594_s1  ;;  %v5841_v23 = vpop.f32.mrb[63].mxu1 }
 0x369   :  { %7163 = vst [vmem:[#allocation21_spill] sm:$0xff] %v5841_v23 }
 0x36b   :  { %v1742_v39 = vpop.f32.mrb[64].mxu1 }
 0x36c   :  { %v1744_v47 = vpop.f32.mrb[65].mxu1 }
 0x36f   :  { %v5843_v51 = vpop.f32.mrb[66].mxu1 }
 0x370   :  { %v5845_v1 = vpop.f32.mrb[67].mxu1 }
 0x373   :  { %v1754_v31 = vpop.f32.mrb[68].mxu1 }
 0x374   :  { %v1756_v4 = vpop.f32.mrb[69].mxu1 }
 0x377   :  { %v5847_v34 = vpop.f32.mrb[70].mxu1 }
 0x378   :  { %v5849_v58 = vpop.f32.mrb[71].mxu1 }
 0x384   :  { %v5851_v2 = vpop.f32.mrb[72].mxu0 }
 0x385   :  { %v5853_v5 = vpop.f32.mrb[73].mxu0 }
 0x388   :  { %v5855_v57 = vpop.f32.mrb[74].mxu0 }
 0x389   :  { %v5857_v8 = vpop.f32.mrb[75].mxu0 }
 0x38a   :  { %v5859_v7 = vpop.f32.mrb[72].mxu1 }
 0x38b   :  { %7164 = vst [vmem:[#allocation13_spill] sm:$0xff] %v5859_v7  ;;  %v5861_v36 = vpop.f32.mrb[73].mxu1 }
 0x38c   :  { %7165 = vst [vmem:[#allocation22_spill] sm:$0xff] %v5861_v36  ;;  %v5863_v59 = vpop.f32.mrb[76].mxu0 }
 0x38d   :  { %v5865_v21 = vpop.f32.mrb[77].mxu0 }
 0x38e   :  { %v5867_v44 = vpop.f32.mrb[74].mxu1 }
 0x38f   :  { %v5869_v20 = vpop.f32.mrb[75].mxu1 }
 0x390   :  { %v1849_v24 = vpop.f32.mrb[78].mxu0 }
 0x391   :  { %2565 = vrot.lane.b32.xlu0 %v1849_v24, %s4594_s1  ;;  %v1851_v61 = vpop.f32.mrb[79].mxu0 }
 0x392   :  { %2567 = vrot.lane.b32.xlu1 %v1851_v61, %s4594_s1  ;;  %v5873_v26 = vpop.f32.mrb[76].mxu1 }
 0x393   :  { %v5875_v48 = vpop.f32.mrb[77].mxu1 }
 0x394   :  { %v5877_v0 = vpop.f32.mrb[80].mxu0 }
 0x395   :  { %7166 = vst [vmem:[#allocation23_spill] sm:$0xff] %v5877_v0  ;;  %2638 = vrot.lane.b32.xlu0 %v1742_v39, %s4593_s0  ;;  %v5880_v19 = vpop.f32.mrb[81].mxu0 }
 0x396   :  { %7167 = vst [vmem:[#allocation25_spill] sm:$0xff] %v5880_v19  ;;  %v1968_v37 = vpop.f32.mrb[78].mxu1 }
 0x397   :  { %v1970_v54 = vpop.f32.mrb[79].mxu1 }
 0x398   :  { %v1861_v11 = vpop.f32.mrb[82].mxu0 }
 0x399   :  { %2640 = vrot.lane.b32.xlu0 %v1744_v47, %s4593_s0  ;;  %2642 = vrot.lane.b32.xlu1 %v1861_v11, %s4593_s0  ;;  %v1863_v6 = vpop.f32.mrb[83].mxu0 }
 0x39a   :  { %v5884_v27 = vpop.f32.mrb[80].mxu1 }
 0x39b   :  { %7168 = vst [vmem:[#allocation14_spill] sm:$0xff] %v5884_v27  ;;  %v5886_v9 = vpop.f32.mrb[81].mxu1 }
 0x39c   :  { %7169 = vst [vmem:[#allocation26_spill] sm:$0xff] %v5886_v9  ;;  %v5888_v62 = vpop.f32.mrb[84].mxu0 }
 0x39d   :  { %2644 = vrot.lane.b32.xlu0 %v1863_v6, %s4593_s0  ;;  %v5891_v28 = vpop.f32.mrb[85].mxu0 }
 0x39e   :  { %v1980_v13 = vpop.f32.mrb[82].mxu1 }
 0x39f   :  { %v1982_v17 = vpop.f32.mrb[83].mxu1 }
 0x3a0   :  { %v1873_v30 = vpop.f32.mrb[86].mxu0 }
 0x3a1   :  { %2715 = vrot.lane.b32.xlu0 %v1754_v31, %s4593_s0  ;;  %2719 = vrot.lane.b32.xlu1 %v1873_v30, %s4593_s0  ;;  %v1875_v55 = vpop.f32.mrb[87].mxu0 }
 0x3a2   :  { %v5895_v15 = vpop.f32.mrb[84].mxu1 }
 0x3a3   :  { %v5897_v12 = vpop.f32.mrb[85].mxu1 }
 0x3a4   :  { %v5899_v33 = vpop.f32.mrb[88].mxu0 }
 0x3a5   :  { %2717 = vrot.lane.b32.xlu0 %v1756_v4, %s4593_s0  ;;  %2571 = vrot.lane.b32.xlu1 %v1970_v54, %s4594_s1  ;;  %v5903_v60 = vpop.f32.mrb[89].mxu0 }
 0x3a6   :  { %v1992_v14 = vpop.f32.mrb[86].mxu1 }
 0x3a7   :  { %v1994_v49 = vpop.f32.mrb[87].mxu1 }
 0x3a8   :  { %v5905_v29 = vpop.f32.mrb[90].mxu0 }
 0x3a9   :  { %7170 = vst [vmem:[#allocation27_spill] sm:$0xff] %v5905_v29  ;;  %2646 = vrot.lane.b32.xlu1 %v1980_v13, %s4593_s0  ;;  %2721 = vrot.lane.b32.xlu0 %v1875_v55, %s4593_s0  ;;  %v5909_v32 = vpop.f32.mrb[91].mxu0 }
 0x3aa   :  { %7171 = vst [vmem:[#allocation15_spill] sm:$0xff] %v5909_v32  ;;  %v5911_v42 = vpop.f32.mrb[88].mxu1 }
 0x3ab   :  { %v5913_v40 = vpop.f32.mrb[89].mxu1 }
 0x3ac   :  { %v5915_v43 = vpop.f32.mrb[92].mxu0 }
 0x3ad   :  { %2723 = vrot.lane.b32.xlu1 %v1992_v14, %s4593_s0  ;;  %2569 = vrot.lane.b32.xlu0 %v1968_v37, %s4594_s1  ;;  %v5919_v16 = vpop.f32.mrb[93].mxu0 }
 0x3b0   :  { %v5921_v63 = vpop.f32.mrb[94].mxu0 }
 0x3b1   :  { %2648 = vrot.lane.b32.xlu0 %v1982_v17, %s4593_s0  ;;  %v5924_v52 = vpop.f32.mrb[95].mxu0 }
 0x3b2   :  { %7172 = vst [vmem:[#allocation29_spill] sm:$0xff] %v5924_v52 }
 0x3b4   :  { %v2087_v38 = vpop.f32.mrb[96].mxu0 }
 0x3b5   :  { %2725 = vrot.lane.b32.xlu0 %v1994_v49, %s4593_s0  ;;  %v2089_v56 = vpop.f32.mrb[97].mxu0 }
 0x3b8   :  { %v5927_v3 = vpop.f32.mrb[98].mxu0 }
 0x3b9   :  { %7173 = vst [vmem:[#allocation33_spill] sm:$0xff] %v5927_v3  ;;  %v5929_v46 = vpop.f32.mrb[99].mxu0  ;;  %2575 = vrot.lane.b32.xlu0 %v2089_v56, %s4594_s1 }
 0x3ba   :  { %7174 = vst [vmem:[#allocation16_spill] sm:$0xff] %v5929_v46 }
 0x3bc   :  { %v2099_v41 = vpop.f32.mrb[100].mxu0 }
 0x3bd   :  { %v2101_v39 = vpop.f32.mrb[101].mxu0 }
 0x3c0   :  { %v5932_v47 = vpop.f32.mrb[102].mxu0 }
 0x3c1   :  { %v5934_v31 = vpop.f32.mrb[103].mxu0 }
 0x3c4   :  { %v2111_v4 = vpop.f32.mrb[104].mxu0 }
 0x3c5   :  { %2727 = vrot.lane.b32.xlu1 %v2111_v4, %s4593_s0  ;;  %v2113_v24 = vpop.f32.mrb[105].mxu0 }
 0x3c8   :  { %v5937_v61 = vpop.f32.mrb[106].mxu0 }
 0x3c9   :  { %2573 = vrot.lane.b32.xlu1 %v2087_v38, %s4594_s1  ;;  %v5940_v37 = vpop.f32.mrb[107].mxu0 }
 0x3ca   :  { %7175 = vst [vmem:[#allocation31_spill] sm:$0xff] %v5940_v37 }
 0x3cd   :  { %2729 = vrot.lane.b32.xlu1 %v2113_v24, %s4593_s0 }
 0x3d1   :  { %2650 = vrot.lane.b32.xlu1 %v2099_v41, %s4593_s0 }
 0x3d3   :  { %v5944_v54 = vpop.f32.mrb[90].mxu1 }
 0x3d4   :  { %7176 = vst [vmem:[#allocation34_spill] sm:$0xff] %v5944_v54  ;;  %v5946_v11 = vpop.f32.mrb[91].mxu1 }
 0x3d5   :  { %7177 = vst [vmem:[#allocation24_spill] sm:$0xff] %v5946_v11 }
 0x3d7   :  { %v5948_v6 = vpop.f32.mrb[92].mxu1 }
 0x3d8   :  { %7178 = vst [vmem:[#allocation5_spill] sm:$0xff] %v5948_v6  ;;  %v5950_v13 = vpop.f32.mrb[93].mxu1 }
 0x3d9   :  { %7179 = vst [vmem:[#allocation7_spill] sm:$0xff] %v5950_v13 }
 0x3db   :  { %v5952_v17 = vpop.f32.mrb[94].mxu1 }
 0x3dc   :  { %7180 = vst [vmem:[#allocation30_spill] sm:$0xff] %v5952_v17  ;;  %v5954_v30 = vpop.f32.mrb[95].mxu1 }
 0x3dd   :  { %7181 = vst [vmem:[#allocation36_spill] sm:$0xff] %v5954_v30 }
 0x3df   :  { %v2206_v55 = vpop.f32.mrb[96].mxu1 }
 0x3e0   :  { %2577 = vrot.lane.b32.xlu1 %v2206_v55, %s4594_s1  ;;  %v2208_v14 = vpop.f32.mrb[97].mxu1 }
 0x3e3   :  { %v5957_v49 = vpop.f32.mrb[98].mxu1 }
 0x3e4   :  { %v5959_v38 = vpop.f32.mrb[99].mxu1 }
 0x3e7   :  { %v2218_v56 = vpop.f32.mrb[100].mxu1 }
 0x3e8   :  { %v2220_v41 = vpop.f32.mrb[101].mxu1 }
 0x3eb   :  { %v5961_v4 = vpop.f32.mrb[102].mxu1 }
 0x3ec   :  { %v5963_v24 = vpop.f32.mrb[103].mxu1 }
 0x3ef   :  { %v2230_v22 = vpop.f32.mrb[104].mxu1 }
 0x3f0   :  { %2731 = vrot.lane.b32.xlu0 %v2230_v22, %s4593_s0  ;;  %v2232_v11 = vpop.f32.mrb[105].mxu1 }
 0x3f3   :  { %v5966_v54 = vpop.f32.mrb[106].mxu1 }
 0x3f4   :  { %7182 = vst [vmem:[#allocation6_spill] sm:$0xff] %v5966_v54  ;;  %2652 = vrot.lane.b32.xlu0 %v2101_v39, %s4593_s0  ;;  %v5969_v55 = vpop.f32.mrb[107].mxu1 }
 0x3f5   :  { %7183 = vst [vmem:[#allocation8_spill] sm:$0xff] %v5969_v55  ;;  %v5987_v55 = vpop.permute.xlu1 %2561 }
 0x3f8   :  { %2654 = vrot.lane.b32.xlu0 %v2218_v56, %s4593_s0 }
 0x3fc   :  { %2579 = vrot.lane.b32.xlu0 %v2208_v14, %s4594_s1 }
 0x403   :  { %v5973_v32 = vpop.permute.xlu0 %2565 }
 0x407   :  { %v5977_v46 = vpop.permute.xlu0 %2638 }
 0x408   :  { %7185 = vst [vmem:[#allocation11_spill] sm:$0xff] %v5977_v46 }
 0x40a   :  { %v5975_v29 = vpop.f32.mrb[108].mxu0 }
 0x40b   :  { %7184 = vst [vmem:[#allocation9_spill] sm:$0xff] %v5975_v29  ;;  %v5979_v37 = vpop.f32.mrb[109].mxu0  ;;  %v5981_v22 = vpop.f32.mrb[108].mxu1 }
 0x40c   :  { %7186 = vst [vmem:[#allocation37_spill] sm:$0xff] %v5979_v37  ;;  %7187 = vst [vmem:[#allocation28_spill] sm:$0xff] %v5981_v22  ;;  %v4240_v36 = vpop.f32.mrb[109].mxu1  ;;  %v5991_v14 = vpop.permute.xlu0 %2640 }
 0x40d   :  { %v5999_v22 = vpop.permute.xlu1 %2563 }
 0x40e   :  { %v5983_v17 = vpop.f32.mrb[110].mxu0 }
 0x40f   :  { %7188 = vst [vmem:[#allocation38_spill] sm:$0xff] %v5983_v17  ;;  %v5985_v39 = vpop.f32.mrb[111].mxu0  ;;  %v5989_v56 = vpop.f32.mrb[110].mxu1 }
 0x410   :  { %7189 = vst [vmem:[#allocation32_spill] sm:$0xff] %v5985_v39  ;;  %7190 = vst [vmem:[#allocation10_spill] sm:$0xff] %v5989_v56  ;;  %v4243_v13 = vpop.f32.mrb[111].mxu1  ;;  %v6001_v54 = vpop.permute.xlu0 %2644 }
 0x411   :  { %7193 = vst [vmem:[#allocation19_spill] sm:$0xff] %v6001_v54  ;;  %v6005_v13 = vpop.permute.xlu1 %2567 }
 0x412   :  { %v5993_v7 = vpop.f32.mrb[112].mxu0 }
 0x413   :  { %7191 = vst [vmem:[#allocation12_spill] sm:$0xff] %v5993_v7  ;;  %v5995_v29 = vpop.f32.mrb[113].mxu0  ;;  %v5997_v3 = vpop.f32.mrb[112].mxu1 }
 0x414   :  { %7192 = vst [vmem:[#allocation17_spill] sm:$0xff] %v5995_v29  ;;  %v4246_v37 = vpop.f32.mrb[113].mxu1 }
 0x415   :  { %v2716_v37 = vpop.permute.xlu0 %2715  ;;  %v6014_v9 = vpop.permute.xlu1 %2642 }
 0x416   :  { %v2325_v36 = vpop.f32.mrb[114].mxu0  ;;  %7194 = vst [vmem:[#allocation18_spill] sm:$0xff] %v6014_v9 }
 0x417   :  { %2581 = vrot.lane.b32.xlu1 %v2325_v36, %s4594_s1  ;;  %v2327_v39 = vpop.f32.mrb[115].mxu0  ;;  %v2441_v30 = vpop.f32.mrb[114].mxu1 }
 0x418   :  { %2583 = vrot.lane.b32.xlu0 %v2327_v39, %s4594_s1  ;;  %v4249_v56 = vpop.f32.mrb[115].mxu1 }
 0x419   :  { %v2720_v19 = vpop.permute.xlu1 %2719  ;;  %v2718_v23 = vpop.permute.xlu0 %2717 }
 0x41a   :  { %v6007_v7 = vpop.f32.mrb[116].mxu0 }
 0x41b   :  { %v6009_v29 = vpop.f32.mrb[117].mxu0  ;;  %v6011_v17 = vpop.f32.mrb[116].mxu1 }
 0x41c   :  { %2656 = vrot.lane.b32.xlu0 %v2220_v41, %s4593_s0  ;;  %v4252_v6 = vpop.f32.mrb[117].mxu1 }
 0x41d   :  { %v6026_v18 = vpop.permute.xlu1 %2571 }
 0x41e   :  { %v2337_v36 = vpop.f32.mrb[118].mxu0 }
 0x41f   :  { %2658 = vrot.lane.b32.xlu1 %v2337_v36, %s4593_s0  ;;  %v2339_v27 = vpop.f32.mrb[119].mxu0  ;;  %v2451_v39 = vpop.f32.mrb[118].mxu1 }
 0x420   :  { %2660 = vrot.lane.b32.xlu0 %v2339_v27, %s4593_s0  ;;  %v4255_v56 = vpop.f32.mrb[119].mxu1 }
 0x421   :  { %v2722_v56 = vpop.permute.xlu0 %2721 }
 0x422   :  { %v6018_v0 = vpop.f32.mrb[120].mxu0 }
 0x423   :  { %2733 = vrot.lane.b32.xlu1 %v2232_v11, %s4593_s0  ;;  %v6021_v54 = vpop.f32.mrb[121].mxu0  ;;  %v6023_v41 = vpop.f32.mrb[120].mxu1 }
 0x424   :  { %v4258_v6 = vpop.f32.mrb[121].mxu1  ;;  %v6031_v11 = vpop.permute.xlu1 %2646 }
 0x425   :  { %v2570_v46 = vpop.permute.xlu0 %2569  ;;  %v2741_v6 = vsel %vm981_vm2, %v2716_v37, %v2718_v23 }
 0x426   :  { %v2349_v9 = vpop.f32.mrb[122].mxu0 }
 0x427   :  { %2735 = vrot.lane.b32.xlu0 %v2349_v9, %s4593_s0  ;;  %v2351_v36 = vpop.f32.mrb[123].mxu0  ;;  %v2461_v27 = vpop.f32.mrb[122].mxu1 }
 0x428   :  { %2737 = vrot.lane.b32.xlu1 %v2351_v36, %s4593_s0  ;;  %v4261_v52 = vpop.f32.mrb[123].mxu1  ;;  %v2724_v9 = vpop.permute.xlu1 %2723  ;;  %v2742_v36 = vsel %vm981_vm2, %v2718_v23, %v2720_v19 }
 0x429   :  { %v6040_v52 = vpop.permute.xlu0 %2648 }
 0x42a   :  { %7195 = vst [vmem:[#allocation20_spill] sm:$0xff] %v6040_v52 }
 0x42b   :  { %2739 = vrot.lane.b32.xlu0 %v2461_v27, %s4593_s0 }
 0x42c   :  { %2585 = vrot.lane.b32.xlu1 %v2441_v30, %s4594_s1  ;;  %v2588_v30 = vsel %vm1059_vm3, %v5999_v22, %v5973_v32 }
 0x42d   :  { %v2726_v37 = vpop.permute.xlu0 %2725 }
 0x42e   :  { %v2745_v52 = vsel %vm981_vm2, %v2724_v9, %v2726_v37 }
 0x42f   :  { %2486 = vrot.lane.b32.xlu0 %v5831_v35, %s4593_s0 }
 0x430   :  { %2662 = vrot.lane.b32.xlu1 %v2451_v39, %s4593_s0  ;;  %v2613_v39 = vadd.f32 %v2588_v30, %v5835_v25  ;;  %v2770_v25 = vadd.f32 %v2745_v52, %v5895_v15  ;;  %v2590_v15 = vsel %vm1059_vm3, %v6005_v13, %v2570_v46  ;;  %v2589_v30 = vsel %vm1059_vm3, %v5973_v32, %v6005_v13 }
 0x433   :  { %2490 = vrot.lane.b32.xlu0 %v5857_v8, %s4593_s0  ;;  %v2766_v8 = vadd.f32 %v2741_v6, %v5843_v51  ;;  %v2744_v51 = vsel %vm981_vm2, %v2722_v56, %v2724_v9  ;;  %v2470_v9 = vld [vmem:[%s7081_s4] sm:$0xff]  ;;  %s4605_s4 = smov 108  }
 0x434   :  { %2488 = vrot.lane.b32.xlu1 %v5855_v57, %s4593_s0  ;;  %v2743_v57 = vsel %vm981_vm2, %v2720_v19, %v2722_v56  ;;  %v2769_v23 = vadd.f32 %v2744_v51, %v5891_v28  ;;  %v2615_v28 = vadd.f32 %v2590_v15, %v5865_v21 }
 0x435   :  { %v2768_v27 = vadd.f32 %v2743_v57, %v5888_v62 }
 0x437   :  { %2484 = vrot.lane.b32.xlu0 %v5829_v53, %s4593_s0  ;;  %v2728_v35 = vpop.permute.xlu1 %2727  ;;  %v2767_v53 = vadd.f32 %v2742_v36, %v5845_v1 }
 0x438   :  { %2492 = vrot.lane.b32.xlu1 %v5867_v44, %s4593_s0  ;;  %v2746_v19 = vsel %vm981_vm2, %v2726_v37, %v2728_v35 }
 0x439   :  { %v2771_v1 = vadd.f32 %v2746_v19, %v5897_v12  ;;  %v6085_v12 = vpop.permute.xlu0 %2575  ;;  %v6143_v19 = vpop.f32.mrb[124].mxu0 }
 0x43b   :  { %2869 = vrot.lane.b32.xlu0 %v2766_v8, %s4596_s10  ;;  %v6059_v44 = vpop.permute.xlu1 %2573 }
 0x43c   :  { %2794 = vrot.lane.b32.xlu1 %v2613_v39, %s4597_s11 }
 0x43f   :  { %2873 = vrot.lane.b32.xlu0 %v2768_v27, %s4596_s10  ;;  %v2730_v62 = vpop.permute.xlu1 %2729 }
 0x440   :  { %2871 = vrot.lane.b32.xlu1 %v2767_v53, %s4596_s10  ;;  %v2747_v6 = vsel %vm981_vm2, %v2728_v35, %v2730_v62  ;;  %v2587_v35 = vsel %vm1059_vm3, %v5987_v55, %v5999_v22 }
 0x441   :  { %v2772_v56 = vadd.f32 %v2747_v6, %v5932_v47 }
 0x443   :  { %2877 = vrot.lane.b32.xlu0 %v2770_v25, %s4596_s10  ;;  %v6116_v32 = vpop.permute.xlu1 %2650 }
 0x444   :  { %2875 = vrot.lane.b32.xlu1 %v2769_v23, %s4596_s10 }
 0x448   :  { %2879 = vrot.lane.b32.xlu1 %v2771_v1, %s4596_s10  ;;  %v6148_v1 = vpop.f32.mrb[125].mxu0 }
 0x44c   :  { %2881 = vrot.lane.b32.xlu1 %v2772_v56, %s4596_s10 }
 0x450   :  { %2798 = vrot.lane.b32.xlu1 %v2615_v28, %s4597_s11 }
 0x454   :  { %3089 = vperm.xlu1 %4529, %v2470_v9   ;;  %v2593_v9 = vsel %vm1059_vm3, %v6059_v44, %v6085_v12 }
 0x458   :  { %2494 = vrot.lane.b32.xlu1 %v5869_v20, %s4593_s0  ;;  %v2614_v20 = vadd.f32 %v2589_v30, %v5863_v59  ;;  %v6178_v30 = vpop.f32.mrb[124].mxu1 }
 0x45c   :  { %3027 = vrot.lane.b32.xlu1 %v5899_v33, %s4598_s14  ;;  %v2591_v33 = vsel %vm1059_vm3, %v2570_v46, %v6026_v18 }
 0x460   :  { %3031 = vrot.lane.b32.xlu1 %v5911_v42, %s4598_s14  ;;  %v2616_v42 = vadd.f32 %v2591_v33, %v5873_v26 }
 0x462   :  { %v2732_v47 = vpop.permute.xlu0 %2731 }
 0x463   :  { %v2748_v21 = vsel %vm981_vm2, %v2730_v62, %v2732_v47 }
 0x464   :  { %v2773_v52 = vadd.f32 %v2748_v21, %v5934_v31  ;;  %v2612_v31 = vadd.f32 %v2587_v35, %v5833_v45  ;;  %v6120_v45 = vpop.permute.xlu1 %2577 }
 0x466   :  { %2883 = vrot.lane.b32.xlu0 %v2773_v52, %s4596_s10  ;;  %v6110_v59 = vpop.permute.xlu0 %2652 }
 0x46a   :  { %2796 = vrot.lane.b32.xlu0 %v2614_v20, %s4597_s11  ;;  %v6114_v26 = vpop.permute.xlu0 %2654  ;;  %v4264_v20 = vpop.f32.mrb[125].mxu1 }
 0x46e   :  { %2800 = vrot.lane.b32.xlu0 %v2616_v42, %s4597_s11  ;;  %v6118_v46 = vpop.permute.xlu0 %2579 }
 0x472   :  { %2792 = vrot.lane.b32.xlu0 %v2612_v31, %s4597_s11 }
 0x476   :  { %2496 = vrot.lane.b32.xlu0 %v5915_v43, %s4593_s0 }
 0x47a   :  { %3025 = vrot.lane.b32.xlu0 %v5849_v58, %s4598_s14 }
 0x47e   :  { %3029 = vrot.lane.b32.xlu0 %v5903_v60, %s4598_s14 }
 0x489   :  { %v6124_v22 = vpop.permute.xlu1 %2581 }
 0x48a   :  { %v6122_v55 = vpop.permute.xlu0 %2583 }
 0x48e   :  { %v2657_v43 = vpop.permute.xlu0 %2656 }
 0x48f   :  { %v2672_v58 = vsel %vm981_vm2, %v6114_v26, %v2657_v43 }
 0x490   :  { %v6129_v13 = vadd.f32 %v2672_v58, %v5957_v49 }
 0x491   :  { %v2659_v60 = vpop.permute.xlu1 %2658 }
 0x492   :  { %v2673_v8 = vsel %vm981_vm2, %v2657_v43, %v2659_v60  ;;  %v2661_v57 = vpop.permute.xlu0 %2660 }
 0x493   :  { %v6133_v39 = vadd.f32 %v2673_v8, %v5959_v38  ;;  %v2674_v36 = vsel %vm981_vm2, %v2659_v60, %v2661_v57  ;;  %v7197_v8 = vld [vmem:[#allocation29_spill] sm:$0xff] }
 0x494   :  { %v6137_v37 = vadd.f32 %v2674_v36, %v6007_v7 }
 0x495   :  { %v2734_v27 = vpop.permute.xlu1 %2733 }
 0x496   :  { %v2749_v53 = vsel %vm981_vm2, %v2732_v47, %v2734_v27 }
 0x497   :  { %v2774_v51 = vadd.f32 %v2749_v53, %v5961_v4  ;;  %v7199_v53 = vld [vmem:[#allocation18_spill] sm:$0xff] }
 0x499   :  { %v2736_v25 = vpop.permute.xlu0 %2735  ;;  %2885 = vrot.lane.b32.xlu1 %v2774_v51, %s4596_s10  ;;  %v7200_v51 = vld [vmem:[#allocation19_spill] sm:$0xff] }
 0x49a   :  { %v2750_v49 = vsel %vm981_vm2, %v2734_v27, %v2736_v25  ;;  %v2738_v23 = vpop.permute.xlu1 %2737 }
 0x49b   :  { %v2775_v38 = vadd.f32 %v2750_v49, %v5963_v24  ;;  %v2751_v62 = vsel %vm981_vm2, %v2736_v25, %v2738_v23 }
 0x49c   :  { %v2776_v7 = vadd.f32 %v2751_v62, %v6018_v0  ;;  %v2592_v0 = vsel %vm1059_vm3, %v6026_v18, %v6059_v44  ;;  %v2618_v18 = vadd.f32 %v2593_v9, %v5921_v63 }
 0x49d   :  { %2887 = vrot.lane.b32.xlu0 %v2775_v38, %s4596_s10  ;;  %v2740_v6 = vpop.permute.xlu0 %2739  ;;  %v2617_v21 = vadd.f32 %v2592_v0, %v5875_v48  ;;  %v7201_v38 = vld [vmem:[#allocation21_spill] sm:$0xff]  ;;  %v7203_v0 = vld [vmem:[#allocation20_spill] sm:$0xff] }
 0x49e   :  { %v2752_v4 = vsel %vm981_vm2, %v2738_v23, %v2740_v6  ;;  %2889 = vrot.lane.b32.xlu1 %v2776_v7, %s4596_s10  ;;  %v6153_v56 = vpop.permute.xlu1 %2585  ;;  %v2778_v28 = vadd.f32 %v2740_v6, %v6023_v41  ;;  %v7202_v7 = vld [vmem:[#allocation23_spill] sm:$0xff] }
 0x49f   :  { %v2777_v15 = vadd.f32 %v2752_v4, %v6021_v54  ;;  %v6158_v24 = vadd.f32 %v6153_v56, %v5997_v3 }
 0x4a1   :  { %v2487_v47 = vpop.permute.xlu0 %2486  ;;  %2891 = vrot.lane.b32.xlu0 %v2777_v15, %s4596_s10 }
 0x4a2   :  { %2893 = vrot.lane.b32.xlu1 %v2778_v28, %s4596_s10  ;;  %v2663_v54 = vpop.permute.xlu1 %2662  ;;  %v2668_v28 = vsel %vm981_vm2, %v6031_v11, %v7203_v0  ;;  %s4606_s10 = smov 88  }
 0x4a3   :  { %v2675_v3 = vsel %vm981_vm2, %v2661_v57, %v2663_v54  ;;  %v6172_v52 = vadd.f32 %v2663_v54, %v6011_v17 }
 0x4a4   :  { %v6176_v41 = vadd.f32 %v2675_v3, %v6009_v29  ;;  %v7204_v3 = vld [vmem:[#allocation25_spill] sm:$0xff] }
 0x4a5   :  { %v2491_v44 = vpop.permute.xlu0 %2490  ;;  %2802 = vrot.lane.b32.xlu0 %v2617_v21, %s4597_s11 }
 0x4a6   :  { %2804 = vrot.lane.b32.xlu1 %v2618_v18, %s4597_s11  ;;  %v2489_v33 = vpop.permute.xlu1 %2488 }
 0x4a7   :  { %v2511_v48 = vsel %vm981_vm2, %v2487_v47, %v2489_v33  ;;  %v2512_v42 = vsel %vm981_vm2, %v2489_v33, %v2491_v44 }
 0x4a8   :  { %v6185_v17 = vadd.f32 %v2511_v48, %v5825_v10  ;;  %v6188_v63 = vadd.f32 %v2512_v42, %v5851_v2  ;;  %v2594_v10 = vsel %vm1059_vm3, %v6085_v12, %v6120_v45  ;;  %v2669_v48 = vsel %vm981_vm2, %v7203_v0, %v6116_v32 }
 0x4a9   :  { %v2485_v29 = vpop.permute.xlu0 %2484  ;;  %3023 = vrot.lane.b32.xlu0 %v5847_v34, %s4598_s14  ;;  %v2619_v57 = vadd.f32 %v2594_v10, %v7197_v8  ;;  %v2596_v8 = vsel %vm1059_vm3, %v6118_v46, %v6124_v22 }
 0x4aa   :  { %v2510_v35 = vsel %vm981_vm2, %v2485_v29, %v2487_v47  ;;  %3033 = vrot.lane.b32.xlu1 %v5913_v40, %s4598_s14  ;;  %v2493_v31 = vpop.permute.xlu1 %2492 }
 0x4ab   :  { %v6196_v43 = vadd.f32 %v2510_v35, %v5821_v50  ;;  %v2513_v58 = vsel %vm981_vm2, %v2491_v44, %v2493_v31  ;;  %v7196_v50 = vld [vmem:[#allocation11_spill] sm:$0xff]  ;;  %v7205_v44 = vld [vmem:[#allocation14_spill] sm:$0xff] }
 0x4ac   :  { %v6203_v2 = vadd.f32 %v2513_v58, %v5853_v5  ;;  %v2664_v40 = vsel %vm981_vm2, %v7196_v50, %v5991_v14  ;;  %v7198_v5 = vld [vmem:[#allocation39_spill] sm:$0xff]  ;;  %v2693_v20 = vadd.f32 %v2668_v28, %v7205_v44  ;;  %v7206_v35 = vld [vmem:[#allocation26_spill] sm:$0xff]  ;;  %v2597_v44 = vsel %vm1059_vm3, %v6124_v22, %v6122_v55 }
 0x4ad   :  { %v2870_v60 = vpop.permute.xlu0 %2869  ;;  %3035 = vrot.lane.b32.xlu0 %v5937_v61, %s4598_s14  ;;  %v2689_v12 = vadd.f32 %v2664_v40, %v7198_v5  ;;  %v2665_v61 = vsel %vm981_vm2, %v5991_v14, %v7199_v53  ;;  %v2667_v14 = vsel %vm981_vm2, %v7200_v51, %v6031_v11  ;;  %v2694_v58 = vadd.f32 %v2669_v48, %v7206_v35  ;;  %v7207_v40 = vld [vmem:[#allocation5_spill] sm:$0xff]  ;;  %v7218_v48 = vld [vmem:[#allocation22_spill] sm:$0xff]  ;;  %v7221_v35 = vld [vmem:[#allocation16_spill] sm:$0xff] }
 0x4ae   :  { %2498 = vrot.lane.b32.xlu1 %v5919_v16, %s4593_s0  ;;  %v6209_v34 = vpop.permute.xlu1 %2794  ;;  %v2666_v16 = vsel %vm981_vm2, %v7199_v53, %v7200_v51  ;;  %v2690_v62 = vadd.f32 %v2665_v61, %v7201_v38  ;;  %v2692_v18 = vadd.f32 %v2667_v14, %v7204_v3  ;;  %v7210_v53 = vld [vmem:[#allocation17_spill] sm:$0xff]  ;;  %v7216_v3 = vld [vmem:[#allocation30_spill] sm:$0xff] }
 0x4af   :  { %v2691_v6 = vadd.f32 %v2666_v16, %v7202_v7  ;;  %v2670_v16 = vsel %vm981_vm2, %v6116_v32, %v6110_v59  ;;  %v7213_v7 = vld [vmem:[#allocation13_spill] sm:$0xff] }
 0x4b1   :  { %v2874_v36 = vpop.permute.xlu0 %2873  ;;  %2806 = vrot.lane.b32.xlu0 %v2619_v57, %s4597_s11  ;;  %v7208_v57 = vld [vmem:[#allocation38_spill] sm:$0xff] }
 0x4b2   :  { %v2872_v27 = vpop.permute.xlu1 %2871 }
 0x4b3   :  { %v2895_v25 = vsel %vm1378_vm4, %v2870_v60, %v2872_v27  ;;  %v2896_v23 = vsel %vm1378_vm4, %v2872_v27, %v2874_v36 }
 0x4b4   :  { %v2920_v49 = vadd.f32 %v2895_v25, %v2689_v12  ;;  %v2921_v47 = vadd.f32 %v2896_v23, %v2690_v62  ;;  %v2598_v12 = vsel %vm1059_vm3, %v6122_v55, %v6153_v56  ;;  %v7211_v25 = vld [vmem:[#allocation6_spill] sm:$0xff]  ;;  %v7212_v23 = vld [vmem:[#allocation33_spill] sm:$0xff] }
 0x4b5   :  { %v2878_v4 = vpop.permute.xlu0 %2877  ;;  %v2623_v61 = vadd.f32 %v2598_v12, %v7210_v53  ;;  %v2695_v56 = vadd.f32 %v2670_v16, %v7212_v23 }
 0x4b6   :  { %2946 = vrot.lane.b32.xlu1 %v2920_v49, %s4599_s2  ;;  %v2876_v15 = vpop.permute.xlu1 %2875 }
 0x4b7   :  { %v2897_v9 = vsel %vm1378_vm4, %v2874_v36, %v2876_v15  ;;  %v2898_v21 = vsel %vm1378_vm4, %v2876_v15, %v2878_v4  ;;  %v7209_v36 = vld [vmem:[#allocation36_spill] sm:$0xff] }
 0x4b8   :  { %v2922_v54 = vadd.f32 %v2897_v9, %v2691_v6  ;;  %v2923_v42 = vadd.f32 %v2898_v21, %v2692_v18  ;;  %v2621_v5 = vadd.f32 %v2596_v8, %v7209_v36  ;;  %v2595_v9 = vsel %vm1059_vm3, %v6120_v45, %v6118_v46  ;;  %v7217_v45 = vld [vmem:[#allocation12_spill] sm:$0xff] }
 0x4b9   :  { %v2620_v18 = vadd.f32 %v2595_v9, %v7216_v3 }
 0x4ba   :  { %2948 = vrot.lane.b32.xlu1 %v2921_v47, %s4599_s2  ;;  %2950 = vrot.lane.b32.xlu0 %v2922_v54, %s4599_s2  ;;  %v2880_v33 = vpop.permute.xlu1 %2879  ;;  %v7215_v54 = vld [vmem:[#allocation32_spill] sm:$0xff] }
 0x4bb   :  { %v2899_v11 = vsel %vm1378_vm4, %v2878_v4, %v2880_v33 }
 0x4bc   :  { %v2924_v29 = vadd.f32 %v2899_v11, %v2693_v20 }
 0x4be   :  { %2952 = vrot.lane.b32.xlu1 %v2923_v42, %s4599_s2  ;;  %2954 = vrot.lane.b32.xlu0 %v2924_v29, %s4599_s2  ;;  %v2882_v10 = vpop.permute.xlu1 %2881  ;;  %v2671_v29 = vsel %vm981_vm2, %v6110_v59, %v6114_v26 }
 0x4bf   :  { %v2900_v60 = vsel %vm1378_vm4, %v2880_v33, %v2882_v10  ;;  %v2622_v33 = vadd.f32 %v2597_v44, %v7217_v45 }
 0x4c0   :  { %v2925_v50 = vadd.f32 %v2900_v60, %v2694_v58  ;;  %v2696_v58 = vadd.f32 %v2671_v29, %v7221_v35 }
 0x4c2   :  { %2956 = vrot.lane.b32.xlu1 %v2925_v50, %s4599_s2  ;;  %v6261_v27 = vpop.permute.xlu1 %2798 }
 0x4c6   :  { %2500 = vrot.lane.b32.xlu1 %v7207_v40, %s4593_s0 }
 0x4ca   :  { %2504 = vrot.lane.b32.xlu1 %v7208_v57, %s4593_s0 }
 0x4ce   :  { %2810 = vrot.lane.b32.xlu1 %v2621_v5, %s4597_s11 }
 0x4d2   :  { %2814 = vrot.lane.b32.xlu1 %v2623_v61, %s4597_s11 }
 0x4d3   :  { %v6265_v51 = vpop.permute.xlu1 %3089 }
 0x4d6   :  { %3039 = vrot.lane.b32.xlu1 %v7211_v25, %s4598_s14 }
 0x4d7   :  { %v2495_v49 = vpop.permute.xlu1 %2494 }
 0x4d8   :  { %v2514_v38 = vsel %vm981_vm2, %v2493_v31, %v2495_v49  ;;  %v2884_v62 = vpop.permute.xlu0 %2883  ;;  %v7214_v31 = vld [vmem:[#allocation7_spill] sm:$0xff] }
 0x4d9   :  { %v6275_v6 = vadd.f32 %v2514_v38, %v7213_v7  ;;  %v2901_v4 = vsel %vm1378_vm4, %v2882_v10, %v2884_v62 }
 0x4da   :  { %v2926_v15 = vadd.f32 %v2901_v4, %v2695_v56  ;;  %v7223_v4 = vld [vmem:[#allocation27_spill] sm:$0xff] }
 0x4db   :  { %v6314_v42 = vpop.permute.xlu1 %3027 }
 0x4dc   :  { %v6278_v14 = vpop.permute.xlu0 %2796  ;;  %2958 = vrot.lane.b32.xlu0 %v2926_v15, %s4599_s2 }
 0x4dd   :  { %v2819_v32 = vsel %vm1297_vm5, %v6209_v34, %v6278_v14  ;;  %v2820_v9 = vsel %vm1297_vm5, %v6278_v14, %v6261_v27 }
 0x4de   :  { %v6285_v0 = vadd.f32 %v2819_v32, %v6185_v17 }
 0x4df   :  { %v6316_v22 = vpop.permute.xlu1 %3031 }
 0x4e0   :  { %v6287_v28 = vpop.permute.xlu0 %2800  ;;  %2502 = vrot.lane.b32.xlu0 %v7214_v31, %s4593_s0 }
 0x4e4   :  { %v2793_v47 = vpop.permute.xlu0 %2792  ;;  %2506 = vrot.lane.b32.xlu0 %v7215_v54, %s4593_s0 }
 0x4e5   :  { %v2818_v21 = vsel %vm1297_vm5, %v2793_v47, %v6209_v34  ;;  %v7219_v34 = vld [vmem:[#allocation31_spill] sm:$0xff]  ;;  %v2821_v47 = vsel %vm1297_vm5, %v6261_v27, %v6287_v28 }
 0x4e6   :  { %v2843_v17 = vadd.f32 %v2818_v21, %v6196_v43  ;;  %v7220_v43 = vld [vmem:[#allocation8_spill] sm:$0xff]  ;;  %v2846_v14 = vadd.f32 %v2821_v47, %v6203_v2 }
 0x4e8   :  { %v2497_v20 = vpop.permute.xlu0 %2496  ;;  %2808 = vrot.lane.b32.xlu0 %v2620_v18, %s4597_s11 }
 0x4e9   :  { %v2515_v46 = vsel %vm981_vm2, %v2495_v49, %v2497_v20 }
 0x4ea   :  { %v6307_v11 = vadd.f32 %v2515_v46, %v7218_v48 }
 0x4ec   :  { %2812 = vrot.lane.b32.xlu0 %v2622_v33, %s4597_s11  ;;  %v3026_v55 = vpop.permute.xlu0 %3025 }
 0x4ed   :  { %v3050_v18 = vsel %vm1538_vm7, %v3026_v55, %v6314_v42 }
 0x4f0   :  { %3037 = vrot.lane.b32.xlu0 %v7219_v34, %s4598_s14  ;;  %v6322_v10 = vpop.permute.xlu0 %3029 }
 0x4f1   :  { %v3052_v2 = vsel %vm1538_vm7, %v6322_v10, %v6316_v22 }
 0x4f4   :  { %3041 = vrot.lane.b32.xlu0 %v7220_v43, %s4598_s14 }
 0x50b   :  { %v2886_v60 = vpop.permute.xlu1 %2885 }
 0x50c   :  { %v2902_v50 = vsel %vm1378_vm4, %v2884_v62, %v2886_v60 }
 0x50d   :  { %v2927_v40 = vadd.f32 %v2902_v50, %v2696_v58 }
 0x50f   :  { %v2888_v8 = vpop.permute.xlu0 %2887  ;;  %2960 = vrot.lane.b32.xlu1 %v2927_v40, %s4599_s2 }
 0x510   :  { %v2903_v57 = vsel %vm1378_vm4, %v2886_v60, %v2888_v8  ;;  %v2890_v36 = vpop.permute.xlu1 %2889 }
 0x511   :  { %v2928_v5 = vadd.f32 %v2903_v57, %v6129_v13  ;;  %v2904_v12 = vsel %vm1378_vm4, %v2888_v8, %v2890_v36 }
 0x512   :  { %v2929_v59 = vadd.f32 %v2904_v12, %v6133_v39 }
 0x513   :  { %v2892_v26 = vpop.permute.xlu0 %2891  ;;  %2962 = vrot.lane.b32.xlu1 %v2928_v5, %s4599_s2 }
 0x514   :  { %v2905_v53 = vsel %vm1378_vm4, %v2890_v36, %v2892_v26  ;;  %2964 = vrot.lane.b32.xlu0 %v2929_v59, %s4599_s2  ;;  %v2894_v61 = vpop.permute.xlu1 %2893 }
 0x515   :  { %v2930_v16 = vadd.f32 %v2905_v53, %v6137_v37  ;;  %v2906_v25 = vsel %vm1378_vm4, %v2892_v26, %v2894_v61  ;;  %v2932_v62 = vadd.f32 %v2894_v61, %v6172_v52  ;;  %v7224_v61 = vld [vmem:[#allocation15_spill] sm:$0xff] }
 0x516   :  { %v2931_v49 = vadd.f32 %v2906_v25, %v6176_v41  ;;  %v7222_v41 = vld [vmem:[#allocation10_spill] sm:$0xff] }
 0x517   :  { %v6336_v23 = vpop.permute.xlu0 %2802  ;;  %2966 = vrot.lane.b32.xlu1 %v2930_v16, %s4599_s2 }
 0x518   :  { %2968 = vrot.lane.b32.xlu0 %v2931_v49, %s4599_s2  ;;  %v6340_v13 = vpop.permute.xlu1 %2804  ;;  %v2822_v48 = vsel %vm1297_vm5, %v6287_v28, %v6336_v23 }
 0x519   :  { %v2847_v29 = vadd.f32 %v2822_v48, %v6275_v6 }
 0x51b   :  { %v3024_v39 = vpop.permute.xlu0 %3023  ;;  %3043 = vrot.lane.b32.xlu1 %v6143_v19, %s4598_s14 }
 0x51c   :  { %v6344_v56 = vpop.permute.xlu1 %3033  ;;  %3045 = vrot.lane.b32.xlu0 %v6148_v1, %s4598_s14  ;;  %v3049_v44 = vsel %vm1538_vm7, %v3024_v39, %v3026_v55  ;;  %v2823_v39 = vsel %vm1297_vm5, %v6336_v23, %v6340_v13 }
 0x51d   :  { %v3053_v8 = vsel %vm1538_vm7, %v6316_v22, %v6344_v56 }
 0x51f   :  { %v6348_v37 = vpop.permute.xlu0 %3035  ;;  %2508 = vrot.lane.b32.xlu1 %v7222_v41, %s4593_s0  ;;  %v2848_v41 = vadd.f32 %v2823_v39, %v6307_v11 }
 0x520   :  { %v2499_v38 = vpop.permute.xlu1 %2498  ;;  %2816 = vrot.lane.b32.xlu0 %v6158_v24, %s4597_s11 }
 0x521   :  { %v2516_v7 = vsel %vm981_vm2, %v2497_v20, %v2499_v38  ;;  %v2845_v20 = vadd.f32 %v2820_v9, %v6188_v63  ;;  %v3051_v63 = vsel %vm1538_vm7, %v6314_v42, %v6322_v10 }
 0x522   :  { %v2541_v19 = vadd.f32 %v2516_v7, %v7223_v4  ;;  %v3054_v4 = vsel %vm1538_vm7, %v6344_v56, %v6348_v37 }
 0x523   :  { %v6357_v15 = vpop.permute.xlu0 %2806  ;;  %2970 = vrot.lane.b32.xlu1 %v2932_v62, %s4599_s2 }
 0x524   :  { %v2824_v1 = vsel %vm1297_vm5, %v6340_v13, %v6357_v15  ;;  %3047 = vrot.lane.b32.xlu0 %v6178_v30, %s4598_s14  ;;  %s3900_s14 = sshll.u32 %s4607_s13, 4  ;;  %s3901_s14 = int_to_ptr.vmem [resolvable:$true] %s3900_s14 }
 0x525   :  { %v6365_v32 = vadd.f32 %v2824_v1, %v2541_v19  ;;  %s4568_s2 = scalar_lea.vmem %s3901_s14, 32  ;;  %p4573_p1 = scmp.lt.s32.totalorder %s3901_s14, %s3901_s14 }
 0x526   :  { %p4569_p0 = scmp.ne.s32.totalorder %s3901_s14, %s4568_s2  ;;  %p4574_p2 = scmp.lt.s32.totalorder %s4568_s2, %s4568_s2 }
 0x528   :  { %v2947_v24 = vpop.permute.xlu1 %2946  ;;  %p4575_p3 = por %p4574_p2, %p4573_p1 }
 0x52a   :  { %p4576_p4 = pnand %p4575_p3, %p4569_p0 }
 0x52c   :  { %v2951_v31 = vpop.permute.xlu0 %2950  ;;  %v2949_v52 = vpop.permute.xlu1 %2948 }
 0x52d   :  { %v2972_v54 = vsel %vm1457_vm6, %v2947_v24, %v2949_v52  ;;  %v2973_v21 = vsel %vm1457_vm6, %v2949_v52, %v2951_v31 }
 0x52e   :  { %v2997_v3 = vadd.f32 %v2972_v54, %v2843_v17  ;;  %v2998_v30 = vadd.f32 %v2973_v21, %v6285_v0 }
 0x530   :  { %v3074_v46 = vadd.f32 %v3049_v44, %v2997_v3  ;;  %v3075_v45 = vadd.f32 %v3050_v18, %v2998_v30  ;;  %v2955_v33 = vpop.permute.xlu0 %2954  ;;  %v2953_v27 = vpop.permute.xlu1 %2952 }
 0x531   :  { %v2974_v17 = vsel %vm1457_vm6, %v2951_v31, %v2953_v27  ;;  %v2975_v0 = vsel %vm1457_vm6, %v2953_v27, %v2955_v33 }
 0x532   :  { %v2999_v34 = vadd.f32 %v2974_v17, %v2845_v20  ;;  %v3000_v43 = vadd.f32 %v2975_v0, %v2846_v14  ;;  %v6393_v55 = vadd.f32 %v6265_v51, %v3074_v46  ;;  %v6397_v28 = vadd.f32 %v6265_v51, %v3075_v45  ;;  %v7225_v45 = vld [vmem:[#allocation34_spill] sm:$0xff] }
 0x534   :  { %v3076_v35 = vadd.f32 %v3051_v63, %v2999_v34  ;;  %v3077_v58 = vadd.f32 %v3052_v2, %v3000_v43  ;;  %v2957_v60 = vpop.permute.xlu1 %2956  ;;  %v3105_v6 = vmax.f32 %v6393_v55, 0.0  ;;  %v3106_v57 = vmax.f32 %v6397_v28, 0.0  ;;  %v3317_v28 = vld [vmem:[%s7082_s5 + $0x1c8] sm:$0xff] }
 0x535   :  { %v2976_v50 = vsel %vm1457_vm6, %v2955_v33, %v2957_v60 }
 0x536   :  { %v6401_v40 = vadd.f32 %v6265_v51, %v3076_v35  ;;  %v6404_v42 = vadd.f32 %v6265_v51, %v3077_v58  ;;  %v3001_v10 = vadd.f32 %v2976_v50, %v2847_v29 }
 0x538   :  { %v3107_v36 = vmax.f32 %v6401_v40, 0.0  ;;  %v3108_v5 = vmax.f32 %v6404_v42, 0.0  ;;  %v3078_v12 = vadd.f32 %v3053_v8, %v3001_v10  ;;  %v2501_v59 = vpop.permute.xlu1 %2500  ;;  %v3306_v42 = vld [vmem:[%s7082_s5 + $0x170] sm:$0xff] }
 0x539   :  { %v2517_v26 = vsel %vm981_vm2, %v2499_v38, %v2501_v59 }
 0x53a   :  { %v6415_v53 = vadd.f32 %v6265_v51, %v3078_v12  ;;  %v2542_v16 = vadd.f32 %v2517_v26, %v7224_v61  ;;  %v4530_v22 = vpack.i.bf16 %v3107_v36, %v3106_v57  ;;  %v4535_v25 = vpack.i.bf16 %v3105_v6, %v3108_v5  ;;  %v7227_v12 = vld [vmem:[#allocation9_spill] sm:$0xff] }
 0x53c   :  { %4531 = vrot.lane.b32.xlu1 %v4530_v22, %s4593_s0  ;;  %4536 = vrot.lane.b32.xlu0 %v4535_v25, %s4593_s0  ;;  %v3109_v49 = vmax.f32 %v6415_v53, 0.0  ;;  %v2505_v9 = vpop.permute.xlu1 %2504 }
 0x540   :  { %3139 = vrot.lane.b32.xlu1 %v3109_v49, %s4593_s0  ;;  %v2811_v56 = vpop.permute.xlu1 %2810 }
 0x544   :  { %v6451_v54 = vpop.permute.xlu1 %2814 }
 0x548   :  { %v3040_v3 = vpop.permute.xlu1 %3039 }
 0x54e   :  { %v2959_v38 = vpop.permute.xlu0 %2958 }
 0x54f   :  { %v2977_v62 = vsel %vm1457_vm6, %v2957_v60, %v2959_v38 }
 0x550   :  { %v3002_v7 = vadd.f32 %v2977_v62, %v2848_v41 }
 0x552   :  { %v3079_v19 = vadd.f32 %v3054_v4, %v3002_v7  ;;  %v2503_v1 = vpop.permute.xlu0 %2502 }
 0x553   :  { %v2518_v30 = vsel %vm981_vm2, %v2501_v59, %v2503_v1  ;;  %v2519_v17 = vsel %vm981_vm2, %v2503_v1, %v2505_v9  ;;  %v3277_v1 = vld [vmem:[%s7082_s5 + $0x88] sm:$0xff] }
 0x554   :  { %v6441_v24 = vadd.f32 %v6265_v51, %v3079_v19  ;;  %v3276_v19 = vld [vmem:[%s7082_s5 + $0x80] sm:$0xff] }
 0x556   :  { %v3110_v31 = vmax.f32 %v6441_v24, 0.0  ;;  %v6444_v52 = vpop.permute.xlu0 %2506 }
 0x557   :  { %v2520_v63 = vsel %vm981_vm2, %v2505_v9, %v6444_v52  ;;  %v6488_v9 = vpack.c.bf16 %v3277_v1, %v3276_v19  ;;  %v3268_v19 = vld [vmem:[%s7082_s5 + $0x40] sm:$0xff]  ;;  %v3269_v1 = vld [vmem:[%s7082_s5 + $0x48] sm:$0xff] }
 0x558   :  { %3141 = vrot.lane.b32.xlu0 %v3110_v31, %s4593_s0  ;;  %v2545_v59 = vadd.f32 %v2520_v63, %v7227_v12  ;;  %v3281_v63 = vld [vmem:[%s7082_s5 + $0xa8] sm:$0xff] }
 0x559   :  { %4336 = vmatprep.subr.bf16.mxu0 %v6488_v9 }
 0x55a   :  { %v2809_v11 = vpop.permute.xlu0 %2808 }
 0x55b   :  { %v2825_v23 = vsel %vm1297_vm5, %v6357_v15, %v2809_v11  ;;  %v2826_v14 = vsel %vm1297_vm5, %v2809_v11, %v2811_v56  ;;  %v2543_v15 = vadd.f32 %v2518_v30, %v7225_v45  ;;  %v3279_v45 = vld [vmem:[%s7082_s5 + $0x98] sm:$0xff] }
 0x55c   :  { %v2850_v13 = vadd.f32 %v2825_v23, %v2542_v16 }
 0x55d   :  { %v2851_v0 = vadd.f32 %v2826_v14, %v2543_v15 }
 0x55e   :  { %v2813_v47 = vpop.permute.xlu0 %2812 }
 0x55f   :  { %v2827_v29 = vsel %vm1297_vm5, %v2811_v56, %v2813_v47  ;;  %v2828_v50 = vsel %vm1297_vm5, %v2813_v47, %v6451_v54  ;;  %v3260_v56 = vld [vmem:[%s7082_s5] sm:$0xff]  ;;  %v3261_v47 = vld [vmem:[%s7082_s5 + $0x8] sm:$0xff] }
 0x562   :  { %v3038_v21 = vpop.permute.xlu0 %3037 }
 0x563   :  { %v3055_v33 = vsel %vm1538_vm7, %v6348_v37, %v3038_v21  ;;  %v7226_v37 = vld [vmem:[#allocation24_spill] sm:$0xff]  ;;  %v3056_v25 = vsel %vm1538_vm7, %v3038_v21, %v3040_v3 }
 0x564   :  { %v2544_v60 = vadd.f32 %v2519_v17, %v7226_v37  ;;  %v3280_v17 = vld [vmem:[%s7082_s5 + $0xa0] sm:$0xff]  ;;  %v3282_v37 = vld [vmem:[%s7082_s5 + $0xb0] sm:$0xff] }
 0x566   :  { %v3042_v44 = vpop.permute.xlu0 %3041  ;;  %v2852_v22 = vadd.f32 %v2827_v29, %v2544_v60  ;;  %v3283_v60 = vld [vmem:[%s7082_s5 + $0xb8] sm:$0xff] }
 0x567   :  { %v3057_v26 = vsel %vm1538_vm7, %v3040_v3, %v3042_v44  ;;  %v6567_v12 = vpack.c.bf16 %v3283_v60, %v3282_v37  ;;  %v3289_v60 = vld [vmem:[%s7082_s5 + $0xe8] sm:$0xff] }
 0x581   :  { %v2961_v18 = vpop.permute.xlu1 %2960 }
 0x582   :  { %v2978_v20 = vsel %vm1457_vm6, %v2959_v38, %v2961_v18  ;;  %v2853_v38 = vadd.f32 %v2828_v50, %v2545_v59  ;;  %v3266_v59 = vld [vmem:[%s7082_s5 + $0x30] sm:$0xff] }
 0x583   :  { %v3003_v46 = vadd.f32 %v2978_v20, %v6365_v32 }
 0x585   :  { %v3080_v27 = vadd.f32 %v3055_v33, %v3003_v46  ;;  %v2963_v48 = vpop.permute.xlu1 %2962  ;;  %v3278_v46 = vld [vmem:[%s7082_s5 + $0x90] sm:$0xff] }
 0x586   :  { %v2979_v34 = vsel %vm1457_vm6, %v2961_v18, %v2963_v48  ;;  %v2965_v43 = vpop.permute.xlu0 %2964  ;;  %v6501_v18 = vpack.c.bf16 %v3261_v47, %v3260_v56  ;;  %v6520_v33 = vpack.c.bf16 %v3279_v45, %v3278_v46  ;;  %v3287_v56 = vld [vmem:[%s7082_s5 + $0xd8] sm:$0xff]  ;;  %v6620_v47 = vpack.c.bf16 %v3269_v1, %v3268_v19 }
 0x587   :  { %v3098_v2 = vadd.f32 %v6265_v51, %v3080_v27  ;;  %v2980_v32 = vsel %vm1457_vm6, %v2963_v48, %v2965_v43  ;;  %v3004_v35 = vadd.f32 %v2979_v34, %v2850_v13  ;;  %v3262_v27 = vld [vmem:[%s7082_s5 + $0x10] sm:$0xff]  ;;  %v3263_v48 = vld [vmem:[%s7082_s5 + $0x18] sm:$0xff] }
 0x588   :  { %v3005_v58 = vadd.f32 %v2980_v32, %v2851_v0  ;;  %4338 = vmatpush3.bf16.msra.mxu0 %v6501_v18  ;;  %v3265_v32 = vld [vmem:[%s7082_s5 + $0x28] sm:$0xff]  ;;  %v3271_v46 = vld [vmem:[%s7082_s5 + $0x58] sm:$0xff] }
 0x589   :  { %v3111_v10 = vmax.f32 %v3098_v2, 0.0  ;;  %v2967_v8 = vpop.permute.xlu1 %2966  ;;  %v3081_v62 = vadd.f32 %v3056_v25, %v3004_v35  ;;  %v3264_v2 = vld [vmem:[%s7082_s5 + $0x20] sm:$0xff]  ;;  %4340 = vmatprep.subr.bf16.mxu0 %v6520_v33  ;;  %v3295_v19 = vld [vmem:[%s7082_s5 + $0x118] sm:$0xff] }
 0x58a   :  { %v2981_v61 = vsel %vm1457_vm6, %v2965_v43, %v2967_v8  ;;  %v6473_v16 = vpop.permute.xlu0 %2968  ;;  %v3082_v39 = vadd.f32 %v3057_v26, %v3005_v58  ;;  %v6533_v43 = vpack.c.bf16 %v3263_v48, %v3262_v27  ;;  %v6547_v58 = vpack.c.bf16 %v3281_v63, %v3280_v17  ;;  %v3267_v26 = vld [vmem:[%s7082_s5 + $0x38] sm:$0xff]  ;;  %v3308_v25 = vld [vmem:[%s7082_s5 + $0x180] sm:$0xff] }
 0x58b   :  { %v2982_v41 = vsel %vm1457_vm6, %v2967_v8, %v6473_v16  ;;  %3143 = vrot.lane.b32.xlu1 %v3111_v10, %s4593_s0  ;;  %v3006_v7 = vadd.f32 %v2981_v61, %v2852_v22  ;;  %v6560_v10 = vpack.c.bf16 %v3265_v32, %v3264_v2  ;;  %v3284_v61 = vld [vmem:[%s7082_s5 + $0xc0] sm:$0xff]  ;;  %v3285_v22 = vld [vmem:[%s7082_s5 + $0xc8] sm:$0xff] }
 0x58c   :  { %v3007_v11 = vadd.f32 %v2982_v41, %v2853_v38  ;;  %v6497_v21 = vadd.f32 %v6265_v51, %v3082_v39  ;;  %4342 = vmatpush3.bf16.msra.mxu0 %v6533_v43  ;;  %v3309_v39 = vld [vmem:[%s7082_s5 + $0x188] sm:$0xff]  ;;  %v3292_v41 = vld [vmem:[%s7082_s5 + $0x100] sm:$0xff]  ;;  %v6593_v38 = vpack.c.bf16 %v3267_v26, %v3266_v59 }
 0x58d   :  { %v3044_v4 = vpop.permute.xlu1 %3043  ;;  %4344 = vmatprep.subr.bf16.mxu0 %v6547_v58  ;;  %v7228_v48 = vld [vmem:[#allocation28_spill] sm:$0xff]  ;;  %v7229_v2 = vld [vmem:[#allocation37_spill] sm:$0xff] }
 0x58e   :  { %v3058_v23 = vsel %vm1538_vm7, %v3042_v44, %v3044_v4  ;;  %v6486_v13 = vpop.permute.xlu0 %3045  ;;  %v6504_v44 = vadd.f32 %v6265_v51, %v3081_v62  ;;  %v3113_v0 = vmax.f32 %v6497_v21, 0.0  ;;  %v6595_v62 = vpack.c.bf16 %v3309_v39, %v3308_v25  ;;  %v3272_v26 = vld [vmem:[%s7082_s5 + $0x60] sm:$0xff]  ;;  %v3311_v25 = vld [vmem:[%s7082_s5 + $0x198] sm:$0xff] }
 0x58f   :  { %v3083_v3 = vadd.f32 %v3058_v23, %v3006_v7  ;;  %v3059_v30 = vsel %vm1538_vm7, %v3044_v4, %v6486_v13  ;;  %v3293_v7 = vld [vmem:[%s7082_s5 + $0x108] sm:$0xff]  ;;  %v6601_v4 = vpack.c.bf16 %v3285_v22, %v3284_v61  ;;  %v3286_v23 = vld [vmem:[%s7082_s5 + $0xd0] sm:$0xff] }
 0x590   :  { %v3084_v20 = vadd.f32 %v3059_v30, %v3007_v11  ;;  %v3112_v29 = vmax.f32 %v6504_v44, 0.0  ;;  %4346 = vmatpush3.bf16.msra.mxu0 %v6560_v10  ;;  %v6609_v11 = vpack.c.bf16 %v3293_v7, %v3292_v41  ;;  %4368 = vmatprep.subr.bf16.mxu1 %v6595_v62  ;;  %v6623_v30 = vpack.c.bf16 %v3287_v56, %v3286_v23  ;;  %v3310_v22 = vld [vmem:[%s7082_s5 + $0x190] sm:$0xff]  ;;  %v3324_v44 = vld [vmem:[%s7082_s5 + $0x200] sm:$0xff] }
 0x591   :  { %v6508_v14 = vadd.f32 %v6265_v51, %v3083_v3  ;;  %4348 = vmatprep.subr.bf16.mxu0 %v6567_v12  ;;  %v2509_v3 = vpop.permute.xlu1 %2508  ;;  %v6665_v41 = vpack.c.bf16 %v3311_v25, %v3310_v22  ;;  %v3294_v7 = vld [vmem:[%s7082_s5 + $0x110] sm:$0xff] }
 0x592   :  { %v6518_v15 = vadd.f32 %v6265_v51, %v3084_v20  ;;  %4370 = vmatpush3.bf16.msra.mxu1 %v6609_v11  ;;  %v3270_v20 = vld [vmem:[%s7082_s5 + $0x50] sm:$0xff]  ;;  %v2521_v45 = vsel %vm981_vm2, %v6444_v52, %v2509_v3  ;;  %v2547_v17 = vadd.f32 %v2509_v3, %v7228_v48  ;;  %v2817_v63 = vpop.permute.xlu0 %2816  ;;  %v3288_v52 = vld [vmem:[%s7082_s5 + $0xe0] sm:$0xff]  ;;  %v6676_v23 = vpack.c.bf16 %v3295_v19, %v3294_v7  ;;  %v3291_v3 = vld [vmem:[%s7082_s5 + $0xf8] sm:$0xff] }
 0x593   :  { %v3114_v34 = vmax.f32 %v6508_v14, 0.0  ;;  %v6634_v27 = vpack.c.bf16 %v3271_v46, %v3270_v20  ;;  %v2546_v32 = vadd.f32 %v2521_v45, %v7229_v2  ;;  %v2829_v37 = vsel %vm1297_vm5, %v6451_v54, %v2817_v63  ;;  %v3273_v54 = vld [vmem:[%s7082_s5 + $0x68] sm:$0xff]  ;;  %v3290_v56 = vld [vmem:[%s7082_s5 + $0xf0] sm:$0xff]  ;;  %4372 = vmatprep.subr.bf16.mxu1 %v6665_v41  ;;  %v3275_v48 = vld [vmem:[%s7082_s5 + $0x78] sm:$0xff] }
 0x594   :  { %v3115_v35 = vmax.f32 %v6518_v15, 0.0  ;;  %4350 = vmatpush3.bf16.msra.mxu0 %v6593_v38  ;;  %v6648_v59 = vpack.c.bf16 %v3289_v60, %v3288_v52  ;;  %v6656_v61 = vpack.c.bf16 %v3273_v54, %v3272_v26  ;;  %v6685_v45 = vpack.c.bf16 %v3291_v3, %v3290_v56  ;;  %v3313_v2 = vld [vmem:[%s7082_s5 + $0x1a8] sm:$0xff]  ;;  %v3296_v52 = vld [vmem:[%s7082_s5 + $0x120] sm:$0xff] }
 0x595   :  { %v4540_v50 = vpack.i.bf16 %v3114_v34, %v3113_v0  ;;  %4352 = vmatprep.subr.bf16.mxu0 %v6601_v4  ;;  %v2854_v39 = vadd.f32 %v2829_v37, %v2546_v32  ;;  %v3297_v60 = vld [vmem:[%s7082_s5 + $0x128] sm:$0xff] }
 0x596   :  { %v4545_v8 = vpack.i.bf16 %v3112_v29, %v3115_v35  ;;  %v3048_v46 = vpop.permute.xlu0 %3047  ;;  %4374 = vmatpush3.bf16.msra.mxu1 %v6676_v23  ;;  %v3325_v14 = vld [vmem:[%s7082_s5 + $0x208] sm:$0xff] }
 0x597   :  { %4541 = vrot.lane.b32.xlu0 %v4540_v50, %s4593_s0  ;;  %v2855_v50 = vadd.f32 %v2817_v63, %v2547_v17  ;;  %v3312_v63 = vld [vmem:[%s7082_s5 + $0x1a0] sm:$0xff] }
 0x598   :  { %4546 = vrot.lane.b32.xlu1 %v4545_v8, %s4593_s0  ;;  %4354 = vmatpush3.bf16.msra.mxu0 %v6620_v47  ;;  %v2971_v8 = vpop.permute.xlu1 %2970  ;;  %v6703_v37 = vpack.c.bf16 %v3313_v2, %v3312_v63 }
 0x599   :  { %4356 = vmatprep.subr.bf16.mxu0 %v6623_v30  ;;  %v2983_v1 = vsel %vm1457_vm6, %v6473_v16, %v2971_v8  ;;  %v3009_v20 = vadd.f32 %v2971_v8, %v2855_v50  ;;  %v3274_v16 = vld [vmem:[%s7082_s5 + $0x70] sm:$0xff]  ;;  %v3060_v50 = vsel %vm1538_vm7, %v6486_v13, %v3048_v46  ;;  %v6714_v8 = vpack.c.bf16 %v3297_v60, %v3296_v52  ;;  %v3315_v13 = vld [vmem:[%s7082_s5 + $0x1b8] sm:$0xff] }
 0x59a   :  { %v6694_v17 = vpack.c.bf16 %v3275_v48, %v3274_v16  ;;  %v3008_v32 = vadd.f32 %v2983_v1, %v2854_v39  ;;  %4376 = vmatprep.subr.bf16.mxu1 %v6703_v37  ;;  %v3314_v1 = vld [vmem:[%s7082_s5 + $0x1b0] sm:$0xff] }
 0x59b   :  { %v3086_v26 = vadd.f32 %v3048_v46, %v3009_v20  ;;  %4378 = vmatpush3.bf16.msra.mxu1 %v6714_v8  ;;  %v6724_v3 = vpack.c.bf16 %v3315_v13, %v3314_v1  ;;  %v3298_v20 = vld [vmem:[%s7082_s5 + $0x130] sm:$0xff]  ;;  %v3299_v46 = vld [vmem:[%s7082_s5 + $0x138] sm:$0xff] }
 0x59c   :  { %4358 = vmatpush3.bf16.msra.mxu0 %v6634_v27  ;;  %v3085_v56 = vadd.f32 %v3060_v50, %v3008_v32  ;;  %v6735_v2 = vpack.c.bf16 %v3299_v46, %v3298_v20  ;;  %v3321_v20 = vld [vmem:[%s7082_s5 + $0x1e8] sm:$0xff] }
 0x59d   :  { %4360 = vmatprep.subr.bf16.mxu0 %v6648_v59  ;;  %v6738_v32 = vadd.f32 %v6265_v51, %v3086_v26  ;;  %4380 = vmatprep.subr.bf16.mxu1 %v6724_v3  ;;  %v3316_v26 = vld [vmem:[%s7082_s5 + $0x1c0] sm:$0xff] }
 0x59e   :  { %v6761_v55 = vadd.f32 %v6265_v51, %v3085_v56  ;;  %v3318_v51 = vld [vmem:[%s7082_s5 + $0x1d0] sm:$0xff]  ;;  %v3320_v56 = vld [vmem:[%s7082_s5 + $0x1e0] sm:$0xff] }
 0x59f   :  { %4382 = vmatpush3.bf16.msra.mxu1 %v6735_v2 }
 0x5a0   :  { %4362 = vmatpush3.bf16.msra.mxu0 %v6656_v61 }
 0x5a1   :  { %4364 = vmatprep.subr.bf16.mxu0 %v6685_v45 }
 0x5a4   :  { %4366 = vmatpush3.bf16.msra.mxu0 %v6694_v17 }
 0x5ae   :  { %v4532_v54 = vpop.permute.xlu1 %4531  ;;  %v4537_v22 = vpop.permute.xlu0 %4536 }
 0x5af   :  { %v4534_v25 = vunpack.i.h.bf16 %v4532_v54  ;;  %v4533_v39 = vunpack.i.l.bf16 %v4532_v54  ;;  %v4539_v7 = vunpack.i.h.bf16 %v4537_v22  ;;  %v4538_v19 = vunpack.i.l.bf16 %v4537_v22  ;;  %v3319_v22 = vld [vmem:[%s7082_s5 + $0x1d8] sm:$0xff] }
 0x5b0   :  { %v6792_v13 = vpack.c.bf16 %v3319_v22, %v3318_v51 }
 0x5b1   :  { %v3158_v16 = vsel %vm981_vm2, %v4533_v39, %v4534_v25  ;;  %v3157_v48 = vsel %vm981_vm2, %v4539_v7, %v4533_v39  ;;  %v3159_v63 = vsel %vm981_vm2, %v4534_v25, %v4538_v19  ;;  %v3302_v25 = vld [vmem:[%s7082_s5 + $0x150] sm:$0xff]  ;;  %v3303_v39 = vld [vmem:[%s7082_s5 + $0x158] sm:$0xff]  ;;  %v3117_v7 = vmax.f32 %v6738_v32, 0.0 }
 0x5b2   :  { %v6742_v52 = vmax.f32 %v3106_v57, %v3158_v16  ;;  %v6746_v60 = vmax.f32 %v3105_v6, %v3157_v48  ;;  %v6750_v50 = vmax.f32 %v3107_v36, %v3159_v63  ;;  %v6767_v6 = vpack.c.bf16 %v3317_v28, %v3316_v26  ;;  %v3300_v57 = vld [vmem:[%s7082_s5 + $0x140] sm:$0xff]  ;;  %v3301_v36 = vld [vmem:[%s7082_s5 + $0x148] sm:$0xff]  ;;  %v3140_v1 = vpop.permute.xlu1 %3139  ;;  %v3330_v32 = vld [vmem:[%s7082_s5 + $0x230] sm:$0xff] }
 0x5b3   :  { %v6778_v54 = vpack.c.bf16 %v3301_v36, %v3300_v57  ;;  %v6801_v46 = vpack.c.bf16 %v3303_v39, %v3302_v25  ;;  %v3116_v16 = vmax.f32 %v6761_v55, 0.0  ;;  %v6808_v48 = vpack.c.bf16 %v3321_v20, %v3320_v56  ;;  %v3304_v63 = vld [vmem:[%s7082_s5 + $0x160] sm:$0xff]  ;;  %v3305_v26 = vld [vmem:[%s7082_s5 + $0x168] sm:$0xff]  ;;  %v3323_v36 = vld [vmem:[%s7082_s5 + $0x1f8] sm:$0xff] }
 0x5b4   :  { %3204 = vrot.lane.b32.xlu1 %v6746_v60, %s4601_s27  ;;  %v4550_v40 = vpack.i.bf16 %v6750_v50, %v6742_v52  ;;  %4384 = vmatprep.subr.bf16.mxu1 %v6767_v6  ;;  %v3160_v28 = vsel %vm981_vm2, %v4538_v19, %v3140_v1  ;;  %v3322_v19 = vld [vmem:[%s7082_s5 + $0x1f0] sm:$0xff]  ;;  %v4602_v25 = vmov 0.0|0.0  }
 0x5b5   :  { %4386 = vmatpush3.bf16.msra.mxu1 %v6778_v54  ;;  %v6825_v57 = vmax.f32 %v3108_v5, %v3160_v28  ;;  %v6837_v51 = vpack.c.bf16 %v3323_v36, %v3322_v19  ;;  %v3307_v5 = vld [vmem:[%s7082_s5 + $0x178] sm:$0xff]  ;;  %4399 = vmatprep.subr.bf16.mxu0 %v4602_v25 }
 0x5b6   :  { %4551 = vrot.lane.b32.xlu0 %v4550_v40, %s4601_s27  ;;  %4388 = vmatprep.subr.bf16.mxu1 %v6792_v13  ;;  %v6821_v40 = vpack.c.bf16 %v3305_v26, %v3304_v63  ;;  %v6845_v22 = vpack.c.bf16 %v3307_v5, %v3306_v42 }
 0x5b8   :  { %3155 = vrot.lane.b32.xlu1 %v3117_v7, %s4593_s0 }
 0x5b9   :  { %4390 = vmatpush3.bf16.msra.mxu1 %v6801_v46 }
 0x5ba   :  { %3153 = vrot.lane.b32.xlu0 %v3116_v16, %s4593_s0  ;;  %4392 = vmatprep.subr.bf16.mxu1 %v6808_v48 }
 0x5bd   :  { %4394 = vmatpush3.bf16.msra.mxu1 %v6821_v40 }
 0x5be   :  { %3210 = vrot.lane.b32.xlu0 %v6825_v57, %s4601_s27  ;;  %4396 = vmatprep.subr.bf16.mxu1 %v6837_v51 }
 0x5c1   :  { %4398 = vmatpush3.bf16.msra.mxu1 %v6845_v22 }
 0x5c2   :  { %4425 = vmatprep.subr.bf16.mxu1 %v6488_v9 }
 0x5ca   :  { %v3142_v39 = vpop.permute.xlu0 %3141 }
 0x5cb   :  { %v3161_v56 = vsel %vm981_vm2, %v3140_v1, %v3142_v39 }
 0x5cc   :  { %v6854_v20 = vmax.f32 %v3109_v49, %v3161_v56 }
 0x5ce   :  { %3212 = vrot.lane.b32.xlu1 %v6854_v20, %s4601_s27 }
 0x5fd   :  { %v3144_v63 = vpop.permute.xlu1 %3143 }
 0x5fe   :  { %v3162_v26 = vsel %vm981_vm2, %v3142_v39, %v3144_v63 }
 0x5ff   :  { %v3185_v28 = vmax.f32 %v3110_v31, %v3162_v26 }
 0x601   :  { %3214 = vrot.lane.b32.xlu0 %v3185_v28, %s4601_s27 }
 0x609   :  { %v4542_v9 = vpop.permute.xlu0 %4541 }
 0x60a   :  { %v4544_v19 = vunpack.i.h.bf16 %v4542_v9  ;;  %v4543_v36 = vunpack.i.l.bf16 %v4542_v9  ;;  %v4547_v42 = vpop.permute.xlu1 %4546 }
 0x60b   :  { %v4549_v1 = vunpack.i.h.bf16 %v4547_v42  ;;  %v4548_v5 = vunpack.i.l.bf16 %v4547_v42 }
 0x60c   :  { %v3164_v53 = vsel %vm981_vm2, %v4543_v36, %v4544_v19 }
 0x60d   :  { %v6865_v49 = vmax.f32 %v3113_v0, %v3164_v53  ;;  %v3163_v56 = vsel %vm981_vm2, %v4549_v1, %v4543_v36  ;;  %v3165_v39 = vsel %vm981_vm2, %v4544_v19, %v4548_v5 }
 0x60e   :  { %v6871_v24 = vmax.f32 %v3112_v29, %v3163_v56  ;;  %v6875_v31 = vmax.f32 %v3114_v34, %v3165_v39  ;;  %v6894_v56 = vpack.c.bf16 %v3325_v14, %v3324_v44  ;;  %v3333_v44 = vld [vmem:[%s7082_s5 + $0x248] sm:$0xff] }
 0x610   :  { %3216 = vrot.lane.b32.xlu0 %v6871_v24, %s4601_s27  ;;  %v4555_v21 = vpack.i.bf16 %v6875_v31, %v6865_v49 }
 0x612   :  { %4556 = vrot.lane.b32.xlu1 %v4555_v21, %s4601_s27 }
 0x626   :  { %v3205_v0 = vpop.permute.xlu1 %3204 }
 0x628   :  { %v4552_v63 = vpop.permute.xlu0 %4551 }
 0x629   :  { %v4554_v26 = vunpack.i.h.bf16 %v4552_v63  ;;  %v4553_v28 = vunpack.i.l.bf16 %v4552_v63 }
 0x62a   :  { %v3156_v19 = vpop.permute.xlu1 %3155 }
 0x62b   :  { %v3229_v34 = vsel %vm3228_vm10, %v3205_v0, %v4553_v28  ;;  %v3230_v29 = vsel %vm3228_vm10, %v4553_v28, %v4554_v26  ;;  %v3191_v55 = vmax.f32 %v3117_v7, %v3156_v19  ;;  %v3331_v7 = vld [vmem:[%s7082_s5 + $0x238] sm:$0xff]  ;;  %v3332_v28 = vld [vmem:[%s7082_s5 + $0x240] sm:$0xff] }
 0x62c   :  { %v3249_v9 = vmax.f32 %v6746_v60, %v3229_v34  ;;  %v3154_v36 = vpop.permute.xlu0 %3153  ;;  %v3250_v42 = vmax.f32 %v6742_v52, %v3230_v29  ;;  %v3326_v60 = vld [vmem:[%s7082_s5 + $0x210] sm:$0xff]  ;;  %v3327_v52 = vld [vmem:[%s7082_s5 + $0x218] sm:$0xff]  ;;  %v6940_v63 = vpack.c.bf16 %v3331_v7, %v3330_v32  ;;  %v6950_v34 = vpack.c.bf16 %v3333_v44, %v3332_v28 }
 0x62d   :  { %v3166_v1 = vsel %vm981_vm2, %v4548_v5, %v3154_v36  ;;  %v3167_v53 = vsel %vm981_vm2, %v3154_v36, %v3156_v19  ;;  %v6915_v15 = vpack.c.bf16 %v3327_v52, %v3326_v60  ;;  %v3329_v5 = vld [vmem:[%s7082_s5 + $0x228] sm:$0xff]  ;;  %v3334_v29 = vld [vmem:[%s7082_s5 + $0x250] sm:$0xff]  ;;  %v3336_v60 = vld [vmem:[%s7082_s5 + $0x260] sm:$0xff] }
 0x62e   :  { %v6898_v39 = vmax.f32 %v3115_v35, %v3166_v1  ;;  %v6902_v21 = vmax.f32 %v3116_v16, %v3167_v53  ;;  %3411 = vmatprep.mubr.f32.mxu0 %v3250_v42  ;;  %v7230_v35 = vmov 0.0   ;;  %v3328_v16 = vld [vmem:[%s7082_s5 + $0x220] sm:$0xff]  ;;  %v3337_v52 = vld [vmem:[%s7082_s5 + $0x268] sm:$0xff] }
 0x62f   :  { %3412 = vmatmul.mubr.f32.vlgmr.msra.gmra.mrb[126].mxu0 %v3249_v9  ;;  %v6930_v0 = vpack.c.bf16 %v3329_v5, %v3328_v16  ;;  %v3335_v9 = vld [vmem:[%s7082_s5 + $0x258] sm:$0xff] }
 0x630   :  { %3224 = vrot.lane.b32.xlu0 %v6902_v21, %s4601_s27  ;;  %3222 = vrot.lane.b32.xlu1 %v6898_v39, %s4601_s27  ;;  %v3211_v14 = vpop.permute.xlu0 %3210  ;;  %v6962_v1 = vpack.c.bf16 %v3335_v9, %v3334_v29  ;;  %v3339_v16 = vld [vmem:[%s7082_s5 + $0x278] sm:$0x7f] }
 0x631   :  { %4401 = vmatpush3.bf16.msra.mxu0 %v6894_v56  ;;  %4297 = vmatprep.mubr.msk.f32.mxu0 %vm4600_vm9, %v7230_v35  ;;  %v3231_v19 = vsel %vm3228_vm10, %v4554_v26, %v3211_v14 }
 0x632   :  { %4402 = vmatprep.subr.bf16.mxu0 %v4602_v25  ;;  %v3251_v26 = vmax.f32 %v6750_v50, %v3231_v19 }
 0x634   :  { %3226 = vrot.lane.b32.xlu1 %v3191_v55, %s4601_s27  ;;  %v6974_v55 = vpack.c.bf16 %v3337_v52, %v3336_v60  ;;  %v3259_v60 = vld [vmem:[%s7083_s6] sm:$0x1] }
 0x635   :  { %4404 = vmatpush3.bf16.msra.mxu0 %v6915_v15 }
 0x636   :  { %4405 = vmatprep.subr.bf16.mxu0 %v4602_v25 }
 0x639   :  { %4407 = vmatpush3.bf16.msra.mxu0 %v6930_v0 }
 0x63a   :  { %4408 = vmatprep.subr.bf16.mxu0 %v4602_v25 }
 0x63d   :  { %4410 = vmatpush3.bf16.msra.mxu0 %v6940_v63 }
 0x63e   :  { %4411 = vmatprep.subr.bf16.mxu0 %v4602_v25 }
 0x640   :  { %v3213_v36 = vpop.permute.xlu1 %3212 }
 0x641   :  { %v3232_v42 = vsel %vm3228_vm10, %v3211_v14, %v3213_v36  ;;  %4413 = vmatpush3.bf16.msra.mxu0 %v6950_v34 }
 0x642   :  { %v3252_v53 = vmax.f32 %v6825_v57, %v3232_v42  ;;  %4414 = vmatprep.subr.bf16.mxu0 %v4602_v25  ;;  %v6981_v57 = vld [vmem:[%s7082_s5 + $0x270] sm:$0xff] }
 0x643   :  { %v4421_v50 = vpack.c.bf16 %v3339_v16, %v6981_v57 }
 0x644   :  { %3481 = vmatprep.mubr.f32.mxu1 %v3252_v53 }
 0x645   :  { %3482 = vmatmul.mubr.f32.vlgmr.msra.gmra.mrb[126].mxu1 %v3251_v26  ;;  %4416 = vmatpush3.bf16.msra.mxu0 %v6962_v1 }
 0x646   :  { %4427 = vmatpush3.bf16.msra.mxu1 %v6501_v18  ;;  %4417 = vmatprep.subr.bf16.mxu0 %v4602_v25 }
 0x647   :  { %4429 = vmatprep.subr.bf16.mxu1 %v6520_v33 }
 0x649   :  { %4419 = vmatpush3.bf16.msra.mxu0 %v6974_v55 }
 0x64a   :  { %4431 = vmatpush3.bf16.msra.mxu1 %v6533_v43  ;;  %4420 = vmatprep.subr.bf16.mxu0 %v4602_v25 }
 0x64b   :  { %4433 = vmatprep.subr.bf16.mxu1 %v6547_v58 }
 0x64d   :  { %4423 = vmatpush3.bf16.msk.msra.mxu0 %vm6991_vm13, %v4421_v50 }
 0x64e   :  { %4435 = vmatpush3.bf16.msra.mxu1 %v6560_v10  ;;  %4457 = vmatprep.subr.bf16.mxu0 %v6595_v62 }
 0x64f   :  { %4437 = vmatprep.subr.bf16.mxu1 %v6567_v12 }
 0x652   :  { %4439 = vmatpush3.bf16.msra.mxu1 %v6593_v38 }
 0x653   :  { %4441 = vmatprep.subr.bf16.mxu1 %v6601_v4 }
 0x656   :  { %4443 = vmatpush3.bf16.msra.mxu1 %v6620_v47 }
 0x657   :  { %4445 = vmatprep.subr.bf16.mxu1 %v6623_v30 }
 0x65a   :  { %4447 = vmatpush3.bf16.msra.mxu1 %v6634_v27  ;;  %v3657_v27 = vld [vmem:[%s7082_s5 + $0x278] sm:$0x7f]  ;;  %s4604_s5 = smov 118  }
 0x65b   :  { %4449 = vmatprep.subr.bf16.mxu1 %v6648_v59 }
 0x65e   :  { %4451 = vmatpush3.bf16.msra.mxu1 %v6656_v61 }
 0x65f   :  { %4453 = vmatprep.subr.bf16.mxu1 %v6685_v45 }
 0x662   :  { %4455 = vmatpush3.bf16.msra.mxu1 %v6694_v17 }
 0x663   :  { %4488 = vmatprep.subr.bf16.mxu1 %v4602_v25 }
 0x673   :  { %v3215_v33 = vpop.permute.xlu0 %3214 }
 0x674   :  { %v3233_v43 = vsel %vm3228_vm10, %v3213_v36, %v3215_v33 }
 0x675   :  { %v3253_v58 = vmax.f32 %v6854_v20, %v3233_v43 }
 0x677   :  { %4298 = vmatmul.mubr.msk.f32.vlgmr.msra.gmra.mrb[128].mxu0 %vm981_vm2, %v3253_v58 }
 0x678   :  { %4459 = vmatpush3.bf16.msra.mxu0 %v6609_v11 }
 0x679   :  { %4461 = vmatprep.subr.bf16.mxu0 %v6665_v41 }
 0x67c   :  { %4463 = vmatpush3.bf16.msra.mxu0 %v6676_v23 }
 0x67d   :  { %4465 = vmatprep.subr.bf16.mxu0 %v6703_v37  ;;  %v4510_v37 = vpack.c.bf16 %v3657_v27, %v6981_v57 }
 0x680   :  { %4467 = vmatpush3.bf16.msra.mxu0 %v6714_v8 }
 0x681   :  { %4469 = vmatprep.subr.bf16.mxu0 %v6724_v3 }
 0x682   :  { %v3217_v62 = vpop.permute.xlu0 %3216 }
 0x684   :  { %v4557_v10 = vpop.permute.xlu1 %4556  ;;  %4471 = vmatpush3.bf16.msra.mxu0 %v6735_v2 }
 0x685   :  { %v4559_v12 = vunpack.i.h.bf16 %v4557_v10  ;;  %v4558_v38 = vunpack.i.l.bf16 %v4557_v10  ;;  %4473 = vmatprep.subr.bf16.mxu0 %v6767_v6 }
 0x687   :  { %v3234_v4 = vsel %vm3228_vm10, %v3217_v62, %v4558_v38  ;;  %v3235_v11 = vsel %vm3228_vm10, %v4558_v38, %v4559_v12 }
 0x688   :  { %v3254_v47 = vmax.f32 %v6871_v24, %v3234_v4  ;;  %v3255_v30 = vmax.f32 %v6865_v49, %v3235_v11  ;;  %4475 = vmatpush3.bf16.msra.mxu0 %v6778_v54 }
 0x689   :  { %4477 = vmatprep.subr.bf16.mxu0 %v6792_v13 }
 0x68a   :  { %3728 = vmatprep.mubr.f32.mxu1 %v3255_v30 }
 0x68b   :  { %3729 = vmatmul.mubr.f32.vlgmr.msra.gmra.mrb[128].mxu1 %v3254_v47 }
 0x68c   :  { %4490 = vmatpush3.bf16.msra.mxu1 %v6894_v56  ;;  %4479 = vmatpush3.bf16.msra.mxu0 %v6801_v46 }
 0x68d   :  { %4491 = vmatprep.subr.bf16.mxu1 %v4602_v25  ;;  %4481 = vmatprep.subr.bf16.mxu0 %v6808_v48 }
 0x68e   :  { %4332 = vmatprep.mubr.msk.f32.mxu1 %vm4600_vm9, %v7230_v35 }
 0x690   :  { %4493 = vmatpush3.bf16.msra.mxu1 %v6915_v15  ;;  %4483 = vmatpush3.bf16.msra.mxu0 %v6821_v40 }
 0x691   :  { %4494 = vmatprep.subr.bf16.mxu1 %v4602_v25  ;;  %4485 = vmatprep.subr.bf16.mxu0 %v6837_v51 }
 0x694   :  { %4496 = vmatpush3.bf16.msra.mxu1 %v6930_v0  ;;  %4487 = vmatpush3.bf16.msra.mxu0 %v6845_v22 }
 0x695   :  { %4497 = vmatprep.subr.bf16.mxu1 %v4602_v25 }
 0x698   :  { %4499 = vmatpush3.bf16.msra.mxu1 %v6940_v63 }
 0x699   :  { %4500 = vmatprep.subr.bf16.mxu1 %v4602_v25 }
 0x69c   :  { %4502 = vmatpush3.bf16.msra.mxu1 %v6950_v34 }
 0x69d   :  { %4503 = vmatprep.subr.bf16.mxu1 %v4602_v25 }
 0x6a0   :  { %4505 = vmatpush3.bf16.msra.mxu1 %v6962_v1 }
 0x6a1   :  { %4506 = vmatprep.subr.bf16.mxu1 %v4602_v25 }
 0x6a2   :  { %v3223_v59 = vpop.permute.xlu1 %3222  ;;  %v3225_v61 = vpop.permute.xlu0 %3224 }
 0x6a3   :  { %v3236_v41 = vsel %vm3228_vm10, %v4559_v12, %v3223_v59  ;;  %v3237_v23 = vsel %vm3228_vm10, %v3223_v59, %v3225_v61 }
 0x6a4   :  { %v3256_v45 = vmax.f32 %v6875_v31, %v3236_v41  ;;  %v3257_v17 = vmax.f32 %v6898_v39, %v3237_v23  ;;  %4508 = vmatpush3.bf16.msra.mxu1 %v6974_v55 }
 0x6a5   :  { %4509 = vmatprep.subr.bf16.mxu1 %v4602_v25 }
 0x6a6   :  { %v3227_v8 = vpop.permute.xlu1 %3226  ;;  %3798 = vmatprep.mubr.f32.mxu0 %v3257_v17 }
 0x6a7   :  { %v3238_v3 = vsel %vm3228_vm10, %v3225_v61, %v3227_v8  ;;  %3799 = vmatmul.mubr.f32.vlgmr.msra.gmra.mrb[130].mxu0 %v3256_v45 }
 0x6a8   :  { %v3258_v2 = vmax.f32 %v6902_v21, %v3238_v3  ;;  %4512 = vmatpush3.bf16.msk.msra.mxu1 %vm6991_vm13, %v4510_v37 }
 0x6ab   :  { %4333 = vmatmul.mubr.msk.f32.vlgmr.msra.gmra.mrb[130].mxu1 %vm981_vm2, %v3258_v2 }
 0x702   :  { %v4094_v6 = vpop.f32.mrb[126].mxu0 }
 0x703   :  { %v4095_v54 = vpop.f32.mrb[127].mxu0 }
 0x704   :  { %v4096_v13 = vadd.f32 %v4095_v54, %v4094_v6 }
 0x718   :  { %v4129_v46 = vpop.f32.mrb[126].mxu1 }
 0x719   :  { %v4130_v48 = vpop.f32.mrb[127].mxu1 }
 0x71a   :  { %v4131_v40 = vadd.f32 %v4130_v48, %v4129_v46 }
 0x71c   :  { %v3484_v51 = vadd.f32 %v4131_v40, %v4096_v13 }
 0x74a   :  { %v3553_v22 = vpop.f32.mrb[128].mxu0 }
 0x74b   :  { %v3554_v25 = vadd.f32 %v3553_v22, %v3484_v51  ;;  %v4299_v20 = vpop.f32.mrb[129].mxu0 }
 0x74d   :  { %v3558_v49 = vrot.slane %v3554_v25, 1 }
 0x74f   :  { %3559 = vrot.lane.b32.xlu0 %v3558_v49, %s4604_s5 }
 0x75e   :  { %v4181_v24 = vpop.f32.mrb[128].mxu1 }
 0x75f   :  { %v4182_v31 = vpop.f32.mrb[129].mxu1 }
 0x760   :  { %v4183_v56 = vadd.f32 %v4182_v31, %v4181_v24 }
 0x77a   :  { %v4216_v39 = vpop.f32.mrb[130].mxu0 }
 0x77b   :  { %v4217_v21 = vpop.f32.mrb[131].mxu0 }
 0x77c   :  { %v4218_v15 = vadd.f32 %v4217_v21, %v4216_v39 }
 0x77e   :  { %v3801_v35 = vadd.f32 %v4218_v15, %v4183_v56  ;;  %v3870_v5 = vpop.f32.mrb[130].mxu1 }
 0x77f   :  { %v4334_v0 = vpop.f32.mrb[131].mxu1 }
 0x780   :  { %v3871_v32 = vadd.f32 %v3870_v5, %v3801_v35 }
 0x782   :  { %v3875_v7 = vrot.slane %v3871_v32, 1 }
 0x784   :  { %3876 = vrot.lane.b32.xlu1 %v3875_v7, %s4604_s5 }
 0x7c1   :  { %v3560_v63 = vpop.permute.xlu0 %3559 }
 0x7c2   :  { %v3562_v28 = vadd.f32 %v3560_v63, %v3554_v25 }
 0x7c4   :  { %v3564_v44 = vrot.slane %v3562_v28, 2 }
 0x7c6   :  { %3565 = vrot.lane.b32.xlu0 %v3564_v44, %s4605_s4 }
 0x7f6   :  { %v3877_v14 = vpop.permute.xlu1 %3876 }
 0x7f7   :  { %v3879_v34 = vadd.f32 %v3877_v14, %v3871_v32 }
 0x7f9   :  { %v3881_v29 = vrot.slane %v3879_v34, 2 }
 0x7fb   :  { %3882 = vrot.lane.b32.xlu1 %v3881_v29, %s4605_s4 }
 0x838   :  { %v3566_v9 = vpop.permute.xlu0 %3565 }
 0x839   :  { %v3568_v19 = vadd.f32 %v3566_v9, %v3562_v28 }
 0x83b   :  { %v3570_v36 = vrot.slane %v3568_v19, 4 }
 0x83d   :  { %3571 = vrot.lane.b32.xlu0 %v3570_v36, %s4606_s10 }
 0x86d   :  { %v3883_v42 = vpop.permute.xlu1 %3882 }
 0x86e   :  { %v3885_v1 = vadd.f32 %v3883_v42, %v3879_v34 }
 0x870   :  { %v3887_v53 = vrot.slane %v3885_v1, 4 }
 0x872   :  { %3888 = vrot.lane.b32.xlu1 %v3887_v53, %s4606_s10 }
 0x8af   :  { %v3572_v52 = vpop.permute.xlu0 %3571 }
 0x8b0   :  { %v3574_v26 = vadd.f32 %v3572_v52, %v3568_v19 }
 0x8b2   :  { %v3575_v55 = vadd.f32 %v3574_v26, %v3259_v60 }
 0x8b4   :  { %3577 = vst.msk [vmem:[#allocation2] sm:$0x1] %vm3576_vm14, %v3575_v55 }
 0x8e4   :  { %v3889_v57 = vpop.permute.xlu1 %3888 }
 0x8e5   :  { %v3891_v16 = vadd.f32 %v3889_v57, %v3885_v1 }
 0x8e7   :  { %v3892_v50 = vadd.f32 %v3891_v16, %v3259_v60 }
 0x8e9   :  { %3893 = vst.msk [vmem:[#allocation2 + $0x1] sm:$0x1] %vm3576_vm14, %v3892_v50 }
 0x8ea   :  { %4579 = shalt.err (!%p4576_p4)
}
 0x8eb   :  { %s4580_s16 = scalar_lea.hbm %s7084_s7, 32 }
 0x8ec   :  { %p4581_p5 = scmp.ne.s32.totalorder %s7084_s7, %s4580_s16  ;;  %p4584_p6 = scmp.lt.u32.totalorder %s4580_s16, %s7084_s7 }
 0x8ee   :  { %p4586_p7 = pnand %p4584_p6, %p4581_p5 }
 0x8f0   :  { %4589 = shalt.err (!%p4586_p7)
}
 0x8f1   :  { %3903 = dma.vmem_to_hbm [thread:$0]  %s3901_s14, 32, %s7084_s7, [#allocation3]  }
 0x8f2   :  { %4590 = dma.done.wait [#allocation3], 32  }
 0x8f3   :  { %4591 = vsyncadd [#allocation3], 4294967264 }
 0x8f4   :  { %3907 = vsyncpa [#allocation3], 1 }

</bundles_post_ra>
